<compile_context>
chip_gen: v6e
topology: v6e:2x2x1
jax: 0.10.0
libtpu: 0.0.40
codegen_flags: <defaults>
</compile_context>

<pallas_src>
import jax
import jax.numpy as jnp
from jax import lax
from jax.experimental import pallas as pl
from jax.experimental.pallas import tpu as pltpu


def _leaky_relu(v):
    # nn.LeakyReLU(0.2) in the PyTorch module.
    return jnp.where(v > 0, v, 0.2 * v)


def _make_fused_kernel(C, C2, C4):
    """features -> conv/lrelu -> conv/lrelu -> conv/sigmoid -> blend, one pass."""

    def kernel(feat_ref, detail_ref, denoise_ref,
               w1_ref, b1_ref, w2_ref, b2_ref, w3_ref, b3_ref,
               out_ref,
               xpad, h1pad, h2pad):
        # feat/detail/denoise/out refs: (1, C, H, W) VMEM blocks (one batch).
        # w*/b* refs: flattened OIHW weights / biases in SMEM (scalar reads).
        # xpad/h1pad/h2pad: zero-bordered VMEM scratch (cin, H+2, W+2).
        H = out_ref.shape[2]
        W = out_ref.shape[3]

        # Zero padded scratch each grid step (borders must be 0; cheap, and
        # safe under "parallel" scheduling where per-core first-iter differs).
        xpad[...] = jnp.zeros_like(xpad)
        h1pad[...] = jnp.zeros_like(h1pad)
        h2pad[...] = jnp.zeros_like(h2pad)

        # ---- stage 0: features -> padded scratch interior -----------------
        for ci in range(C):
            xpad[ci, 1:H + 1, 1:W + 1] = feat_ref[0, ci]

        # ---- conv1 (C -> C2), 3x3, pad=1, LeakyReLU(0.2) -------------------
        # Shifted window materialized once per (ci, dy, dx), reused over cout.
        acc1 = [jnp.full((H, W), b1_ref[co], jnp.float32) for co in range(C2)]
        for ci in range(C):
            for dy in range(3):
                for dx in range(3):
                    window = xpad[ci, dy:dy + H, dx:dx + W]
                    for co in range(C2):
                        wval = w1_ref[((co * C + ci) * 3 + dy) * 3 + dx]
                        acc1[co] = acc1[co] + wval * window
        for co in range(C2):
            h1pad[co, 1:H + 1, 1:W + 1] = _leaky_relu(acc1[co])

        # ---- conv2 (C2 -> C4), 3x3, pad=1, LeakyReLU(0.2) -------------------
        acc2 = [jnp.full((H, W), b2_ref[co], jnp.float32) for co in range(C4)]
        for ci in range(C2):
            for dy in range(3):
                for dx in range(3):
                    window = h1pad[ci, dy:dy + H, dx:dx + W]
                    for co in range(C4):
                        wval = w2_ref[((co * C2 + ci) * 3 + dy) * 3 + dx]
                        acc2[co] = acc2[co] + wval * window
        for co in range(C4):
            h2pad[co, 1:H + 1, 1:W + 1] = _leaky_relu(acc2[co])

        # ---- conv3 (C4 -> 1), 3x3, pad=1, sigmoid ---------------------------
        a = jnp.full((H, W), b3_ref[0], jnp.float32)
        for ci in range(C4):
            for dy in range(3):
                for dx in range(3):
                    wval = w3_ref[(ci * 3 + dy) * 3 + dx]
                    a = a + wval * h2pad[ci, dy:dy + H, dx:dx + W]
        alpha = jax.nn.sigmoid(a)                     # (H, W), broadcast over C

        # ---- blend: out = denoise + alpha * (detail - denoise) -------------
        for c in range(C):
            dn = denoise_ref[0, c]
            out_ref[0, c] = dn + alpha * (detail_ref[0, c] - dn)

    return kernel


def dynamic_fusion_forward(detail, denoise, features, params):
    """All inputs NCHW float32. Returns alpha*detail + (1-alpha)*denoise."""
    w1, b1, w2, b2, w3, b3 = params
    B, C, H, W = features.shape
    C2 = w1.shape[0]
    C4 = w2.shape[0]

    smem = pl.BlockSpec(memory_space=pltpu.MemorySpace.SMEM)
    vblock = pl.BlockSpec((1, C, H, W), lambda b: (b, 0, 0, 0))

    return pl.pallas_call(
        _make_fused_kernel(C, C2, C4),
        out_shape=jax.ShapeDtypeStruct((B, C, H, W), jnp.float32),
        grid=(B,),
        in_specs=[
            vblock,                 # features
            vblock,                 # detail
            vblock,                 # denoise
            smem, smem,             # w1, b1
            smem, smem,             # w2, b2
            smem, smem,             # w3, b3
        ],
        out_specs=vblock,
        scratch_shapes=[
            pltpu.VMEM((C, H + 2, W + 2), jnp.float32),    # padded features
            pltpu.VMEM((C2, H + 2, W + 2), jnp.float32),   # padded h1
            pltpu.VMEM((C4, H + 2, W + 2), jnp.float32),   # padded h2
        ],
        compiler_params=pltpu.CompilerParams(
            dimension_semantics=("parallel",)),
    )(features, detail, denoise,
      w1.reshape(-1), b1, w2.reshape(-1), b2, w3.reshape(-1), b3)


def reference(detail, denoise, features, params):
    """Pure-JAX reference of the PyTorch forward (default config)."""
    w1, b1, w2, b2, w3, b3 = params

    def conv(x, w, b):
        y = lax.conv_general_dilated(x, w, (1, 1), "SAME",
                                     dimension_numbers=("NCHW", "OIHW", "NCHW"))
        return y + b[None, :, None, None]

    h = _leaky_relu(conv(features, w1, b1))
    h = _leaky_relu(conv(h, w2, b2))
    alpha = jax.nn.sigmoid(conv(h, w3, b3))           # (B, 1, H, W)
    return alpha * detail + (1.0 - alpha) * denoise


if __name__ == "__main__":
    B, C, H, W = 2, 4, 16, 16
    C2, C4 = C // 2, C // 4

    key = jax.random.PRNGKey(0)
    ks = jax.random.split(key, 9)
    detail = jax.random.normal(ks[0], (B, C, H, W), jnp.float32)
    denoise = jax.random.normal(ks[1], (B, C, H, W), jnp.float32)
    features = jax.random.normal(ks[2], (B, C, H, W), jnp.float32)

    # Deterministic synthetic parameters (shapes from the module's __init__).
    w1 = 0.2 * jax.random.normal(ks[3], (C2, C, 3, 3), jnp.float32)
    b1 = 0.1 * jax.random.normal(ks[4], (C2,), jnp.float32)
    w2 = 0.2 * jax.random.normal(ks[5], (C4, C2, 3, 3), jnp.float32)
    b2 = 0.1 * jax.random.normal(ks[6], (C4,), jnp.float32)
    w3 = 0.2 * jax.random.normal(ks[7], (1, C4, 3, 3), jnp.float32)
    b3 = 0.1 * jax.random.normal(ks[8], (1,), jnp.float32)
    params = (w1, b1, w2, b2, w3, b3)

    out = jax.block_until_ready(dynamic_fusion_forward(detail, denoise, features, params))
    ref = reference(detail, denoise, features, params)
    max_err = float(jnp.max(jnp.abs(out - ref)))
    assert out.shape == (B, C, H, W)
    assert jnp.allclose(out, ref, atol=1e-4, rtol=1e-4), f"max_err={max_err}"
    print("KERNEL_OK")
</pallas_src>

<mosaic_0001>
module attributes {stable_mosaic.version = 11 : i64} {
  func.func @kernel(%arg0: i32, %arg1: memref<1x4x16x16xf32, #tpu.memory_space<vmem>>, %arg2: memref<1x4x16x16xf32, #tpu.memory_space<vmem>>, %arg3: memref<1x4x16x16xf32, #tpu.memory_space<vmem>>, %arg4: memref<72xf32, #tpu.memory_space<smem>>, %arg5: memref<2xf32, #tpu.memory_space<smem>>, %arg6: memref<18xf32, #tpu.memory_space<smem>>, %arg7: memref<1xf32, #tpu.memory_space<smem>>, %arg8: memref<9xf32, #tpu.memory_space<smem>>, %arg9: memref<1xf32, #tpu.memory_space<smem>>, %arg10: memref<1x4x16x16xf32, #tpu.memory_space<vmem>>, %arg11: memref<4x18x18xf32, #tpu.memory_space<vmem>>, %arg12: memref<2x18x18xf32, #tpu.memory_space<vmem>>, %arg13: memref<1x18x18xf32, #tpu.memory_space<vmem>>) attributes {dimension_semantics = [#tpu.dimension_semantics<parallel>], iteration_bounds = array<i64: 2>, scalar_prefetch = 0 : i64, scratch_operands = 3 : i64, tpu.core_type = #tpu.core_type<tc>, window_params = [{transform_indices = @transform_0, window_bounds = array<i64: 1, 4, 16, 16>}, {transform_indices = @transform_1, window_bounds = array<i64: 1, 4, 16, 16>}, {transform_indices = @transform_2, window_bounds = array<i64: 1, 4, 16, 16>}, {transform_indices = @transform_3, window_bounds = array<i64: 72>}, {transform_indices = @transform_4, window_bounds = array<i64: 2>}, {transform_indices = @transform_5, window_bounds = array<i64: 18>}, {transform_indices = @transform_6, window_bounds = array<i64: 1>}, {transform_indices = @transform_7, window_bounds = array<i64: 9>}, {transform_indices = @transform_8, window_bounds = array<i64: 1>}, {transform_indices = @transform_9, window_bounds = array<i64: 1, 4, 16, 16>}]} {
    %cst = arith.constant 0.000000e+00 : f32
    %0 = vector.broadcast %cst : f32 to vector<4x18x18xf32>
    %c0 = arith.constant 0 : index
    %c0_0 = arith.constant 0 : index
    %c0_1 = arith.constant 0 : index
    %1 = vector.load %arg11[%c0, %c0_0, %c0_1] : memref<4x18x18xf32, #tpu.memory_space<vmem>>, vector<4x18x18xf32>
    tpu.vector_store %arg11[%c0, %c0_0, %c0_1], %0 {strides = array<i32>} : memref<4x18x18xf32, #tpu.memory_space<vmem>>, vector<4x18x18xf32>,
    %cst_2 = arith.constant 0.000000e+00 : f32
    %2 = vector.broadcast %cst_2 : f32 to vector<2x18x18xf32>
    %c0_3 = arith.constant 0 : index
    %c0_4 = arith.constant 0 : index
    %c0_5 = arith.constant 0 : index
    %3 = vector.load %arg12[%c0_3, %c0_4, %c0_5] : memref<2x18x18xf32, #tpu.memory_space<vmem>>, vector<2x18x18xf32>
    tpu.vector_store %arg12[%c0_3, %c0_4, %c0_5], %2 {strides = array<i32>} : memref<2x18x18xf32, #tpu.memory_space<vmem>>, vector<2x18x18xf32>,
    %cst_6 = arith.constant 0.000000e+00 : f32
    %4 = vector.broadcast %cst_6 : f32 to vector<1x18x18xf32>
    %c0_7 = arith.constant 0 : index
    %c0_8 = arith.constant 0 : index
    %c0_9 = arith.constant 0 : index
    %5 = vector.load %arg13[%c0_7, %c0_8, %c0_9] : memref<1x18x18xf32, #tpu.memory_space<vmem>>, vector<1x18x18xf32>
    tpu.vector_store %arg13[%c0_7, %c0_8, %c0_9], %4 {strides = array<i32>} : memref<1x18x18xf32, #tpu.memory_space<vmem>>, vector<1x18x18xf32>,
    %c0_10 = arith.constant 0 : index
    %c0_11 = arith.constant 0 : index
    %c0_12 = arith.constant 0 : index
    %c0_13 = arith.constant 0 : index
    %6 = vector.load %arg1[%c0_10, %c0_11, %c0_12, %c0_13] : memref<1x4x16x16xf32, #tpu.memory_space<vmem>>, vector<1x1x16x16xf32>
    %7 = vector.shape_cast %6 : vector<1x1x16x16xf32> to vector<16x16xf32>
    %c0_14 = arith.constant 0 : index
    %c1 = arith.constant 1 : index
    %c1_15 = arith.constant 1 : index
    %8 = vector.load %arg11[%c0_14, %c1, %c1_15] : memref<4x18x18xf32, #tpu.memory_space<vmem>>, vector<1x16x16xf32>
    %9 = vector.shape_cast %8 : vector<1x16x16xf32> to vector<16x16xf32>
    %10 = vector.shape_cast %7 : vector<16x16xf32> to vector<1x16x16xf32>
    tpu.vector_store %arg11[%c0_14, %c1, %c1_15], %10 {strides = array<i32>} : memref<4x18x18xf32, #tpu.memory_space<vmem>>, vector<1x16x16xf32>,
    %c0_16 = arith.constant 0 : index
    %c1_17 = arith.constant 1 : index
    %c0_18 = arith.constant 0 : index
    %c0_19 = arith.constant 0 : index
    %11 = vector.load %arg1[%c0_16, %c1_17, %c0_18, %c0_19] : memref<1x4x16x16xf32, #tpu.memory_space<vmem>>, vector<1x1x16x16xf32>
    %12 = vector.shape_cast %11 : vector<1x1x16x16xf32> to vector<16x16xf32>
    %c1_20 = arith.constant 1 : index
    %c1_21 = arith.constant 1 : index
    %c1_22 = arith.constant 1 : index
    %13 = vector.load %arg11[%c1_20, %c1_21, %c1_22] : memref<4x18x18xf32, #tpu.memory_space<vmem>>, vector<1x16x16xf32>
    %14 = vector.shape_cast %13 : vector<1x16x16xf32> to vector<16x16xf32>
    %15 = vector.shape_cast %12 : vector<16x16xf32> to vector<1x16x16xf32>
    tpu.vector_store %arg11[%c1_20, %c1_21, %c1_22], %15 {strides = array<i32>} : memref<4x18x18xf32, #tpu.memory_space<vmem>>, vector<1x16x16xf32>,
    %c0_23 = arith.constant 0 : index
    %c2 = arith.constant 2 : index
    %c0_24 = arith.constant 0 : index
    %c0_25 = arith.constant 0 : index
    %16 = vector.load %arg1[%c0_23, %c2, %c0_24, %c0_25] : memref<1x4x16x16xf32, #tpu.memory_space<vmem>>, vector<1x1x16x16xf32>
    %17 = vector.shape_cast %16 : vector<1x1x16x16xf32> to vector<16x16xf32>
    %c2_26 = arith.constant 2 : index
    %c1_27 = arith.constant 1 : index
    %c1_28 = arith.constant 1 : index
    %18 = vector.load %arg11[%c2_26, %c1_27, %c1_28] : memref<4x18x18xf32, #tpu.memory_space<vmem>>, vector<1x16x16xf32>
    %19 = vector.shape_cast %18 : vector<1x16x16xf32> to vector<16x16xf32>
    %20 = vector.shape_cast %17 : vector<16x16xf32> to vector<1x16x16xf32>
    tpu.vector_store %arg11[%c2_26, %c1_27, %c1_28], %20 {strides = array<i32>} : memref<4x18x18xf32, #tpu.memory_space<vmem>>, vector<1x16x16xf32>,
    %c0_29 = arith.constant 0 : index
    %c3 = arith.constant 3 : index
    %c0_30 = arith.constant 0 : index
    %c0_31 = arith.constant 0 : index
    %21 = vector.load %arg1[%c0_29, %c3, %c0_30, %c0_31] : memref<1x4x16x16xf32, #tpu.memory_space<vmem>>, vector<1x1x16x16xf32>
    %22 = vector.shape_cast %21 : vector<1x1x16x16xf32> to vector<16x16xf32>
    %c3_32 = arith.constant 3 : index
    %c1_33 = arith.constant 1 : index
    %c1_34 = arith.constant 1 : index
    %23 = vector.load %arg11[%c3_32, %c1_33, %c1_34] : memref<4x18x18xf32, #tpu.memory_space<vmem>>, vector<1x16x16xf32>
    %24 = vector.shape_cast %23 : vector<1x16x16xf32> to vector<16x16xf32>
    %25 = vector.shape_cast %22 : vector<16x16xf32> to vector<1x16x16xf32>
    tpu.vector_store %arg11[%c3_32, %c1_33, %c1_34], %25 {strides = array<i32>} : memref<4x18x18xf32, #tpu.memory_space<vmem>>, vector<1x16x16xf32>,
    %c0_35 = arith.constant 0 : index
    %26 = memref.load %arg5[%c0_35] : memref<2xf32, #tpu.memory_space<smem>>
    %27 = vector.broadcast %26 : f32 to vector<16x16xf32>
    %c1_36 = arith.constant 1 : index
    %28 = memref.load %arg5[%c1_36] : memref<2xf32, #tpu.memory_space<smem>>
    %29 = vector.broadcast %28 : f32 to vector<16x16xf32>
    %c0_37 = arith.constant 0 : index
    %c0_38 = arith.constant 0 : index
    %c0_39 = arith.constant 0 : index
    %30 = vector.load %arg11[%c0_37, %c0_38, %c0_39] : memref<4x18x18xf32, #tpu.memory_space<vmem>>, vector<1x16x16xf32>
    %31 = vector.shape_cast %30 : vector<1x16x16xf32> to vector<16x16xf32>
    %c0_40 = arith.constant 0 : index
    %32 = memref.load %arg4[%c0_40] : memref<72xf32, #tpu.memory_space<smem>>
    %33 = vector.broadcast %32 : f32 to vector<16x16xf32>
    %34 = arith.mulf %33, %31 : vector<16x16xf32>
    %35 = arith.addf %27, %34 : vector<16x16xf32>
    %c36 = arith.constant 36 : index
    %36 = memref.load %arg4[%c36] : memref<72xf32, #tpu.memory_space<smem>>
    %37 = vector.broadcast %36 : f32 to vector<16x16xf32>
    %38 = arith.mulf %37, %31 : vector<16x16xf32>
    %39 = arith.addf %29, %38 : vector<16x16xf32>
    %c0_41 = arith.constant 0 : index
    %c0_42 = arith.constant 0 : index
    %c1_43 = arith.constant 1 : index
    %40 = vector.load %arg11[%c0_41, %c0_42, %c1_43] : memref<4x18x18xf32, #tpu.memory_space<vmem>>, vector<1x16x16xf32>
    %41 = vector.shape_cast %40 : vector<1x16x16xf32> to vector<16x16xf32>
    %c1_44 = arith.constant 1 : index
    %42 = memref.load %arg4[%c1_44] : memref<72xf32, #tpu.memory_space<smem>>
    %43 = vector.broadcast %42 : f32 to vector<16x16xf32>
    %44 = arith.mulf %43, %41 : vector<16x16xf32>
    %45 = arith.addf %35, %44 : vector<16x16xf32>
    %c37 = arith.constant 37 : index
    %46 = memref.load %arg4[%c37] : memref<72xf32, #tpu.memory_space<smem>>
    %47 = vector.broadcast %46 : f32 to vector<16x16xf32>
    %48 = arith.mulf %47, %41 : vector<16x16xf32>
    %49 = arith.addf %39, %48 : vector<16x16xf32>
    %c0_45 = arith.constant 0 : index
    %c0_46 = arith.constant 0 : index
    %c2_47 = arith.constant 2 : index
    %50 = vector.load %arg11[%c0_45, %c0_46, %c2_47] : memref<4x18x18xf32, #tpu.memory_space<vmem>>, vector<1x16x16xf32>
    %51 = vector.shape_cast %50 : vector<1x16x16xf32> to vector<16x16xf32>
    %c2_48 = arith.constant 2 : index
    %52 = memref.load %arg4[%c2_48] : memref<72xf32, #tpu.memory_space<smem>>
    %53 = vector.broadcast %52 : f32 to vector<16x16xf32>
    %54 = arith.mulf %53, %51 : vector<16x16xf32>
    %55 = arith.addf %45, %54 : vector<16x16xf32>
    %c38 = arith.constant 38 : index
    %56 = memref.load %arg4[%c38] : memref<72xf32, #tpu.memory_space<smem>>
    %57 = vector.broadcast %56 : f32 to vector<16x16xf32>
    %58 = arith.mulf %57, %51 : vector<16x16xf32>
    %59 = arith.addf %49, %58 : vector<16x16xf32>
    %c0_49 = arith.constant 0 : index
    %c1_50 = arith.constant 1 : index
    %c0_51 = arith.constant 0 : index
    %60 = vector.load %arg11[%c0_49, %c1_50, %c0_51] : memref<4x18x18xf32, #tpu.memory_space<vmem>>, vector<1x16x16xf32>
    %61 = vector.shape_cast %60 : vector<1x16x16xf32> to vector<16x16xf32>
    %c3_52 = arith.constant 3 : index
    %62 = memref.load %arg4[%c3_52] : memref<72xf32, #tpu.memory_space<smem>>
    %63 = vector.broadcast %62 : f32 to vector<16x16xf32>
    %64 = arith.mulf %63, %61 : vector<16x16xf32>
    %65 = arith.addf %55, %64 : vector<16x16xf32>
    %c39 = arith.constant 39 : index
    %66 = memref.load %arg4[%c39] : memref<72xf32, #tpu.memory_space<smem>>
    %67 = vector.broadcast %66 : f32 to vector<16x16xf32>
    %68 = arith.mulf %67, %61 : vector<16x16xf32>
    %69 = arith.addf %59, %68 : vector<16x16xf32>
    %c0_53 = arith.constant 0 : index
    %c1_54 = arith.constant 1 : index
    %c1_55 = arith.constant 1 : index
    %70 = vector.load %arg11[%c0_53, %c1_54, %c1_55] : memref<4x18x18xf32, #tpu.memory_space<vmem>>, vector<1x16x16xf32>
    %71 = vector.shape_cast %70 : vector<1x16x16xf32> to vector<16x16xf32>
    %c4 = arith.constant 4 : index
    %72 = memref.load %arg4[%c4] : memref<72xf32, #tpu.memory_space<smem>>
    %73 = vector.broadcast %72 : f32 to vector<16x16xf32>
    %74 = arith.mulf %73, %71 : vector<16x16xf32>
    %75 = arith.addf %65, %74 : vector<16x16xf32>
    %c40 = arith.constant 40 : index
    %76 = memref.load %arg4[%c40] : memref<72xf32, #tpu.memory_space<smem>>
    %77 = vector.broadcast %76 : f32 to vector<16x16xf32>
    %78 = arith.mulf %77, %71 : vector<16x16xf32>
    %79 = arith.addf %69, %78 : vector<16x16xf32>
    %c0_56 = arith.constant 0 : index
    %c1_57 = arith.constant 1 : index
    %c2_58 = arith.constant 2 : index
    %80 = vector.load %arg11[%c0_56, %c1_57, %c2_58] : memref<4x18x18xf32, #tpu.memory_space<vmem>>, vector<1x16x16xf32>
    %81 = vector.shape_cast %80 : vector<1x16x16xf32> to vector<16x16xf32>
    %c5 = arith.constant 5 : index
    %82 = memref.load %arg4[%c5] : memref<72xf32, #tpu.memory_space<smem>>
    %83 = vector.broadcast %82 : f32 to vector<16x16xf32>
    %84 = arith.mulf %83, %81 : vector<16x16xf32>
    %85 = arith.addf %75, %84 : vector<16x16xf32>
    %c41 = arith.constant 41 : index
    %86 = memref.load %arg4[%c41] : memref<72xf32, #tpu.memory_space<smem>>
    %87 = vector.broadcast %86 : f32 to vector<16x16xf32>
    %88 = arith.mulf %87, %81 : vector<16x16xf32>
    %89 = arith.addf %79, %88 : vector<16x16xf32>
    %c0_59 = arith.constant 0 : index
    %c2_60 = arith.constant 2 : index
    %c0_61 = arith.constant 0 : index
    %90 = vector.load %arg11[%c0_59, %c2_60, %c0_61] : memref<4x18x18xf32, #tpu.memory_space<vmem>>, vector<1x16x16xf32>
    %91 = vector.shape_cast %90 : vector<1x16x16xf32> to vector<16x16xf32>
    %c6 = arith.constant 6 : index
    %92 = memref.load %arg4[%c6] : memref<72xf32, #tpu.memory_space<smem>>
    %93 = vector.broadcast %92 : f32 to vector<16x16xf32>
    %94 = arith.mulf %93, %91 : vector<16x16xf32>
    %95 = arith.addf %85, %94 : vector<16x16xf32>
    %c42 = arith.constant 42 : index
    %96 = memref.load %arg4[%c42] : memref<72xf32, #tpu.memory_space<smem>>
    %97 = vector.broadcast %96 : f32 to vector<16x16xf32>
    %98 = arith.mulf %97, %91 : vector<16x16xf32>
    %99 = arith.addf %89, %98 : vector<16x16xf32>
    %c0_62 = arith.constant 0 : index
    %c2_63 = arith.constant 2 : index
    %c1_64 = arith.constant 1 : index
    %100 = vector.load %arg11[%c0_62, %c2_63, %c1_64] : memref<4x18x18xf32, #tpu.memory_space<vmem>>, vector<1x16x16xf32>
    %101 = vector.shape_cast %100 : vector<1x16x16xf32> to vector<16x16xf32>
    %c7 = arith.constant 7 : index
    %102 = memref.load %arg4[%c7] : memref<72xf32, #tpu.memory_space<smem>>
    %103 = vector.broadcast %102 : f32 to vector<16x16xf32>
    %104 = arith.mulf %103, %101 : vector<16x16xf32>
    %105 = arith.addf %95, %104 : vector<16x16xf32>
    %c43 = arith.constant 43 : index
    %106 = memref.load %arg4[%c43] : memref<72xf32, #tpu.memory_space<smem>>
    %107 = vector.broadcast %106 : f32 to vector<16x16xf32>
    %108 = arith.mulf %107, %101 : vector<16x16xf32>
    %109 = arith.addf %99, %108 : vector<16x16xf32>
    %c0_65 = arith.constant 0 : index
    %c2_66 = arith.constant 2 : index
    %c2_67 = arith.constant 2 : index
    %110 = vector.load %arg11[%c0_65, %c2_66, %c2_67] : memref<4x18x18xf32, #tpu.memory_space<vmem>>, vector<1x16x16xf32>
    %111 = vector.shape_cast %110 : vector<1x16x16xf32> to vector<16x16xf32>
    %c8 = arith.constant 8 : index
    %112 = memref.load %arg4[%c8] : memref<72xf32, #tpu.memory_space<smem>>
    %113 = vector.broadcast %112 : f32 to vector<16x16xf32>
    %114 = arith.mulf %113, %111 : vector<16x16xf32>
    %115 = arith.addf %105, %114 : vector<16x16xf32>
    %c44 = arith.constant 44 : index
    %116 = memref.load %arg4[%c44] : memref<72xf32, #tpu.memory_space<smem>>
    %117 = vector.broadcast %116 : f32 to vector<16x16xf32>
    %118 = arith.mulf %117, %111 : vector<16x16xf32>
    %119 = arith.addf %109, %118 : vector<16x16xf32>
    %c1_68 = arith.constant 1 : index
    %c0_69 = arith.constant 0 : index
    %c0_70 = arith.constant 0 : index
    %120 = vector.load %arg11[%c1_68, %c0_69, %c0_70] : memref<4x18x18xf32, #tpu.memory_space<vmem>>, vector<1x16x16xf32>
    %121 = vector.shape_cast %120 : vector<1x16x16xf32> to vector<16x16xf32>
    %c9 = arith.constant 9 : index
    %122 = memref.load %arg4[%c9] : memref<72xf32, #tpu.memory_space<smem>>
    %123 = vector.broadcast %122 : f32 to vector<16x16xf32>
    %124 = arith.mulf %123, %121 : vector<16x16xf32>
    %125 = arith.addf %115, %124 : vector<16x16xf32>
    %c45 = arith.constant 45 : index
    %126 = memref.load %arg4[%c45] : memref<72xf32, #tpu.memory_space<smem>>
    %127 = vector.broadcast %126 : f32 to vector<16x16xf32>
    %128 = arith.mulf %127, %121 : vector<16x16xf32>
    %129 = arith.addf %119, %128 : vector<16x16xf32>
    %c1_71 = arith.constant 1 : index
    %c0_72 = arith.constant 0 : index
    %c1_73 = arith.constant 1 : index
    %130 = vector.load %arg11[%c1_71, %c0_72, %c1_73] : memref<4x18x18xf32, #tpu.memory_space<vmem>>, vector<1x16x16xf32>
    %131 = vector.shape_cast %130 : vector<1x16x16xf32> to vector<16x16xf32>
    %c10 = arith.constant 10 : index
    %132 = memref.load %arg4[%c10] : memref<72xf32, #tpu.memory_space<smem>>
    %133 = vector.broadcast %132 : f32 to vector<16x16xf32>
    %134 = arith.mulf %133, %131 : vector<16x16xf32>
    %135 = arith.addf %125, %134 : vector<16x16xf32>
    %c46 = arith.constant 46 : index
    %136 = memref.load %arg4[%c46] : memref<72xf32, #tpu.memory_space<smem>>
    %137 = vector.broadcast %136 : f32 to vector<16x16xf32>
    %138 = arith.mulf %137, %131 : vector<16x16xf32>
    %139 = arith.addf %129, %138 : vector<16x16xf32>
    %c1_74 = arith.constant 1 : index
    %c0_75 = arith.constant 0 : index
    %c2_76 = arith.constant 2 : index
    %140 = vector.load %arg11[%c1_74, %c0_75, %c2_76] : memref<4x18x18xf32, #tpu.memory_space<vmem>>, vector<1x16x16xf32>
    %141 = vector.shape_cast %140 : vector<1x16x16xf32> to vector<16x16xf32>
    %c11 = arith.constant 11 : index
    %142 = memref.load %arg4[%c11] : memref<72xf32, #tpu.memory_space<smem>>
    %143 = vector.broadcast %142 : f32 to vector<16x16xf32>
    %144 = arith.mulf %143, %141 : vector<16x16xf32>
    %145 = arith.addf %135, %144 : vector<16x16xf32>
    %c47 = arith.constant 47 : index
    %146 = memref.load %arg4[%c47] : memref<72xf32, #tpu.memory_space<smem>>
    %147 = vector.broadcast %146 : f32 to vector<16x16xf32>
    %148 = arith.mulf %147, %141 : vector<16x16xf32>
    %149 = arith.addf %139, %148 : vector<16x16xf32>
    %c1_77 = arith.constant 1 : index
    %c1_78 = arith.constant 1 : index
    %c0_79 = arith.constant 0 : index
    %150 = vector.load %arg11[%c1_77, %c1_78, %c0_79] : memref<4x18x18xf32, #tpu.memory_space<vmem>>, vector<1x16x16xf32>
    %151 = vector.shape_cast %150 : vector<1x16x16xf32> to vector<16x16xf32>
    %c12 = arith.constant 12 : index
    %152 = memref.load %arg4[%c12] : memref<72xf32, #tpu.memory_space<smem>>
    %153 = vector.broadcast %152 : f32 to vector<16x16xf32>
    %154 = arith.mulf %153, %151 : vector<16x16xf32>
    %155 = arith.addf %145, %154 : vector<16x16xf32>
    %c48 = arith.constant 48 : index
    %156 = memref.load %arg4[%c48] : memref<72xf32, #tpu.memory_space<smem>>
    %157 = vector.broadcast %156 : f32 to vector<16x16xf32>
    %158 = arith.mulf %157, %151 : vector<16x16xf32>
    %159 = arith.addf %149, %158 : vector<16x16xf32>
    %c1_80 = arith.constant 1 : index
    %c1_81 = arith.constant 1 : index
    %c1_82 = arith.constant 1 : index
    %160 = vector.load %arg11[%c1_80, %c1_81, %c1_82] : memref<4x18x18xf32, #tpu.memory_space<vmem>>, vector<1x16x16xf32>
    %161 = vector.shape_cast %160 : vector<1x16x16xf32> to vector<16x16xf32>
    %c13 = arith.constant 13 : index
    %162 = memref.load %arg4[%c13] : memref<72xf32, #tpu.memory_space<smem>>
    %163 = vector.broadcast %162 : f32 to vector<16x16xf32>
    %164 = arith.mulf %163, %161 : vector<16x16xf32>
    %165 = arith.addf %155, %164 : vector<16x16xf32>
    %c49 = arith.constant 49 : index
    %166 = memref.load %arg4[%c49] : memref<72xf32, #tpu.memory_space<smem>>
    %167 = vector.broadcast %166 : f32 to vector<16x16xf32>
    %168 = arith.mulf %167, %161 : vector<16x16xf32>
    %169 = arith.addf %159, %168 : vector<16x16xf32>
    %c1_83 = arith.constant 1 : index
    %c1_84 = arith.constant 1 : index
    %c2_85 = arith.constant 2 : index
    %170 = vector.load %arg11[%c1_83, %c1_84, %c2_85] : memref<4x18x18xf32, #tpu.memory_space<vmem>>, vector<1x16x16xf32>
    %171 = vector.shape_cast %170 : vector<1x16x16xf32> to vector<16x16xf32>
    %c14 = arith.constant 14 : index
    %172 = memref.load %arg4[%c14] : memref<72xf32, #tpu.memory_space<smem>>
    %173 = vector.broadcast %172 : f32 to vector<16x16xf32>
    %174 = arith.mulf %173, %171 : vector<16x16xf32>
    %175 = arith.addf %165, %174 : vector<16x16xf32>
    %c50 = arith.constant 50 : index
    %176 = memref.load %arg4[%c50] : memref<72xf32, #tpu.memory_space<smem>>
    %177 = vector.broadcast %176 : f32 to vector<16x16xf32>
    %178 = arith.mulf %177, %171 : vector<16x16xf32>
    %179 = arith.addf %169, %178 : vector<16x16xf32>
    %c1_86 = arith.constant 1 : index
    %c2_87 = arith.constant 2 : index
    %c0_88 = arith.constant 0 : index
    %180 = vector.load %arg11[%c1_86, %c2_87, %c0_88] : memref<4x18x18xf32, #tpu.memory_space<vmem>>, vector<1x16x16xf32>
    %181 = vector.shape_cast %180 : vector<1x16x16xf32> to vector<16x16xf32>
    %c15 = arith.constant 15 : index
    %182 = memref.load %arg4[%c15] : memref<72xf32, #tpu.memory_space<smem>>
    %183 = vector.broadcast %182 : f32 to vector<16x16xf32>
    %184 = arith.mulf %183, %181 : vector<16x16xf32>
    %185 = arith.addf %175, %184 : vector<16x16xf32>
    %c51 = arith.constant 51 : index
    %186 = memref.load %arg4[%c51] : memref<72xf32, #tpu.memory_space<smem>>
    %187 = vector.broadcast %186 : f32 to vector<16x16xf32>
    %188 = arith.mulf %187, %181 : vector<16x16xf32>
    %189 = arith.addf %179, %188 : vector<16x16xf32>
    %c1_89 = arith.constant 1 : index
    %c2_90 = arith.constant 2 : index
    %c1_91 = arith.constant 1 : index
    %190 = vector.load %arg11[%c1_89, %c2_90, %c1_91] : memref<4x18x18xf32, #tpu.memory_space<vmem>>, vector<1x16x16xf32>
    %191 = vector.shape_cast %190 : vector<1x16x16xf32> to vector<16x16xf32>
    %c16 = arith.constant 16 : index
    %192 = memref.load %arg4[%c16] : memref<72xf32, #tpu.memory_space<smem>>
    %193 = vector.broadcast %192 : f32 to vector<16x16xf32>
    %194 = arith.mulf %193, %191 : vector<16x16xf32>
    %195 = arith.addf %185, %194 : vector<16x16xf32>
    %c52 = arith.constant 52 : index
    %196 = memref.load %arg4[%c52] : memref<72xf32, #tpu.memory_space<smem>>
    %197 = vector.broadcast %196 : f32 to vector<16x16xf32>
    %198 = arith.mulf %197, %191 : vector<16x16xf32>
    %199 = arith.addf %189, %198 : vector<16x16xf32>
    %c1_92 = arith.constant 1 : index
    %c2_93 = arith.constant 2 : index
    %c2_94 = arith.constant 2 : index
    %200 = vector.load %arg11[%c1_92, %c2_93, %c2_94] : memref<4x18x18xf32, #tpu.memory_space<vmem>>, vector<1x16x16xf32>
    %201 = vector.shape_cast %200 : vector<1x16x16xf32> to vector<16x16xf32>
    %c17 = arith.constant 17 : index
    %202 = memref.load %arg4[%c17] : memref<72xf32, #tpu.memory_space<smem>>
    %203 = vector.broadcast %202 : f32 to vector<16x16xf32>
    %204 = arith.mulf %203, %201 : vector<16x16xf32>
    %205 = arith.addf %195, %204 : vector<16x16xf32>
    %c53 = arith.constant 53 : index
    %206 = memref.load %arg4[%c53] : memref<72xf32, #tpu.memory_space<smem>>
    %207 = vector.broadcast %206 : f32 to vector<16x16xf32>
    %208 = arith.mulf %207, %201 : vector<16x16xf32>
    %209 = arith.addf %199, %208 : vector<16x16xf32>
    %c2_95 = arith.constant 2 : index
    %c0_96 = arith.constant 0 : index
    %c0_97 = arith.constant 0 : index
    %210 = vector.load %arg11[%c2_95, %c0_96, %c0_97] : memref<4x18x18xf32, #tpu.memory_space<vmem>>, vector<1x16x16xf32>
    %211 = vector.shape_cast %210 : vector<1x16x16xf32> to vector<16x16xf32>
    %c18 = arith.constant 18 : index
    %212 = memref.load %arg4[%c18] : memref<72xf32, #tpu.memory_space<smem>>
    %213 = vector.broadcast %212 : f32 to vector<16x16xf32>
    %214 = arith.mulf %213, %211 : vector<16x16xf32>
    %215 = arith.addf %205, %214 : vector<16x16xf32>
    %c54 = arith.constant 54 : index
    %216 = memref.load %arg4[%c54] : memref<72xf32, #tpu.memory_space<smem>>
    %217 = vector.broadcast %216 : f32 to vector<16x16xf32>
    %218 = arith.mulf %217, %211 : vector<16x16xf32>
    %219 = arith.addf %209, %218 : vector<16x16xf32>
    %c2_98 = arith.constant 2 : index
    %c0_99 = arith.constant 0 : index
    %c1_100 = arith.constant 1 : index
    %220 = vector.load %arg11[%c2_98, %c0_99, %c1_100] : memref<4x18x18xf32, #tpu.memory_space<vmem>>, vector<1x16x16xf32>
    %221 = vector.shape_cast %220 : vector<1x16x16xf32> to vector<16x16xf32>
    %c19 = arith.constant 19 : index
    %222 = memref.load %arg4[%c19] : memref<72xf32, #tpu.memory_space<smem>>
    %223 = vector.broadcast %222 : f32 to vector<16x16xf32>
    %224 = arith.mulf %223, %221 : vector<16x16xf32>
    %225 = arith.addf %215, %224 : vector<16x16xf32>
    %c55 = arith.constant 55 : index
    %226 = memref.load %arg4[%c55] : memref<72xf32, #tpu.memory_space<smem>>
    %227 = vector.broadcast %226 : f32 to vector<16x16xf32>
    %228 = arith.mulf %227, %221 : vector<16x16xf32>
    %229 = arith.addf %219, %228 : vector<16x16xf32>
    %c2_101 = arith.constant 2 : index
    %c0_102 = arith.constant 0 : index
    %c2_103 = arith.constant 2 : index
    %230 = vector.load %arg11[%c2_101, %c0_102, %c2_103] : memref<4x18x18xf32, #tpu.memory_space<vmem>>, vector<1x16x16xf32>
    %231 = vector.shape_cast %230 : vector<1x16x16xf32> to vector<16x16xf32>
    %c20 = arith.constant 20 : index
    %232 = memref.load %arg4[%c20] : memref<72xf32, #tpu.memory_space<smem>>
    %233 = vector.broadcast %232 : f32 to vector<16x16xf32>
    %234 = arith.mulf %233, %231 : vector<16x16xf32>
    %235 = arith.addf %225, %234 : vector<16x16xf32>
    %c56 = arith.constant 56 : index
    %236 = memref.load %arg4[%c56] : memref<72xf32, #tpu.memory_space<smem>>
    %237 = vector.broadcast %236 : f32 to vector<16x16xf32>
    %238 = arith.mulf %237, %231 : vector<16x16xf32>
    %239 = arith.addf %229, %238 : vector<16x16xf32>
    %c2_104 = arith.constant 2 : index
    %c1_105 = arith.constant 1 : index
    %c0_106 = arith.constant 0 : index
    %240 = vector.load %arg11[%c2_104, %c1_105, %c0_106] : memref<4x18x18xf32, #tpu.memory_space<vmem>>, vector<1x16x16xf32>
    %241 = vector.shape_cast %240 : vector<1x16x16xf32> to vector<16x16xf32>
    %c21 = arith.constant 21 : index
    %242 = memref.load %arg4[%c21] : memref<72xf32, #tpu.memory_space<smem>>
    %243 = vector.broadcast %242 : f32 to vector<16x16xf32>
    %244 = arith.mulf %243, %241 : vector<16x16xf32>
    %245 = arith.addf %235, %244 : vector<16x16xf32>
    %c57 = arith.constant 57 : index
    %246 = memref.load %arg4[%c57] : memref<72xf32, #tpu.memory_space<smem>>
    %247 = vector.broadcast %246 : f32 to vector<16x16xf32>
    %248 = arith.mulf %247, %241 : vector<16x16xf32>
    %249 = arith.addf %239, %248 : vector<16x16xf32>
    %c2_107 = arith.constant 2 : index
    %c1_108 = arith.constant 1 : index
    %c1_109 = arith.constant 1 : index
    %250 = vector.load %arg11[%c2_107, %c1_108, %c1_109] : memref<4x18x18xf32, #tpu.memory_space<vmem>>, vector<1x16x16xf32>
    %251 = vector.shape_cast %250 : vector<1x16x16xf32> to vector<16x16xf32>
    %c22 = arith.constant 22 : index
    %252 = memref.load %arg4[%c22] : memref<72xf32, #tpu.memory_space<smem>>
    %253 = vector.broadcast %252 : f32 to vector<16x16xf32>
    %254 = arith.mulf %253, %251 : vector<16x16xf32>
    %255 = arith.addf %245, %254 : vector<16x16xf32>
    %c58 = arith.constant 58 : index
    %256 = memref.load %arg4[%c58] : memref<72xf32, #tpu.memory_space<smem>>
    %257 = vector.broadcast %256 : f32 to vector<16x16xf32>
    %258 = arith.mulf %257, %251 : vector<16x16xf32>
    %259 = arith.addf %249, %258 : vector<16x16xf32>
    %c2_110 = arith.constant 2 : index
    %c1_111 = arith.constant 1 : index
    %c2_112 = arith.constant 2 : index
    %260 = vector.load %arg11[%c2_110, %c1_111, %c2_112] : memref<4x18x18xf32, #tpu.memory_space<vmem>>, vector<1x16x16xf32>
    %261 = vector.shape_cast %260 : vector<1x16x16xf32> to vector<16x16xf32>
    %c23 = arith.constant 23 : index
    %262 = memref.load %arg4[%c23] : memref<72xf32, #tpu.memory_space<smem>>
    %263 = vector.broadcast %262 : f32 to vector<16x16xf32>
    %264 = arith.mulf %263, %261 : vector<16x16xf32>
    %265 = arith.addf %255, %264 : vector<16x16xf32>
    %c59 = arith.constant 59 : index
    %266 = memref.load %arg4[%c59] : memref<72xf32, #tpu.memory_space<smem>>
    %267 = vector.broadcast %266 : f32 to vector<16x16xf32>
    %268 = arith.mulf %267, %261 : vector<16x16xf32>
    %269 = arith.addf %259, %268 : vector<16x16xf32>
    %c2_113 = arith.constant 2 : index
    %c2_114 = arith.constant 2 : index
    %c0_115 = arith.constant 0 : index
    %270 = vector.load %arg11[%c2_113, %c2_114, %c0_115] : memref<4x18x18xf32, #tpu.memory_space<vmem>>, vector<1x16x16xf32>
    %271 = vector.shape_cast %270 : vector<1x16x16xf32> to vector<16x16xf32>
    %c24 = arith.constant 24 : index
    %272 = memref.load %arg4[%c24] : memref<72xf32, #tpu.memory_space<smem>>
    %273 = vector.broadcast %272 : f32 to vector<16x16xf32>
    %274 = arith.mulf %273, %271 : vector<16x16xf32>
    %275 = arith.addf %265, %274 : vector<16x16xf32>
    %c60 = arith.constant 60 : index
    %276 = memref.load %arg4[%c60] : memref<72xf32, #tpu.memory_space<smem>>
    %277 = vector.broadcast %276 : f32 to vector<16x16xf32>
    %278 = arith.mulf %277, %271 : vector<16x16xf32>
    %279 = arith.addf %269, %278 : vector<16x16xf32>
    %c2_116 = arith.constant 2 : index
    %c2_117 = arith.constant 2 : index
    %c1_118 = arith.constant 1 : index
    %280 = vector.load %arg11[%c2_116, %c2_117, %c1_118] : memref<4x18x18xf32, #tpu.memory_space<vmem>>, vector<1x16x16xf32>
    %281 = vector.shape_cast %280 : vector<1x16x16xf32> to vector<16x16xf32>
    %c25 = arith.constant 25 : index
    %282 = memref.load %arg4[%c25] : memref<72xf32, #tpu.memory_space<smem>>
    %283 = vector.broadcast %282 : f32 to vector<16x16xf32>
    %284 = arith.mulf %283, %281 : vector<16x16xf32>
    %285 = arith.addf %275, %284 : vector<16x16xf32>
    %c61 = arith.constant 61 : index
    %286 = memref.load %arg4[%c61] : memref<72xf32, #tpu.memory_space<smem>>
    %287 = vector.broadcast %286 : f32 to vector<16x16xf32>
    %288 = arith.mulf %287, %281 : vector<16x16xf32>
    %289 = arith.addf %279, %288 : vector<16x16xf32>
    %c2_119 = arith.constant 2 : index
    %c2_120 = arith.constant 2 : index
    %c2_121 = arith.constant 2 : index
    %290 = vector.load %arg11[%c2_119, %c2_120, %c2_121] : memref<4x18x18xf32, #tpu.memory_space<vmem>>, vector<1x16x16xf32>
    %291 = vector.shape_cast %290 : vector<1x16x16xf32> to vector<16x16xf32>
    %c26 = arith.constant 26 : index
    %292 = memref.load %arg4[%c26] : memref<72xf32, #tpu.memory_space<smem>>
    %293 = vector.broadcast %292 : f32 to vector<16x16xf32>
    %294 = arith.mulf %293, %291 : vector<16x16xf32>
    %295 = arith.addf %285, %294 : vector<16x16xf32>
    %c62 = arith.constant 62 : index
    %296 = memref.load %arg4[%c62] : memref<72xf32, #tpu.memory_space<smem>>
    %297 = vector.broadcast %296 : f32 to vector<16x16xf32>
    %298 = arith.mulf %297, %291 : vector<16x16xf32>
    %299 = arith.addf %289, %298 : vector<16x16xf32>
    %c3_122 = arith.constant 3 : index
    %c0_123 = arith.constant 0 : index
    %c0_124 = arith.constant 0 : index
    %300 = vector.load %arg11[%c3_122, %c0_123, %c0_124] : memref<4x18x18xf32, #tpu.memory_space<vmem>>, vector<1x16x16xf32>
    %301 = vector.shape_cast %300 : vector<1x16x16xf32> to vector<16x16xf32>
    %c27 = arith.constant 27 : index
    %302 = memref.load %arg4[%c27] : memref<72xf32, #tpu.memory_space<smem>>
    %303 = vector.broadcast %302 : f32 to vector<16x16xf32>
    %304 = arith.mulf %303, %301 : vector<16x16xf32>
    %305 = arith.addf %295, %304 : vector<16x16xf32>
    %c63 = arith.constant 63 : index
    %306 = memref.load %arg4[%c63] : memref<72xf32, #tpu.memory_space<smem>>
    %307 = vector.broadcast %306 : f32 to vector<16x16xf32>
    %308 = arith.mulf %307, %301 : vector<16x16xf32>
    %309 = arith.addf %299, %308 : vector<16x16xf32>
    %c3_125 = arith.constant 3 : index
    %c0_126 = arith.constant 0 : index
    %c1_127 = arith.constant 1 : index
    %310 = vector.load %arg11[%c3_125, %c0_126, %c1_127] : memref<4x18x18xf32, #tpu.memory_space<vmem>>, vector<1x16x16xf32>
    %311 = vector.shape_cast %310 : vector<1x16x16xf32> to vector<16x16xf32>
    %c28 = arith.constant 28 : index
    %312 = memref.load %arg4[%c28] : memref<72xf32, #tpu.memory_space<smem>>
    %313 = vector.broadcast %312 : f32 to vector<16x16xf32>
    %314 = arith.mulf %313, %311 : vector<16x16xf32>
    %315 = arith.addf %305, %314 : vector<16x16xf32>
    %c64 = arith.constant 64 : index
    %316 = memref.load %arg4[%c64] : memref<72xf32, #tpu.memory_space<smem>>
    %317 = vector.broadcast %316 : f32 to vector<16x16xf32>
    %318 = arith.mulf %317, %311 : vector<16x16xf32>
    %319 = arith.addf %309, %318 : vector<16x16xf32>
    %c3_128 = arith.constant 3 : index
    %c0_129 = arith.constant 0 : index
    %c2_130 = arith.constant 2 : index
    %320 = vector.load %arg11[%c3_128, %c0_129, %c2_130] : memref<4x18x18xf32, #tpu.memory_space<vmem>>, vector<1x16x16xf32>
    %321 = vector.shape_cast %320 : vector<1x16x16xf32> to vector<16x16xf32>
    %c29 = arith.constant 29 : index
    %322 = memref.load %arg4[%c29] : memref<72xf32, #tpu.memory_space<smem>>
    %323 = vector.broadcast %322 : f32 to vector<16x16xf32>
    %324 = arith.mulf %323, %321 : vector<16x16xf32>
    %325 = arith.addf %315, %324 : vector<16x16xf32>
    %c65 = arith.constant 65 : index
    %326 = memref.load %arg4[%c65] : memref<72xf32, #tpu.memory_space<smem>>
    %327 = vector.broadcast %326 : f32 to vector<16x16xf32>
    %328 = arith.mulf %327, %321 : vector<16x16xf32>
    %329 = arith.addf %319, %328 : vector<16x16xf32>
    %c3_131 = arith.constant 3 : index
    %c1_132 = arith.constant 1 : index
    %c0_133 = arith.constant 0 : index
    %330 = vector.load %arg11[%c3_131, %c1_132, %c0_133] : memref<4x18x18xf32, #tpu.memory_space<vmem>>, vector<1x16x16xf32>
    %331 = vector.shape_cast %330 : vector<1x16x16xf32> to vector<16x16xf32>
    %c30 = arith.constant 30 : index
    %332 = memref.load %arg4[%c30] : memref<72xf32, #tpu.memory_space<smem>>
    %333 = vector.broadcast %332 : f32 to vector<16x16xf32>
    %334 = arith.mulf %333, %331 : vector<16x16xf32>
    %335 = arith.addf %325, %334 : vector<16x16xf32>
    %c66 = arith.constant 66 : index
    %336 = memref.load %arg4[%c66] : memref<72xf32, #tpu.memory_space<smem>>
    %337 = vector.broadcast %336 : f32 to vector<16x16xf32>
    %338 = arith.mulf %337, %331 : vector<16x16xf32>
    %339 = arith.addf %329, %338 : vector<16x16xf32>
    %c3_134 = arith.constant 3 : index
    %c1_135 = arith.constant 1 : index
    %c1_136 = arith.constant 1 : index
    %340 = vector.load %arg11[%c3_134, %c1_135, %c1_136] : memref<4x18x18xf32, #tpu.memory_space<vmem>>, vector<1x16x16xf32>
    %341 = vector.shape_cast %340 : vector<1x16x16xf32> to vector<16x16xf32>
    %c31 = arith.constant 31 : index
    %342 = memref.load %arg4[%c31] : memref<72xf32, #tpu.memory_space<smem>>
    %343 = vector.broadcast %342 : f32 to vector<16x16xf32>
    %344 = arith.mulf %343, %341 : vector<16x16xf32>
    %345 = arith.addf %335, %344 : vector<16x16xf32>
    %c67 = arith.constant 67 : index
    %346 = memref.load %arg4[%c67] : memref<72xf32, #tpu.memory_space<smem>>
    %347 = vector.broadcast %346 : f32 to vector<16x16xf32>
    %348 = arith.mulf %347, %341 : vector<16x16xf32>
    %349 = arith.addf %339, %348 : vector<16x16xf32>
    %c3_137 = arith.constant 3 : index
    %c1_138 = arith.constant 1 : index
    %c2_139 = arith.constant 2 : index
    %350 = vector.load %arg11[%c3_137, %c1_138, %c2_139] : memref<4x18x18xf32, #tpu.memory_space<vmem>>, vector<1x16x16xf32>
    %351 = vector.shape_cast %350 : vector<1x16x16xf32> to vector<16x16xf32>
    %c32 = arith.constant 32 : index
    %352 = memref.load %arg4[%c32] : memref<72xf32, #tpu.memory_space<smem>>
    %353 = vector.broadcast %352 : f32 to vector<16x16xf32>
    %354 = arith.mulf %353, %351 : vector<16x16xf32>
    %355 = arith.addf %345, %354 : vector<16x16xf32>
    %c68 = arith.constant 68 : index
    %356 = memref.load %arg4[%c68] : memref<72xf32, #tpu.memory_space<smem>>
    %357 = vector.broadcast %356 : f32 to vector<16x16xf32>
    %358 = arith.mulf %357, %351 : vector<16x16xf32>
    %359 = arith.addf %349, %358 : vector<16x16xf32>
    %c3_140 = arith.constant 3 : index
    %c2_141 = arith.constant 2 : index
    %c0_142 = arith.constant 0 : index
    %360 = vector.load %arg11[%c3_140, %c2_141, %c0_142] : memref<4x18x18xf32, #tpu.memory_space<vmem>>, vector<1x16x16xf32>
    %361 = vector.shape_cast %360 : vector<1x16x16xf32> to vector<16x16xf32>
    %c33 = arith.constant 33 : index
    %362 = memref.load %arg4[%c33] : memref<72xf32, #tpu.memory_space<smem>>
    %363 = vector.broadcast %362 : f32 to vector<16x16xf32>
    %364 = arith.mulf %363, %361 : vector<16x16xf32>
    %365 = arith.addf %355, %364 : vector<16x16xf32>
    %c69 = arith.constant 69 : index
    %366 = memref.load %arg4[%c69] : memref<72xf32, #tpu.memory_space<smem>>
    %367 = vector.broadcast %366 : f32 to vector<16x16xf32>
    %368 = arith.mulf %367, %361 : vector<16x16xf32>
    %369 = arith.addf %359, %368 : vector<16x16xf32>
    %c3_143 = arith.constant 3 : index
    %c2_144 = arith.constant 2 : index
    %c1_145 = arith.constant 1 : index
    %370 = vector.load %arg11[%c3_143, %c2_144, %c1_145] : memref<4x18x18xf32, #tpu.memory_space<vmem>>, vector<1x16x16xf32>
    %371 = vector.shape_cast %370 : vector<1x16x16xf32> to vector<16x16xf32>
    %c34 = arith.constant 34 : index
    %372 = memref.load %arg4[%c34] : memref<72xf32, #tpu.memory_space<smem>>
    %373 = vector.broadcast %372 : f32 to vector<16x16xf32>
    %374 = arith.mulf %373, %371 : vector<16x16xf32>
    %375 = arith.addf %365, %374 : vector<16x16xf32>
    %c70 = arith.constant 70 : index
    %376 = memref.load %arg4[%c70] : memref<72xf32, #tpu.memory_space<smem>>
    %377 = vector.broadcast %376 : f32 to vector<16x16xf32>
    %378 = arith.mulf %377, %371 : vector<16x16xf32>
    %379 = arith.addf %369, %378 : vector<16x16xf32>
    %c3_146 = arith.constant 3 : index
    %c2_147 = arith.constant 2 : index
    %c2_148 = arith.constant 2 : index
    %380 = vector.load %arg11[%c3_146, %c2_147, %c2_148] : memref<4x18x18xf32, #tpu.memory_space<vmem>>, vector<1x16x16xf32>
    %381 = vector.shape_cast %380 : vector<1x16x16xf32> to vector<16x16xf32>
    %c35 = arith.constant 35 : index
    %382 = memref.load %arg4[%c35] : memref<72xf32, #tpu.memory_space<smem>>
    %383 = vector.broadcast %382 : f32 to vector<16x16xf32>
    %384 = arith.mulf %383, %381 : vector<16x16xf32>
    %385 = arith.addf %375, %384 : vector<16x16xf32>
    %c71 = arith.constant 71 : index
    %386 = memref.load %arg4[%c71] : memref<72xf32, #tpu.memory_space<smem>>
    %387 = vector.broadcast %386 : f32 to vector<16x16xf32>
    %388 = arith.mulf %387, %381 : vector<16x16xf32>
    %389 = arith.addf %379, %388 : vector<16x16xf32>
    %cst_149 = arith.constant 0.000000e+00 : f32
    %390 = vector.broadcast %cst_149 : f32 to vector<16x16xf32>
    %391 = arith.cmpf ogt, %385, %390 : vector<16x16xf32>
    %cst_150 = arith.constant 2.000000e-01 : f32
    %392 = vector.broadcast %cst_150 : f32 to vector<16x16xf32>
    %393 = arith.mulf %392, %385 : vector<16x16xf32>
    %394 = arith.select %391, %385, %393 : vector<16x16xi1>, vector<16x16xf32>
    %c0_151 = arith.constant 0 : index
    %c1_152 = arith.constant 1 : index
    %c1_153 = arith.constant 1 : index
    %395 = vector.load %arg12[%c0_151, %c1_152, %c1_153] : memref<2x18x18xf32, #tpu.memory_space<vmem>>, vector<1x16x16xf32>
    %396 = vector.shape_cast %395 : vector<1x16x16xf32> to vector<16x16xf32>
    %397 = vector.shape_cast %394 : vector<16x16xf32> to vector<1x16x16xf32>
    tpu.vector_store %arg12[%c0_151, %c1_152, %c1_153], %397 {strides = array<i32>} : memref<2x18x18xf32, #tpu.memory_space<vmem>>, vector<1x16x16xf32>,
    %cst_154 = arith.constant 0.000000e+00 : f32
    %398 = vector.broadcast %cst_154 : f32 to vector<16x16xf32>
    %399 = arith.cmpf ogt, %389, %398 : vector<16x16xf32>
    %cst_155 = arith.constant 2.000000e-01 : f32
    %400 = vector.broadcast %cst_155 : f32 to vector<16x16xf32>
    %401 = arith.mulf %400, %389 : vector<16x16xf32>
    %402 = arith.select %399, %389, %401 : vector<16x16xi1>, vector<16x16xf32>
    %c1_156 = arith.constant 1 : index
    %c1_157 = arith.constant 1 : index
    %c1_158 = arith.constant 1 : index
    %403 = vector.load %arg12[%c1_156, %c1_157, %c1_158] : memref<2x18x18xf32, #tpu.memory_space<vmem>>, vector<1x16x16xf32>
    %404 = vector.shape_cast %403 : vector<1x16x16xf32> to vector<16x16xf32>
    %405 = vector.shape_cast %402 : vector<16x16xf32> to vector<1x16x16xf32>
    tpu.vector_store %arg12[%c1_156, %c1_157, %c1_158], %405 {strides = array<i32>} : memref<2x18x18xf32, #tpu.memory_space<vmem>>, vector<1x16x16xf32>,
    %c0_159 = arith.constant 0 : index
    %406 = memref.load %arg7[%c0_159] : memref<1xf32, #tpu.memory_space<smem>>
    %407 = vector.broadcast %406 : f32 to vector<16x16xf32>
    %c0_160 = arith.constant 0 : index
    %c0_161 = arith.constant 0 : index
    %c0_162 = arith.constant 0 : index
    %408 = vector.load %arg12[%c0_160, %c0_161, %c0_162] : memref<2x18x18xf32, #tpu.memory_space<vmem>>, vector<1x16x16xf32>
    %409 = vector.shape_cast %408 : vector<1x16x16xf32> to vector<16x16xf32>
    %c0_163 = arith.constant 0 : index
    %410 = memref.load %arg6[%c0_163] : memref<18xf32, #tpu.memory_space<smem>>
    %411 = vector.broadcast %410 : f32 to vector<16x16xf32>
    %412 = arith.mulf %411, %409 : vector<16x16xf32>
    %413 = arith.addf %407, %412 : vector<16x16xf32>
    %c0_164 = arith.constant 0 : index
    %c0_165 = arith.constant 0 : index
    %c1_166 = arith.constant 1 : index
    %414 = vector.load %arg12[%c0_164, %c0_165, %c1_166] : memref<2x18x18xf32, #tpu.memory_space<vmem>>, vector<1x16x16xf32>
    %415 = vector.shape_cast %414 : vector<1x16x16xf32> to vector<16x16xf32>
    %c1_167 = arith.constant 1 : index
    %416 = memref.load %arg6[%c1_167] : memref<18xf32, #tpu.memory_space<smem>>
    %417 = vector.broadcast %416 : f32 to vector<16x16xf32>
    %418 = arith.mulf %417, %415 : vector<16x16xf32>
    %419 = arith.addf %413, %418 : vector<16x16xf32>
    %c0_168 = arith.constant 0 : index
    %c0_169 = arith.constant 0 : index
    %c2_170 = arith.constant 2 : index
    %420 = vector.load %arg12[%c0_168, %c0_169, %c2_170] : memref<2x18x18xf32, #tpu.memory_space<vmem>>, vector<1x16x16xf32>
    %421 = vector.shape_cast %420 : vector<1x16x16xf32> to vector<16x16xf32>
    %c2_171 = arith.constant 2 : index
    %422 = memref.load %arg6[%c2_171] : memref<18xf32, #tpu.memory_space<smem>>
    %423 = vector.broadcast %422 : f32 to vector<16x16xf32>
    %424 = arith.mulf %423, %421 : vector<16x16xf32>
    %425 = arith.addf %419, %424 : vector<16x16xf32>
    %c0_172 = arith.constant 0 : index
    %c1_173 = arith.constant 1 : index
    %c0_174 = arith.constant 0 : index
    %426 = vector.load %arg12[%c0_172, %c1_173, %c0_174] : memref<2x18x18xf32, #tpu.memory_space<vmem>>, vector<1x16x16xf32>
    %427 = vector.shape_cast %426 : vector<1x16x16xf32> to vector<16x16xf32>
    %c3_175 = arith.constant 3 : index
    %428 = memref.load %arg6[%c3_175] : memref<18xf32, #tpu.memory_space<smem>>
    %429 = vector.broadcast %428 : f32 to vector<16x16xf32>
    %430 = arith.mulf %429, %427 : vector<16x16xf32>
    %431 = arith.addf %425, %430 : vector<16x16xf32>
    %c0_176 = arith.constant 0 : index
    %c1_177 = arith.constant 1 : index
    %c1_178 = arith.constant 1 : index
    %432 = vector.load %arg12[%c0_176, %c1_177, %c1_178] : memref<2x18x18xf32, #tpu.memory_space<vmem>>, vector<1x16x16xf32>
    %433 = vector.shape_cast %432 : vector<1x16x16xf32> to vector<16x16xf32>
    %c4_179 = arith.constant 4 : index
    %434 = memref.load %arg6[%c4_179] : memref<18xf32, #tpu.memory_space<smem>>
    %435 = vector.broadcast %434 : f32 to vector<16x16xf32>
    %436 = arith.mulf %435, %433 : vector<16x16xf32>
    %437 = arith.addf %431, %436 : vector<16x16xf32>
    %c0_180 = arith.constant 0 : index
    %c1_181 = arith.constant 1 : index
    %c2_182 = arith.constant 2 : index
    %438 = vector.load %arg12[%c0_180, %c1_181, %c2_182] : memref<2x18x18xf32, #tpu.memory_space<vmem>>, vector<1x16x16xf32>
    %439 = vector.shape_cast %438 : vector<1x16x16xf32> to vector<16x16xf32>
    %c5_183 = arith.constant 5 : index
    %440 = memref.load %arg6[%c5_183] : memref<18xf32, #tpu.memory_space<smem>>
    %441 = vector.broadcast %440 : f32 to vector<16x16xf32>
    %442 = arith.mulf %441, %439 : vector<16x16xf32>
    %443 = arith.addf %437, %442 : vector<16x16xf32>
    %c0_184 = arith.constant 0 : index
    %c2_185 = arith.constant 2 : index
    %c0_186 = arith.constant 0 : index
    %444 = vector.load %arg12[%c0_184, %c2_185, %c0_186] : memref<2x18x18xf32, #tpu.memory_space<vmem>>, vector<1x16x16xf32>
    %445 = vector.shape_cast %444 : vector<1x16x16xf32> to vector<16x16xf32>
    %c6_187 = arith.constant 6 : index
    %446 = memref.load %arg6[%c6_187] : memref<18xf32, #tpu.memory_space<smem>>
    %447 = vector.broadcast %446 : f32 to vector<16x16xf32>
    %448 = arith.mulf %447, %445 : vector<16x16xf32>
    %449 = arith.addf %443, %448 : vector<16x16xf32>
    %c0_188 = arith.constant 0 : index
    %c2_189 = arith.constant 2 : index
    %c1_190 = arith.constant 1 : index
    %450 = vector.load %arg12[%c0_188, %c2_189, %c1_190] : memref<2x18x18xf32, #tpu.memory_space<vmem>>, vector<1x16x16xf32>
    %451 = vector.shape_cast %450 : vector<1x16x16xf32> to vector<16x16xf32>
    %c7_191 = arith.constant 7 : index
    %452 = memref.load %arg6[%c7_191] : memref<18xf32, #tpu.memory_space<smem>>
    %453 = vector.broadcast %452 : f32 to vector<16x16xf32>
    %454 = arith.mulf %453, %451 : vector<16x16xf32>
    %455 = arith.addf %449, %454 : vector<16x16xf32>
    %c0_192 = arith.constant 0 : index
    %c2_193 = arith.constant 2 : index
    %c2_194 = arith.constant 2 : index
    %456 = vector.load %arg12[%c0_192, %c2_193, %c2_194] : memref<2x18x18xf32, #tpu.memory_space<vmem>>, vector<1x16x16xf32>
    %457 = vector.shape_cast %456 : vector<1x16x16xf32> to vector<16x16xf32>
    %c8_195 = arith.constant 8 : index
    %458 = memref.load %arg6[%c8_195] : memref<18xf32, #tpu.memory_space<smem>>
    %459 = vector.broadcast %458 : f32 to vector<16x16xf32>
    %460 = arith.mulf %459, %457 : vector<16x16xf32>
    %461 = arith.addf %455, %460 : vector<16x16xf32>
    %c1_196 = arith.constant 1 : index
    %c0_197 = arith.constant 0 : index
    %c0_198 = arith.constant 0 : index
    %462 = vector.load %arg12[%c1_196, %c0_197, %c0_198] : memref<2x18x18xf32, #tpu.memory_space<vmem>>, vector<1x16x16xf32>
    %463 = vector.shape_cast %462 : vector<1x16x16xf32> to vector<16x16xf32>
    %c9_199 = arith.constant 9 : index
    %464 = memref.load %arg6[%c9_199] : memref<18xf32, #tpu.memory_space<smem>>
    %465 = vector.broadcast %464 : f32 to vector<16x16xf32>
    %466 = arith.mulf %465, %463 : vector<16x16xf32>
    %467 = arith.addf %461, %466 : vector<16x16xf32>
    %c1_200 = arith.constant 1 : index
    %c0_201 = arith.constant 0 : index
    %c1_202 = arith.constant 1 : index
    %468 = vector.load %arg12[%c1_200, %c0_201, %c1_202] : memref<2x18x18xf32, #tpu.memory_space<vmem>>, vector<1x16x16xf32>
    %469 = vector.shape_cast %468 : vector<1x16x16xf32> to vector<16x16xf32>
    %c10_203 = arith.constant 10 : index
    %470 = memref.load %arg6[%c10_203] : memref<18xf32, #tpu.memory_space<smem>>
    %471 = vector.broadcast %470 : f32 to vector<16x16xf32>
    %472 = arith.mulf %471, %469 : vector<16x16xf32>
    %473 = arith.addf %467, %472 : vector<16x16xf32>
    %c1_204 = arith.constant 1 : index
    %c0_205 = arith.constant 0 : index
    %c2_206 = arith.constant 2 : index
    %474 = vector.load %arg12[%c1_204, %c0_205, %c2_206] : memref<2x18x18xf32, #tpu.memory_space<vmem>>, vector<1x16x16xf32>
    %475 = vector.shape_cast %474 : vector<1x16x16xf32> to vector<16x16xf32>
    %c11_207 = arith.constant 11 : index
    %476 = memref.load %arg6[%c11_207] : memref<18xf32, #tpu.memory_space<smem>>
    %477 = vector.broadcast %476 : f32 to vector<16x16xf32>
    %478 = arith.mulf %477, %475 : vector<16x16xf32>
    %479 = arith.addf %473, %478 : vector<16x16xf32>
    %c1_208 = arith.constant 1 : index
    %c1_209 = arith.constant 1 : index
    %c0_210 = arith.constant 0 : index
    %480 = vector.load %arg12[%c1_208, %c1_209, %c0_210] : memref<2x18x18xf32, #tpu.memory_space<vmem>>, vector<1x16x16xf32>
    %481 = vector.shape_cast %480 : vector<1x16x16xf32> to vector<16x16xf32>
    %c12_211 = arith.constant 12 : index
    %482 = memref.load %arg6[%c12_211] : memref<18xf32, #tpu.memory_space<smem>>
    %483 = vector.broadcast %482 : f32 to vector<16x16xf32>
    %484 = arith.mulf %483, %481 : vector<16x16xf32>
    %485 = arith.addf %479, %484 : vector<16x16xf32>
    %c1_212 = arith.constant 1 : index
    %c1_213 = arith.constant 1 : index
    %c1_214 = arith.constant 1 : index
    %486 = vector.load %arg12[%c1_212, %c1_213, %c1_214] : memref<2x18x18xf32, #tpu.memory_space<vmem>>, vector<1x16x16xf32>
    %487 = vector.shape_cast %486 : vector<1x16x16xf32> to vector<16x16xf32>
    %c13_215 = arith.constant 13 : index
    %488 = memref.load %arg6[%c13_215] : memref<18xf32, #tpu.memory_space<smem>>
    %489 = vector.broadcast %488 : f32 to vector<16x16xf32>
    %490 = arith.mulf %489, %487 : vector<16x16xf32>
    %491 = arith.addf %485, %490 : vector<16x16xf32>
    %c1_216 = arith.constant 1 : index
    %c1_217 = arith.constant 1 : index
    %c2_218 = arith.constant 2 : index
    %492 = vector.load %arg12[%c1_216, %c1_217, %c2_218] : memref<2x18x18xf32, #tpu.memory_space<vmem>>, vector<1x16x16xf32>
    %493 = vector.shape_cast %492 : vector<1x16x16xf32> to vector<16x16xf32>
    %c14_219 = arith.constant 14 : index
    %494 = memref.load %arg6[%c14_219] : memref<18xf32, #tpu.memory_space<smem>>
    %495 = vector.broadcast %494 : f32 to vector<16x16xf32>
    %496 = arith.mulf %495, %493 : vector<16x16xf32>
    %497 = arith.addf %491, %496 : vector<16x16xf32>
    %c1_220 = arith.constant 1 : index
    %c2_221 = arith.constant 2 : index
    %c0_222 = arith.constant 0 : index
    %498 = vector.load %arg12[%c1_220, %c2_221, %c0_222] : memref<2x18x18xf32, #tpu.memory_space<vmem>>, vector<1x16x16xf32>
    %499 = vector.shape_cast %498 : vector<1x16x16xf32> to vector<16x16xf32>
    %c15_223 = arith.constant 15 : index
    %500 = memref.load %arg6[%c15_223] : memref<18xf32, #tpu.memory_space<smem>>
    %501 = vector.broadcast %500 : f32 to vector<16x16xf32>
    %502 = arith.mulf %501, %499 : vector<16x16xf32>
    %503 = arith.addf %497, %502 : vector<16x16xf32>
    %c1_224 = arith.constant 1 : index
    %c2_225 = arith.constant 2 : index
    %c1_226 = arith.constant 1 : index
    %504 = vector.load %arg12[%c1_224, %c2_225, %c1_226] : memref<2x18x18xf32, #tpu.memory_space<vmem>>, vector<1x16x16xf32>
    %505 = vector.shape_cast %504 : vector<1x16x16xf32> to vector<16x16xf32>
    %c16_227 = arith.constant 16 : index
    %506 = memref.load %arg6[%c16_227] : memref<18xf32, #tpu.memory_space<smem>>
    %507 = vector.broadcast %506 : f32 to vector<16x16xf32>
    %508 = arith.mulf %507, %505 : vector<16x16xf32>
    %509 = arith.addf %503, %508 : vector<16x16xf32>
    %c1_228 = arith.constant 1 : index
    %c2_229 = arith.constant 2 : index
    %c2_230 = arith.constant 2 : index
    %510 = vector.load %arg12[%c1_228, %c2_229, %c2_230] : memref<2x18x18xf32, #tpu.memory_space<vmem>>, vector<1x16x16xf32>
    %511 = vector.shape_cast %510 : vector<1x16x16xf32> to vector<16x16xf32>
    %c17_231 = arith.constant 17 : index
    %512 = memref.load %arg6[%c17_231] : memref<18xf32, #tpu.memory_space<smem>>
    %513 = vector.broadcast %512 : f32 to vector<16x16xf32>
    %514 = arith.mulf %513, %511 : vector<16x16xf32>
    %515 = arith.addf %509, %514 : vector<16x16xf32>
    %cst_232 = arith.constant 0.000000e+00 : f32
    %516 = vector.broadcast %cst_232 : f32 to vector<16x16xf32>
    %517 = arith.cmpf ogt, %515, %516 : vector<16x16xf32>
    %cst_233 = arith.constant 2.000000e-01 : f32
    %518 = vector.broadcast %cst_233 : f32 to vector<16x16xf32>
    %519 = arith.mulf %518, %515 : vector<16x16xf32>
    %520 = arith.select %517, %515, %519 : vector<16x16xi1>, vector<16x16xf32>
    %c0_234 = arith.constant 0 : index
    %c1_235 = arith.constant 1 : index
    %c1_236 = arith.constant 1 : index
    %521 = vector.load %arg13[%c0_234, %c1_235, %c1_236] : memref<1x18x18xf32, #tpu.memory_space<vmem>>, vector<1x16x16xf32>
    %522 = vector.shape_cast %521 : vector<1x16x16xf32> to vector<16x16xf32>
    %523 = vector.shape_cast %520 : vector<16x16xf32> to vector<1x16x16xf32>
    tpu.vector_store %arg13[%c0_234, %c1_235, %c1_236], %523 {strides = array<i32>} : memref<1x18x18xf32, #tpu.memory_space<vmem>>, vector<1x16x16xf32>,
    %c0_237 = arith.constant 0 : index
    %524 = memref.load %arg9[%c0_237] : memref<1xf32, #tpu.memory_space<smem>>
    %525 = vector.broadcast %524 : f32 to vector<16x16xf32>
    %c0_238 = arith.constant 0 : index
    %526 = memref.load %arg8[%c0_238] : memref<9xf32, #tpu.memory_space<smem>>
    %c0_239 = arith.constant 0 : index
    %c0_240 = arith.constant 0 : index
    %c0_241 = arith.constant 0 : index
    %527 = vector.load %arg13[%c0_239, %c0_240, %c0_241] : memref<1x18x18xf32, #tpu.memory_space<vmem>>, vector<1x16x16xf32>
    %528 = vector.shape_cast %527 : vector<1x16x16xf32> to vector<16x16xf32>
    %529 = vector.broadcast %526 : f32 to vector<16x16xf32>
    %530 = arith.mulf %529, %528 : vector<16x16xf32>
    %531 = arith.addf %525, %530 : vector<16x16xf32>
    %c1_242 = arith.constant 1 : index
    %532 = memref.load %arg8[%c1_242] : memref<9xf32, #tpu.memory_space<smem>>
    %c0_243 = arith.constant 0 : index
    %c0_244 = arith.constant 0 : index
    %c1_245 = arith.constant 1 : index
    %533 = vector.load %arg13[%c0_243, %c0_244, %c1_245] : memref<1x18x18xf32, #tpu.memory_space<vmem>>, vector<1x16x16xf32>
    %534 = vector.shape_cast %533 : vector<1x16x16xf32> to vector<16x16xf32>
    %535 = vector.broadcast %532 : f32 to vector<16x16xf32>
    %536 = arith.mulf %535, %534 : vector<16x16xf32>
    %537 = arith.addf %531, %536 : vector<16x16xf32>
    %c2_246 = arith.constant 2 : index
    %538 = memref.load %arg8[%c2_246] : memref<9xf32, #tpu.memory_space<smem>>
    %c0_247 = arith.constant 0 : index
    %c0_248 = arith.constant 0 : index
    %c2_249 = arith.constant 2 : index
    %539 = vector.load %arg13[%c0_247, %c0_248, %c2_249] : memref<1x18x18xf32, #tpu.memory_space<vmem>>, vector<1x16x16xf32>
    %540 = vector.shape_cast %539 : vector<1x16x16xf32> to vector<16x16xf32>
    %541 = vector.broadcast %538 : f32 to vector<16x16xf32>
    %542 = arith.mulf %541, %540 : vector<16x16xf32>
    %543 = arith.addf %537, %542 : vector<16x16xf32>
    %c3_250 = arith.constant 3 : index
    %544 = memref.load %arg8[%c3_250] : memref<9xf32, #tpu.memory_space<smem>>
    %c0_251 = arith.constant 0 : index
    %c1_252 = arith.constant 1 : index
    %c0_253 = arith.constant 0 : index
    %545 = vector.load %arg13[%c0_251, %c1_252, %c0_253] : memref<1x18x18xf32, #tpu.memory_space<vmem>>, vector<1x16x16xf32>
    %546 = vector.shape_cast %545 : vector<1x16x16xf32> to vector<16x16xf32>
    %547 = vector.broadcast %544 : f32 to vector<16x16xf32>
    %548 = arith.mulf %547, %546 : vector<16x16xf32>
    %549 = arith.addf %543, %548 : vector<16x16xf32>
    %c4_254 = arith.constant 4 : index
    %550 = memref.load %arg8[%c4_254] : memref<9xf32, #tpu.memory_space<smem>>
    %c0_255 = arith.constant 0 : index
    %c1_256 = arith.constant 1 : index
    %c1_257 = arith.constant 1 : index
    %551 = vector.load %arg13[%c0_255, %c1_256, %c1_257] : memref<1x18x18xf32, #tpu.memory_space<vmem>>, vector<1x16x16xf32>
    %552 = vector.shape_cast %551 : vector<1x16x16xf32> to vector<16x16xf32>
    %553 = vector.broadcast %550 : f32 to vector<16x16xf32>
    %554 = arith.mulf %553, %552 : vector<16x16xf32>
    %555 = arith.addf %549, %554 : vector<16x16xf32>
    %c5_258 = arith.constant 5 : index
    %556 = memref.load %arg8[%c5_258] : memref<9xf32, #tpu.memory_space<smem>>
    %c0_259 = arith.constant 0 : index
    %c1_260 = arith.constant 1 : index
    %c2_261 = arith.constant 2 : index
    %557 = vector.load %arg13[%c0_259, %c1_260, %c2_261] : memref<1x18x18xf32, #tpu.memory_space<vmem>>, vector<1x16x16xf32>
    %558 = vector.shape_cast %557 : vector<1x16x16xf32> to vector<16x16xf32>
    %559 = vector.broadcast %556 : f32 to vector<16x16xf32>
    %560 = arith.mulf %559, %558 : vector<16x16xf32>
    %561 = arith.addf %555, %560 : vector<16x16xf32>
    %c6_262 = arith.constant 6 : index
    %562 = memref.load %arg8[%c6_262] : memref<9xf32, #tpu.memory_space<smem>>
    %c0_263 = arith.constant 0 : index
    %c2_264 = arith.constant 2 : index
    %c0_265 = arith.constant 0 : index
    %563 = vector.load %arg13[%c0_263, %c2_264, %c0_265] : memref<1x18x18xf32, #tpu.memory_space<vmem>>, vector<1x16x16xf32>
    %564 = vector.shape_cast %563 : vector<1x16x16xf32> to vector<16x16xf32>
    %565 = vector.broadcast %562 : f32 to vector<16x16xf32>
    %566 = arith.mulf %565, %564 : vector<16x16xf32>
    %567 = arith.addf %561, %566 : vector<16x16xf32>
    %c7_266 = arith.constant 7 : index
    %568 = memref.load %arg8[%c7_266] : memref<9xf32, #tpu.memory_space<smem>>
    %c0_267 = arith.constant 0 : index
    %c2_268 = arith.constant 2 : index
    %c1_269 = arith.constant 1 : index
    %569 = vector.load %arg13[%c0_267, %c2_268, %c1_269] : memref<1x18x18xf32, #tpu.memory_space<vmem>>, vector<1x16x16xf32>
    %570 = vector.shape_cast %569 : vector<1x16x16xf32> to vector<16x16xf32>
    %571 = vector.broadcast %568 : f32 to vector<16x16xf32>
    %572 = arith.mulf %571, %570 : vector<16x16xf32>
    %573 = arith.addf %567, %572 : vector<16x16xf32>
    %c8_270 = arith.constant 8 : index
    %574 = memref.load %arg8[%c8_270] : memref<9xf32, #tpu.memory_space<smem>>
    %c0_271 = arith.constant 0 : index
    %c2_272 = arith.constant 2 : index
    %c2_273 = arith.constant 2 : index
    %575 = vector.load %arg13[%c0_271, %c2_272, %c2_273] : memref<1x18x18xf32, #tpu.memory_space<vmem>>, vector<1x16x16xf32>
    %576 = vector.shape_cast %575 : vector<1x16x16xf32> to vector<16x16xf32>
    %577 = vector.broadcast %574 : f32 to vector<16x16xf32>
    %578 = arith.mulf %577, %576 : vector<16x16xf32>
    %579 = arith.addf %573, %578 : vector<16x16xf32>
    %580 = arith.negf %579 : vector<16x16xf32>
    %581 = math.exp %580 : vector<16x16xf32>
    %cst_274 = arith.constant 1.000000e+00 : f32
    %582 = vector.broadcast %cst_274 : f32 to vector<16x16xf32>
    %583 = arith.addf %582, %581 : vector<16x16xf32>
    %584 = arith.divf %582, %583 : vector<16x16xf32>
    %c0_275 = arith.constant 0 : index
    %c0_276 = arith.constant 0 : index
    %c0_277 = arith.constant 0 : index
    %c0_278 = arith.constant 0 : index
    %585 = vector.load %arg3[%c0_275, %c0_276, %c0_277, %c0_278] : memref<1x4x16x16xf32, #tpu.memory_space<vmem>>, vector<1x1x16x16xf32>
    %586 = vector.shape_cast %585 : vector<1x1x16x16xf32> to vector<16x16xf32>
    %c0_279 = arith.constant 0 : index
    %c0_280 = arith.constant 0 : index
    %c0_281 = arith.constant 0 : index
    %c0_282 = arith.constant 0 : index
    %587 = vector.load %arg2[%c0_279, %c0_280, %c0_281, %c0_282] : memref<1x4x16x16xf32, #tpu.memory_space<vmem>>, vector<1x1x16x16xf32>
    %588 = vector.shape_cast %587 : vector<1x1x16x16xf32> to vector<16x16xf32>
    %589 = arith.subf %588, %586 : vector<16x16xf32>
    %590 = arith.mulf %584, %589 : vector<16x16xf32>
    %591 = arith.addf %586, %590 : vector<16x16xf32>
    %c0_283 = arith.constant 0 : index
    %c0_284 = arith.constant 0 : index
    %c0_285 = arith.constant 0 : index
    %c0_286 = arith.constant 0 : index
    %592 = vector.load %arg10[%c0_283, %c0_284, %c0_285, %c0_286] : memref<1x4x16x16xf32, #tpu.memory_space<vmem>>, vector<1x1x16x16xf32>
    %593 = vector.shape_cast %592 : vector<1x1x16x16xf32> to vector<16x16xf32>
    %594 = vector.shape_cast %591 : vector<16x16xf32> to vector<1x1x16x16xf32>
    tpu.vector_store %arg10[%c0_283, %c0_284, %c0_285, %c0_286], %594 {strides = array<i32>} : memref<1x4x16x16xf32, #tpu.memory_space<vmem>>, vector<1x1x16x16xf32>,
    %c0_287 = arith.constant 0 : index
    %c1_288 = arith.constant 1 : index
    %c0_289 = arith.constant 0 : index
    %c0_290 = arith.constant 0 : index
    %595 = vector.load %arg3[%c0_287, %c1_288, %c0_289, %c0_290] : memref<1x4x16x16xf32, #tpu.memory_space<vmem>>, vector<1x1x16x16xf32>
    %596 = vector.shape_cast %595 : vector<1x1x16x16xf32> to vector<16x16xf32>
    %c0_291 = arith.constant 0 : index
    %c1_292 = arith.constant 1 : index
    %c0_293 = arith.constant 0 : index
    %c0_294 = arith.constant 0 : index
    %597 = vector.load %arg2[%c0_291, %c1_292, %c0_293, %c0_294] : memref<1x4x16x16xf32, #tpu.memory_space<vmem>>, vector<1x1x16x16xf32>
    %598 = vector.shape_cast %597 : vector<1x1x16x16xf32> to vector<16x16xf32>
    %599 = arith.subf %598, %596 : vector<16x16xf32>
    %600 = arith.mulf %584, %599 : vector<16x16xf32>
    %601 = arith.addf %596, %600 : vector<16x16xf32>
    %c0_295 = arith.constant 0 : index
    %c1_296 = arith.constant 1 : index
    %c0_297 = arith.constant 0 : index
    %c0_298 = arith.constant 0 : index
    %602 = vector.load %arg10[%c0_295, %c1_296, %c0_297, %c0_298] : memref<1x4x16x16xf32, #tpu.memory_space<vmem>>, vector<1x1x16x16xf32>
    %603 = vector.shape_cast %602 : vector<1x1x16x16xf32> to vector<16x16xf32>
    %604 = vector.shape_cast %601 : vector<16x16xf32> to vector<1x1x16x16xf32>
    tpu.vector_store %arg10[%c0_295, %c1_296, %c0_297, %c0_298], %604 {strides = array<i32>} : memref<1x4x16x16xf32, #tpu.memory_space<vmem>>, vector<1x1x16x16xf32>,
    %c0_299 = arith.constant 0 : index
    %c2_300 = arith.constant 2 : index
    %c0_301 = arith.constant 0 : index
    %c0_302 = arith.constant 0 : index
    %605 = vector.load %arg3[%c0_299, %c2_300, %c0_301, %c0_302] : memref<1x4x16x16xf32, #tpu.memory_space<vmem>>, vector<1x1x16x16xf32>
    %606 = vector.shape_cast %605 : vector<1x1x16x16xf32> to vector<16x16xf32>
    %c0_303 = arith.constant 0 : index
    %c2_304 = arith.constant 2 : index
    %c0_305 = arith.constant 0 : index
    %c0_306 = arith.constant 0 : index
    %607 = vector.load %arg2[%c0_303, %c2_304, %c0_305, %c0_306] : memref<1x4x16x16xf32, #tpu.memory_space<vmem>>, vector<1x1x16x16xf32>
    %608 = vector.shape_cast %607 : vector<1x1x16x16xf32> to vector<16x16xf32>
    %609 = arith.subf %608, %606 : vector<16x16xf32>
    %610 = arith.mulf %584, %609 : vector<16x16xf32>
    %611 = arith.addf %606, %610 : vector<16x16xf32>
    %c0_307 = arith.constant 0 : index
    %c2_308 = arith.constant 2 : index
    %c0_309 = arith.constant 0 : index
    %c0_310 = arith.constant 0 : index
    %612 = vector.load %arg10[%c0_307, %c2_308, %c0_309, %c0_310] : memref<1x4x16x16xf32, #tpu.memory_space<vmem>>, vector<1x1x16x16xf32>
    %613 = vector.shape_cast %612 : vector<1x1x16x16xf32> to vector<16x16xf32>
    %614 = vector.shape_cast %611 : vector<16x16xf32> to vector<1x1x16x16xf32>
    tpu.vector_store %arg10[%c0_307, %c2_308, %c0_309, %c0_310], %614 {strides = array<i32>} : memref<1x4x16x16xf32, #tpu.memory_space<vmem>>, vector<1x1x16x16xf32>,
    %c0_311 = arith.constant 0 : index
    %c3_312 = arith.constant 3 : index
    %c0_313 = arith.constant 0 : index
    %c0_314 = arith.constant 0 : index
    %615 = vector.load %arg3[%c0_311, %c3_312, %c0_313, %c0_314] : memref<1x4x16x16xf32, #tpu.memory_space<vmem>>, vector<1x1x16x16xf32>
    %616 = vector.shape_cast %615 : vector<1x1x16x16xf32> to vector<16x16xf32>
    %c0_315 = arith.constant 0 : index
    %c3_316 = arith.constant 3 : index
    %c0_317 = arith.constant 0 : index
    %c0_318 = arith.constant 0 : index
    %617 = vector.load %arg2[%c0_315, %c3_316, %c0_317, %c0_318] : memref<1x4x16x16xf32, #tpu.memory_space<vmem>>, vector<1x1x16x16xf32>
    %618 = vector.shape_cast %617 : vector<1x1x16x16xf32> to vector<16x16xf32>
    %619 = arith.subf %618, %616 : vector<16x16xf32>
    %620 = arith.mulf %584, %619 : vector<16x16xf32>
    %621 = arith.addf %616, %620 : vector<16x16xf32>
    %c0_319 = arith.constant 0 : index
    %c3_320 = arith.constant 3 : index
    %c0_321 = arith.constant 0 : index
    %c0_322 = arith.constant 0 : index
    %622 = vector.load %arg10[%c0_319, %c3_320, %c0_321, %c0_322] : memref<1x4x16x16xf32, #tpu.memory_space<vmem>>, vector<1x1x16x16xf32>
    %623 = vector.shape_cast %622 : vector<1x1x16x16xf32> to vector<16x16xf32>
    %624 = vector.shape_cast %621 : vector<16x16xf32> to vector<1x1x16x16xf32>
    tpu.vector_store %arg10[%c0_319, %c3_320, %c0_321, %c0_322], %624 {strides = array<i32>} : memref<1x4x16x16xf32, #tpu.memory_space<vmem>>, vector<1x1x16x16xf32>,
    return
  }
  func.func @transform_0(%arg0: i32) -> (i32, i32, i32, i32) {
    %c0_i32 = arith.constant 0 : i32
    %c0_i32_0 = arith.constant 0 : i32
    %c0_i32_1 = arith.constant 0 : i32
    %c0_i32_2 = arith.constant 0 : i32
    return %arg0, %c0_i32, %c0_i32_0, %c0_i32_1 : i32, i32, i32, i32
  }
  func.func @transform_1(%arg0: i32) -> (i32, i32, i32, i32) {
    %c0_i32 = arith.constant 0 : i32
    %c0_i32_0 = arith.constant 0 : i32
    %c0_i32_1 = arith.constant 0 : i32
    %c0_i32_2 = arith.constant 0 : i32
    return %arg0, %c0_i32, %c0_i32_0, %c0_i32_1 : i32, i32, i32, i32
  }
  func.func @transform_2(%arg0: i32) -> (i32, i32, i32, i32) {
    %c0_i32 = arith.constant 0 : i32
    %c0_i32_0 = arith.constant 0 : i32
    %c0_i32_1 = arith.constant 0 : i32
    %c0_i32_2 = arith.constant 0 : i32
    return %arg0, %c0_i32, %c0_i32_0, %c0_i32_1 : i32, i32, i32, i32
  }
  func.func @transform_3(%arg0: i32) -> i32 {
    %c0_i32 = arith.constant 0 : i32
    %c0_i32_0 = arith.constant 0 : i32
    return %c0_i32 : i32
  }
  func.func @transform_4(%arg0: i32) -> i32 {
    %c0_i32 = arith.constant 0 : i32
    %c0_i32_0 = arith.constant 0 : i32
    return %c0_i32 : i32
  }
  func.func @transform_5(%arg0: i32) -> i32 {
    %c0_i32 = arith.constant 0 : i32
    %c0_i32_0 = arith.constant 0 : i32
    return %c0_i32 : i32
  }
  func.func @transform_6(%arg0: i32) -> i32 {
    %c0_i32 = arith.constant 0 : i32
    %c0_i32_0 = arith.constant 0 : i32
    return %c0_i32 : i32
  }
  func.func @transform_7(%arg0: i32) -> i32 {
    %c0_i32 = arith.constant 0 : i32
    %c0_i32_0 = arith.constant 0 : i32
    return %c0_i32 : i32
  }
  func.func @transform_8(%arg0: i32) -> i32 {
    %c0_i32 = arith.constant 0 : i32
    %c0_i32_0 = arith.constant 0 : i32
    return %c0_i32 : i32
  }
  func.func @transform_9(%arg0: i32) -> (i32, i32, i32, i32) {
    %c0_i32 = arith.constant 0 : i32
    %c0_i32_0 = arith.constant 0 : i32
    %c0_i32_1 = arith.constant 0 : i32
    %c0_i32_2 = arith.constant 0 : i32
    return %arg0, %c0_i32, %c0_i32_0, %c0_i32_1 : i32, i32, i32, i32
  }
}

</mosaic_0001>

<bundles_post_ra>
// kernel: tpu_custom_call.1
= control target key start
LH: loop header
LB: loop body
LE: loop exit
PB: predicated region body
PF: predicated region fallthrough
CT: control target
= control target key end

     0   :  { %s3489_s0 = inlined_call_operand.hbm [shape: f32[2,4,16,16], index: 0, kind: input, shape index: {}]   ;;  %s3490_s1 = inlined_call_operand.hbm [shape: f32[2,4,16,16], index: 1, kind: input, shape index: {}]   ;;  %s3491_s2 = inlined_call_operand.hbm [shape: f32[2,4,16,16], index: 2, kind: input, shape index: {}]   ;;  %s3492_s3 = inlined_call_operand.vmem [shape: f32[72], index: 3, kind: input, shape index: {}]   ;;  %s3493_s4 = inlined_call_operand.vmem [shape: f32[2], index: 4, kind: input, shape index: {}]   ;;  %s3494_s5 = inlined_call_operand.vmem [shape: f32[18], index: 5, kind: input, shape index: {}]   ;;  %s3495_s6 = inlined_call_operand.<no memory space> [shape: f32[1], index: 6, kind: input, shape index: {}]   ;;  %s3496_s7 = inlined_call_operand.vmem [shape: f32[9], index: 7, kind: input, shape index: {}]   ;;  %s3497_s8 = inlined_call_operand.<no memory space> [shape: f32[1], index: 8, kind: input, shape index: {}]   ;;  %s3498_s9 = inlined_call_operand.hbm [shape: f32[2,4,16,16], index: 9, kind: output, shape index: {}]  }
   0x1   :  { %3517 = sst [smem:[#allocation31_spill]] %s3489_s0 }
   0x2   :  { %3518 = sst [smem:[#allocation32_spill]] %s3493_s4 }
   0x3   :  { %14 = sst [smem:[#allocation5]] %s3495_s6 }
   0x4   :  { %15 = sst [smem:[#allocation6]] %s3497_s8 }
   0x5   :  { %16 = vsyncpa [#allocation8], 0 }
   0x6   :  { %18 = vsyncpa [#allocation8 + $0x1], 0 }
   0x7   :  { %19 = vsyncpa [#allocation12], 0 }
   0x8   :  { %21 = vsyncpa [#allocation12 + $0x1], 0 }
   0x9   :  { %22 = vsyncpa [#allocation10], 0 }
   0xa   :  { %23 = vsyncpa [#allocation16], 0 }
   0xb   :  { %24 = vsyncpa [#allocation19], 0 }
   0xc   :  { %25 = vsyncpa [#allocation9], 0 }
   0xd   :  { %27 = vsyncpa [#allocation9 + $0x1], 0  ;;  %s2590_s13 = smov 0   ;;  %s2592_s14 = smov 0  }
   0xe   :  { %s2594_s15 = smov 0   ;;  %s2596_s6 = smov 0  }
   0xf LB: > { %3519 = sst [smem:[#allocation27_spill]] %s2516_s6  ;;  %s2611_s8 = sadd.s32 4294967295, %s2516_s6   ;;  %s2516_s6 = sphi %s2596_s6, %s3555_s6   ;;  %s2512_s15 = sphi %s2594_s15, %s3559_s15   ;;  %s2508_s14 = sphi %s2592_s14, %s3558_s14   ;;  %s2504_s13 = sphi %s2590_s13, %s3557_s13  }
  0x10   : > { %s2022_s16 = sadd.s32 4294967294, %s2516_s6   ;;  %p53_p0 = scmp.ne.s32.totalorder %s2508_s14, %s2504_s13 }
  0x11   : > { %p3499_p1 = scmp.eq.s32.totalorder %s2611_s8, 0  ;;  %p261_p3 = scmp.eq.s32.totalorder %s2022_s16, 1 }
  0x12   : > { %p2023_p5 = scmp.ge.s32.totalorder %s2516_s6, 1  ;;  %p268_p7 = scmp.lt.s32.totalorder %s2516_s6, 3 }
  0x13   : > { %p2620_p4 = por %p3499_p1, %p53_p0  ;;  %p2625_p6 = por %p261_p3, %p53_p0 }
  0x14   : > { %s3523_s4 = sld [smem:[#allocation32_spill]]  ;;  %p2633_p8 = pnand %p2023_p5, %p268_p7 }
  0x15   : > { %s3520_s17 = scalar_select %p2620_p4, 1, 0 }
  0x16   : > { %s3521_s18 = scalar_select %p2625_p6, 1, 0 }
  0x17   : > { %s3524_s22 = scalar_select %p2633_p8, 1, 0 }
  0x18   : > { %3522 = sst [smem:[#allocation28_spill]] %s3521_s18  ;;  %p2203_p10 = pneg %p2633_p8 }
  0x19   : > { %s2641_s23 = sadd.s32 1, %s2516_s6   ;;  %s40_s27 = sadd.s32 1, %s2512_s15 }
  0x1a   : > { %s292_s21 = sshll.u32 %s3523_s4, 4  ;;  %3525 = sst [smem:[#allocation29_spill]] %s2641_s23  ;;  %s293_s21 = int_to_ptr.vmem [resolvable:$true] %s292_s21 }
  0x1b   : > { %p2645_p11 = pnand %p2203_p10, %p3499_p1  ;;  %s37_s25 = ssub.s32 %s2516_s6, %s2641_s23 }
  0x1c   : > { %p2651_p12 = scmp.eq.s32.totalorder %s37_s25, 0  ;;  %p47_p13 = scmp.ne.s32.totalorder %s2512_s15, %s2508_s14 }
  0x1d   : > { %s3526_s24 = scalar_select %p2645_p11, 1, 0 }
  0x1e   : > { %s2292_s28 = scalar_lea.vmem %s293_s21, 16  ;;  %p3505_p3 = pneg %p2645_p11 }
  0x1f   : > { %p2293_p0 = scmp.ne.s32.totalorder %s293_s21, %s2292_s28  ;;  %p2300_p10 = scmp.lt.s32.totalorder %s293_s21, %s293_s21 }
  0x20   : > { %p2301_p9 = scmp.lt.s32.totalorder %s2292_s28, %s2292_s28 }
  0x21   : > { %p2295_p5 = pnand %p3505_p3, %p2293_p0 }
  0x22   : > { %p2302_p1 = por %p2301_p9, %p2300_p10 }
  0x23   : > { %p2296_p7 = pneg %p2295_p5 }
  0x25   : > { %p2303_p2 = pnand %p2302_p1, %p2296_p7 }
  0x27   : > { %2306 = shalt.err (!%p2303_p2)
}
  0x28   : > { %s2518_s29 = smov [#allocation15]   ;;  %p48_p1 = scmp.eq.s32.totalorder %s2516_s6, 0 }
  0x29   : > { %2209 = dma.vmem_to_smem (!%p2645_p11), %s293_s21, 16, %s2518_s29, [#allocation16]  }
  0x2a   : > { %s2668_s30 = scalar_select %p2651_p12, %s2512_s15, %s40_s27  }
  0x2b   : > { %p3529_p2 = scmp.eq.s32.totalorder %s2611_s8, 1  ;;  %p2234_p0 = scmp.lt.s32.totalorder %s2516_s6, 2 }
  0x2c   : > { %3528 = sst [smem:[#allocation30_spill]] %s2668_s30  ;;  %s3500_s11 = sand.u32 1, %s2512_s15  }
  0x2d   : > { %p2676_p9 = por %p3529_p2, %p47_p13  ;;  %p49_p5 = por %p48_p1, %p47_p13 }
  0x2e   : > { %s2687_s12 = sshll.u32 %s3500_s11, 6  ;;  %s2690_s16 = sshll.u32 %s2516_s6, 10 }
  0x2f   : > { %s3530_s10 = scalar_select %p2676_p9, 1, 0 }
  0x30   : > { %p2692_p12 = pnand %p2234_p0, %p49_p5  ;;  %s352_s20 = sand.u32 1, %s2516_s6  }
  0x31   : > { %s2701_s26 = scalar_lea.hbm %s3490_s1, %s2690_s16  ;;  %s356_s27 = scalar_lea.vmem [#allocation11], %s2687_s12 }
  0x32   : > { %s3531_s19 = scalar_select %p2692_p12, 1, 0 }
  0x33   : > { %s363_s28 = sshll.u32 %s356_s27, 4  ;;  %s281_s4 = sshll.u32 %s3492_s3, 4  ;;  %s2704_s28 = int_to_ptr.vmem [resolvable:$true] %s363_s28  ;;  %s282_s4 = int_to_ptr.vmem [resolvable:$true] %s281_s4 }
  0x34   : > { %s2709_s30 = scalar_lea.sflag [#allocation12], %s352_s20  ;;  %s2307_s23 = scalar_lea.hbm %s2701_s26, 1024 }
  0x35   : > { %p2308_p13 = scmp.ne.s32.totalorder %s2701_s26, %s2307_s23  ;;  %p2715_p7 = pneg %p2692_p12 }
  0x36   : > { %s2312_s6 = scalar_lea.hbm %s3490_s1, 2048  ;;  %p2313_p2 = scmp.lt.s32.totalorder %s2701_s26, %s3490_s1 }
  0x37   : > { %s3532_s21 = scalar_select %p2715_p7, 1, 0 }
  0x38   : > { %p2310_p10 = pnand %p2715_p7, %p2308_p13  ;;  %p2314_p0 = scmp.lt.s32.totalorder %s2312_s6, %s2307_s23 }
  0x3a   : > { %p2311_p1 = pneg %p2310_p10  ;;  %p2315_p5 = por %p2314_p0, %p2313_p2 }
  0x3c   : > { %p2316_p3 = pnand %p2315_p5, %p2311_p1 }
  0x3e   : > { %2319 = shalt.err (!%p2316_p3)
}
  0x3f   : > { %s2320_s20 = scalar_lea.vmem %s2704_s28, 1024  ;;  %s2519_s29 = smov [#allocation11]  }
  0x40   : > { %p2321_p6 = scmp.ne.s32.totalorder %s2704_s28, %s2320_s20  ;;  %s2325_s25 = sshll.u32 %s2519_s29, 4  ;;  %s2326_s25 = int_to_ptr.vmem [resolvable:$false] %s2325_s25 }
  0x41   : > { %s2327_s27 = scalar_lea.vmem %s2326_s25, 2048  ;;  %p2328_p9 = scmp.lt.s32.totalorder %s2704_s28, %s2326_s25 }
  0x42   : > { %p2323_p13 = pnand %p2321_p6, %p2715_p7  ;;  %p2329_p4 = scmp.lt.s32.totalorder %s2327_s27, %s2320_s20 }
  0x44   : > { %p2324_p10 = pneg %p2323_p13  ;;  %p2330_p8 = por %p2329_p4, %p2328_p9 }
  0x46   : > { %p2331_p11 = pnand %p2330_p8, %p2324_p10 }
  0x48   : > { %2334 = shalt.err (!%p2331_p11)
}
  0x49   : > { %s3511_s6 = smov 128   ;;  %s2521_s18 = smov 8  }
  0x4a   : > { %2222 = dma.hbm_to_vmem [thread:$0]  (!%p2692_p12), %s2701_s26, 1024, %s2704_s28, %s2709_s30, %s3511_s6, %s3511_s6, %s2521_s18  }
  0x4b   : > { %s2335_s20 = scalar_lea.vmem %s282_s4, 16  ;;  %p3533_p6 = scmp.ne.s32.totalorder %s3526_s24, 0 }
  0x4c   : > { %p2336_p4 = scmp.ne.s32.totalorder %s282_s4, %s2335_s20  ;;  %p2343_p9 = scmp.lt.s32.totalorder %s282_s4, %s282_s4 }
  0x4d   : > { %p3534_p8 = pneg %p3533_p6  ;;  %p2344_p1 = scmp.lt.s32.totalorder %s2335_s20, %s2335_s20 }
  0x4f   : > { %p2338_p11 = pnand %p2336_p4, %p3534_p8  ;;  %p2345_p2 = por %p2344_p1, %p2343_p9 }
  0x51   : > { %p2339_p3 = pneg %p2338_p11 }
  0x53   : > { %p2346_p0 = pnand %p2345_p2, %p2339_p3 }
  0x55   : > { %2349 = shalt.err (!%p2346_p0)
}
  0x56   : > { %s2522_s29 = smov [#allocation14]   ;;  %s303_s25 = sshll.u32 %s3494_s5, 4  ;;  %s304_s25 = int_to_ptr.vmem [resolvable:$true] %s303_s25 }
  0x57   : > { %2206 = dma.vmem_to_smem (!%p3533_p6), %s282_s4, 16, %s2522_s29, [#allocation10]  }
  0x58   : > { %s317_s11 = sshll.u32 %s3496_s7, 4  ;;  %s2350_s6 = scalar_lea.vmem %s304_s25, 16  ;;  %s318_s11 = int_to_ptr.vmem [resolvable:$true] %s317_s11 }
  0x59   : > { %p2351_p5 = scmp.ne.s32.totalorder %s304_s25, %s2350_s6  ;;  %p3535_p13 = pmov %p3534_p8 }
  0x5a   : > { %p2358_p8 = scmp.lt.s32.totalorder %s304_s25, %s304_s25  ;;  %p2359_p11 = scmp.lt.s32.totalorder %s2350_s6, %s2350_s6 }
  0x5b   : > { %p2353_p10 = pnand %p2351_p5, %p3535_p13 }
  0x5c   : > { %p2360_p3 = por %p2359_p11, %p2358_p8 }
  0x5d   : > { %p2354_p4 = pneg %p2353_p10 }
  0x5f   : > { %p2361_p9 = pnand %p2360_p3, %p2354_p4 }
  0x61   : > { %2364 = shalt.err (!%p2361_p9)
}
  0x62   : > { %s2523_s4 = smov [#allocation17]   ;;  %s2365_s20 = scalar_lea.vmem %s318_s11, 16 }
  0x63   : > { %2212 = dma.vmem_to_smem (!%p3533_p6), %s304_s25, 16, %s2523_s4, [#allocation16]  }
  0x64   : > { %p2366_p1 = scmp.ne.s32.totalorder %s318_s11, %s2365_s20  ;;  %p3536_p2 = pmov %p3535_p13 }
  0x65   : > { %p2373_p7 = scmp.lt.s32.totalorder %s318_s11, %s318_s11  ;;  %p2374_p5 = scmp.lt.s32.totalorder %s2365_s20, %s2365_s20 }
  0x66   : > { %p2368_p0 = pnand %p2366_p1, %p3536_p2 }
  0x67   : > { %p2375_p13 = por %p2374_p5, %p2373_p7 }
  0x68   : > { %p2369_p12 = pneg %p2368_p0 }
  0x6a   : > { %p2376_p10 = pnand %p2375_p13, %p2369_p12 }
  0x6c   : > { %2379 = shalt.err (!%p2376_p10)
}
  0x6d   : > { %s2524_s6 = smov [#allocation18]   ;;  %s3537_s0 = sld [smem:[#allocation31_spill]] }
  0x6e   : > { %2215 = dma.vmem_to_smem (!%p3533_p6), %s318_s11, 16, %s2524_s6, [#allocation19]  }
  0x6f   : > { %s335_s25 = scalar_lea.vmem [#allocation7], %s2687_s12  ;;  %s3538_s23 = sand.u32 1, %s2512_s15  }
  0x70   : > { %s342_s27 = sshll.u32 %s335_s25, 4  ;;  %s332_s4 = scalar_lea.sflag [#allocation8], %s3538_s23  ;;  %s2773_s27 = int_to_ptr.vmem [resolvable:$true] %s342_s27 }
  0x71   : > { %p3539_p7 = scmp.ne.s32.totalorder %s3532_s21, 0 }
  0x73   : > { %s2770_s28 = scalar_lea.hbm %s3537_s0, %s2690_s16  ;;  %s2385_s6 = scalar_lea.hbm %s3537_s0, 2048 }
  0x74   : > { %s2380_s24 = scalar_lea.hbm %s2770_s28, 1024  ;;  %p2386_p6 = scmp.lt.s32.totalorder %s2770_s28, %s3537_s0 }
  0x75   : > { %p2381_p12 = scmp.ne.s32.totalorder %s2770_s28, %s2380_s24  ;;  %p2387_p11 = scmp.lt.s32.totalorder %s2385_s6, %s2380_s24 }
  0x77   : > { %p2383_p4 = pnand %p2381_p12, %p3539_p7  ;;  %p2388_p3 = por %p2387_p11, %p2386_p6 }
  0x79   : > { %p2384_p8 = pneg %p2383_p4 }
  0x7b   : > { %p2389_p9 = pnand %p2388_p3, %p2384_p8 }
  0x7d   : > { %2392 = shalt.err (!%p2389_p9)
}
  0x7e   : > { %s2393_s25 = scalar_lea.vmem %s2773_s27, 1024  ;;  %s2525_s23 = smov [#allocation7]  }
  0x7f   : > { %p2394_p1 = scmp.ne.s32.totalorder %s2773_s27, %s2393_s25  ;;  %s2398_s11 = sshll.u32 %s2525_s23, 4  ;;  %s2399_s11 = int_to_ptr.vmem [resolvable:$false] %s2398_s11 }
  0x80   : > { %s2400_s20 = scalar_lea.vmem %s2399_s11, 2048  ;;  %p2401_p5 = scmp.lt.s32.totalorder %s2773_s27, %s2399_s11 }
  0x81   : > { %p2396_p2 = pnand %p2394_p1, %p3539_p7  ;;  %p2402_p13 = scmp.lt.s32.totalorder %s2400_s20, %s2393_s25 }
  0x83   : > { %p2397_p0 = pneg %p2396_p2  ;;  %p2403_p10 = por %p2402_p13, %p2401_p5 }
  0x85   : > { %p2404_p12 = pnand %p2403_p10, %p2397_p0 }
  0x87   : > { %2407 = shalt.err (!%p2404_p12)
}
  0x88   : > { %p3540_p4 = scmp.ne.s32.totalorder %s3531_s19, 0  ;;  %s3541_s24 = smov 128  }
  0x89   : > { %s2804_s26 = scalar_lea.hbm %s3491_s2, %s2690_s16  ;;  %s377_s25 = scalar_lea.vmem [#allocation13], %s2687_s12 }
  0x8a   : > { %2219 = dma.hbm_to_vmem [thread:$0]  (!%p3540_p4), %s2770_s28, 1024, %s2773_s27, %s332_s4, %s3541_s24, %s3541_s24, %s2521_s18  }
  0x8b   : > { %s384_s23 = sshll.u32 %s377_s25, 4  ;;  %s2408_s11 = scalar_lea.hbm %s2804_s26, 1024  ;;  %s385_s23 = int_to_ptr.vmem [resolvable:$true] %s384_s23 }
  0x8c   : > { %p2409_p8 = scmp.ne.s32.totalorder %s2804_s26, %s2408_s11  ;;  %s2413_s28 = scalar_lea.hbm %s3491_s2, 2048 }
  0x8d   : > { %p2414_p3 = scmp.lt.s32.totalorder %s2804_s26, %s3491_s2  ;;  %p2415_p9 = scmp.lt.s32.totalorder %s2413_s28, %s2408_s11 }
  0x8e   : > { %p2411_p6 = pnand %p2409_p8, %p3539_p7 }
  0x8f   : > { %p2416_p1 = por %p2415_p9, %p2414_p3 }
  0x90   : > { %p2412_p11 = pneg %p2411_p6 }
  0x92   : > { %p2417_p2 = pnand %p2416_p1, %p2412_p11 }
  0x94   : > { %2420 = shalt.err (!%p2417_p2)
}
  0x95   : > { %s2421_s12 = scalar_lea.vmem %s385_s23, 1024  ;;  %s2526_s16 = smov [#allocation13]  }
  0x96   : > { %p2422_p0 = scmp.ne.s32.totalorder %s385_s23, %s2421_s12  ;;  %s2426_s6 = sshll.u32 %s2526_s16, 4  ;;  %s2427_s6 = int_to_ptr.vmem [resolvable:$false] %s2426_s6 }
  0x97   : > { %s2428_s29 = scalar_lea.vmem %s2427_s6, 2048  ;;  %p2429_p10 = scmp.lt.s32.totalorder %s385_s23, %s2427_s6 }
  0x98   : > { %p2424_p5 = pnand %p2422_p0, %p3539_p7  ;;  %p2430_p12 = scmp.lt.s32.totalorder %s2428_s29, %s2421_s12 }
  0x9a   : > { %p2425_p13 = pneg %p2424_p5  ;;  %p2431_p8 = por %p2430_p12, %p2429_p10 }
  0x9c   : > { %p2432_p6 = pnand %p2431_p8, %p2425_p13 }
  0x9e   : > { %2435 = shalt.err (!%p2432_p6)
}
  0x9f   : > { %2225 = dma.hbm_to_vmem [thread:$0]  (!%p3540_p4), %s2804_s26, 1024, %s385_s23, %s2709_s30, %s3541_s24, %s3541_s24, %s2521_s18  }
  0xa0   : > { %p3542_p7 = scmp.ne.s32.totalorder %s3524_s22, 0 }
  0xa1   : > { %s2830_s0 = sand.u32 (!%p3542_p7), 1, %s2508_s14   ;;  %p3543_p11 = scmp.ne.s32.totalorder (!%p3542_p7), %s3520_s17, 0 }
  0xa2   : > { %396 = sbr.rel (%p3542_p7) target bundleno = 1199 (0x4af), region = 56  ;;  %s2833_s21 = sshll.u32 (!%p3542_p7), %s2830_s0, 6 }
  0xa3   : > { %s399_s25 = scalar_lea.sflag (!%p3542_p7), [#allocation8], %s2830_s0  ;;  %s2837_s19 = scalar_lea.vmem (!%p3542_p7), [#allocation7], %s2833_s21 }
  0xa7   : > { %2479 = dma.done.wait (%p3543_p11), %s399_s25, 1024  }
  0xa8   : > { %2481 = vsyncadd (%p3543_p11), %s399_s25, 4294966272  ;;  %s407_s22 = sand.u32 1, %s2611_s8   ;;  %s2845_s18 = scalar_lea.vmem [#allocation11], %s2833_s21 }
  0xa9   : > { %s408_s30 = scalar_lea.sflag [#allocation12], %s407_s22 }
  0xaa   : > { %2483 = dma.done.wait (%p3543_p11), %s408_s30, 2048  }
  0xab   : > { %2485 = vsyncadd (%p3543_p11), %s408_s30, 4294965248  ;;  %s2852_s24 = scalar_lea.vmem [#allocation13], %s2833_s21  ;;  %p3544_p4 = scmp.eq.s32.totalorder %s2611_s8, 0 }
  0xad   : > { %2487 = dma.done.wait (%p3544_p4), [#allocation10], 16   ;;  %p3545_p3 = pmov %p3544_p4 }
  0xaf   : > { %2489 = vsyncadd (%p3545_p3), [#allocation10], 4294967280  ;;  %p3546_p9 = pmov %p3545_p3 }
  0xb0   : > { %p3547_p1 = pmov %p3545_p3 }
  0xb1   : > { %2491 = dma.done.wait (%p3546_p9), [#allocation16], 32  }
  0xb2   : > { %2493 = vsyncadd (%p3547_p1), [#allocation16], 4294967264  ;;  %p3548_p2 = pmov %p3547_p1 }
  0xb3   : > { %p3549_p0 = pmov %p3547_p1 }
  0xb4   : > { %2495 = dma.done.wait (%p3548_p2), [#allocation19], 16  }
  0xb5   : > { %2497 = vsyncadd (%p3549_p0), [#allocation19], 4294967280 }
  0xb6   : > { %441 = sfence }
  0xb7   : > { %v505_v0 = vld [vmem:[%s2837_s19] sm:$0xff]  ;;  %v2047_v1 = vld [vmem:[%s2837_s19 + $0x10] sm:$0xff]  ;;  %vm482_vm0 = vcmask 146432   ;;  %s2527_s17 = smov 1   ;;  %vm485_vm1 = vcmask 140288   ;;  %v506_v2 = vld [vmem:[%s2837_s19 + $0x8] sm:$0xff] }
  0xb8   : > { %509 = vrot.lane.b32.xlu0 %v505_v0, %s2527_s17  ;;  %523 = vrot.lane.b32.xlu1 %v2047_v1, %s2527_s17  ;;  %v2048_v3 = vld [vmem:[%s2837_s19 + $0x18] sm:$0xff]  ;;  %v2528_v4 = vmov 0.0   ;;  %v2049_v5 = vld [vmem:[%s2837_s19 + $0x20] sm:$0xff]  ;;  %vm515_vm2 = vcmask 138248   ;;  %s2055_s26 = sld [smem:[#allocation14 + $0x1]]  ;;  %s2529_s28 = smov 127  }
  0xb9   : > { %483 = vst.msk [vmem:[#allocation2] sm:$0xff] %vm482_vm0, %v2528_v4  ;;  %484 = vst.msk [vmem:[#allocation2 + $0x8] sm:$0xff] %vm482_vm0, %v2528_v4  ;;  %v2050_v6 = vld [vmem:[%s2837_s19 + $0x28] sm:$0xff]  ;;  %v2051_v7 = vld [vmem:[%s2837_s19 + $0x30] sm:$0xff]  ;;  %s2905_s23 = sld [smem:[#allocation14 + $0x2]]  ;;  %s2530_s4 = smov 126  }
  0xba   : > { %487 = vst.msk [vmem:[#allocation2 + $0x18] sm:$0xff] %vm482_vm0, %v2528_v4  ;;  %488 = vst.msk [vmem:[#allocation2 + $0x20] sm:$0xff] %vm482_vm0, %v2528_v4  ;;  %v2052_v8 = vld [vmem:[%s2837_s19 + $0x38] sm:$0xff]  ;;  %s2909_s11 = sld [smem:[#allocation14 + $0x4]]  ;;  %vm1803_vm9 = vcmask 130048   ;;  %p3550_p13 = scmp.ne.s32.totalorder %s3530_s10, 0 }
  0xbb   : > { %490 = vst.msk [vmem:[#allocation2 + $0x30] sm:$0xff] %vm482_vm0, %v2528_v4  ;;  %491 = vst.msk [vmem:[#allocation2 + $0x38] sm:$0xff] %vm482_vm0, %v2528_v4  ;;  %s2917_s20 = sld [smem:[#allocation14 + $0x5]] }
  0xbc   : > { %493 = vst.msk [vmem:[#allocation2 + $0x48] sm:$0xff] %vm482_vm0, %v2528_v4  ;;  %494 = vst.msk [vmem:[#allocation2 + $0x50] sm:$0xff] %vm482_vm0, %v2528_v4  ;;  %511 = vrot.lane.b32.xlu0 %v506_v2, %s2527_s17  ;;  %525 = vrot.lane.b32.xlu1 %v2048_v3, %s2527_s17  ;;  %s2067_s27 = sld [smem:[#allocation14 + $0x7]] }
  0xbd   : > { %496 = vst.msk [vmem:[#allocation3] sm:$0xff] %vm482_vm0, %v2528_v4  ;;  %497 = vst.msk [vmem:[#allocation3 + $0x8] sm:$0xff] %vm482_vm0, %v2528_v4  ;;  %s2069_s12 = sld [smem:[#allocation14 + $0x8]] }
  0xbe   : > { %499 = vst.msk [vmem:[#allocation3 + $0x18] sm:$0xff] %vm482_vm0, %v2528_v4  ;;  %500 = vst.msk [vmem:[#allocation3 + $0x20] sm:$0xff] %vm482_vm0, %v2528_v4  ;;  %v579_v13 = vstv %s2055_s26  ;;  %s2056_s16 = sld [smem:[#allocation14 + $0x25]] }
  0xbf   : > { %502 = vst.msk [vmem:[#allocation4] sm:$0xff] %vm482_vm0, %v2528_v4  ;;  %503 = vst.msk [vmem:[#allocation4 + $0x8] sm:$0xff] %vm482_vm0, %v2528_v4  ;;  %v607_v18 = vstv %s2905_s23  ;;  %s2073_s6 = sld [smem:[#allocation14 + $0xa]] }
  0xc0   : > { %486 = vst.msk [vmem:[#allocation2 + $0x10] sm:$0x3] %vm485_vm1, %v2528_v4  ;;  %489 = vst.msk [vmem:[#allocation2 + $0x28] sm:$0x3] %vm485_vm1, %v2528_v4  ;;  %537 = vrot.lane.b32.xlu0 %v2049_v5, %s2527_s17  ;;  %539 = vrot.lane.b32.xlu1 %v2050_v6, %s2527_s17  ;;  %v649_v25 = vstv %s2909_s11  ;;  %s2058_s29 = sld [smem:[#allocation14 + $0x26]] }
  0xc1   : > { %492 = vst.msk [vmem:[#allocation2 + $0x40] sm:$0x3] %vm485_vm1, %v2528_v4  ;;  %495 = vst.msk [vmem:[#allocation2 + $0x58] sm:$0x3] %vm485_vm1, %v2528_v4  ;;  %v677_v29 = vstv %s2917_s20  ;;  %s2075_s25 = sld [smem:[#allocation14 + $0xb]] }
  0xc2   : > { %498 = vst.msk [vmem:[#allocation3 + $0x10] sm:$0x3] %vm485_vm1, %v2528_v4  ;;  %501 = vst.msk [vmem:[#allocation3 + $0x28] sm:$0x3] %vm485_vm1, %v2528_v4  ;;  %v719_v33 = vstv %s2067_s27  ;;  %s2062_s19 = sld [smem:[#allocation14 + $0x28]] }
  0xc3   : > { %504 = vst.msk [vmem:[#allocation4 + $0x10] sm:$0x3] %vm485_vm1, %v2528_v4  ;;  %v747_v37 = vstv %s2069_s12  ;;  %s2079_s22 = sld [smem:[#allocation14 + $0xd]] }
  0xc4   : > { %551 = vrot.lane.b32.xlu0 %v2051_v7, %s2527_s17  ;;  %553 = vrot.lane.b32.xlu1 %v2052_v8, %s2527_s17  ;;  %v593_v40 = vstv %s2056_s16  ;;  %s2064_s30 = sld [smem:[#allocation14 + $0x29]] }
  0xc5   : > { %v789_v42 = vstv %s2073_s6  ;;  %s2081_s26 = sld [smem:[#allocation14 + $0xe]] }
  0xc6   : > { %v621_v48 = vstv %s2058_s29  ;;  %s2068_s23 = sld [smem:[#allocation14 + $0x2b]] }
  0xc7   : > { %v817_v51 = vstv %s2075_s25  ;;  %s2085_s11 = sld [smem:[#allocation14 + $0x10]] }
  0xc8   : > { %v663_v54 = vstv %s2062_s19  ;;  %s2070_s20 = sld [smem:[#allocation14 + $0x2c]] }
  0xc9   : > { %v859_v58 = vstv %s2079_s22  ;;  %s2087_s27 = sld [smem:[#allocation14 + $0x11]] }
  0xca   : > { %v691_v62 = vstv %s2064_s30  ;;  %s2074_s12 = sld [smem:[#allocation14 + $0x2e]] }
  0xcb   : > { %v887_v1 = vstv %s2081_s26  ;;  %s2091_s16 = sld [smem:[#allocation14 + $0x13]] }
  0xcc   : > { %v733_v4 = vstv %s2068_s23  ;;  %s2076_s6 = sld [smem:[#allocation14 + $0x2f]] }
  0xcd   : > { %v929_v8 = vstv %s2085_s11  ;;  %s2093_s29 = sld [smem:[#allocation14 + $0x14]] }
  0xce   : > { %s2080_s25 = sld [smem:[#allocation14 + $0x31]] }
  0xcf   : > { %s2097_s19 = sld [smem:[#allocation14 + $0x16]] }
  0xd0   : > { %s2082_s22 = sld [smem:[#allocation14 + $0x32]] }
  0xd1   : > { %s2099_s30 = sld [smem:[#allocation14 + $0x17]] }
  0xd2   : > { %s2086_s26 = sld [smem:[#allocation14 + $0x34]] }
  0xd3   : > { %s2103_s23 = sld [smem:[#allocation14 + $0x19]] }
  0xd4   : > { %s2088_s11 = sld [smem:[#allocation14 + $0x35]] }
 0x12a   : > { %v510_v9 = vpop.permute.xlu0 %509  ;;  %v524_v10 = vpop.permute.xlu1 %523 }
 0x12b   : > { %516 = vst.msk [vmem:[#allocation2 + $0x1] sm:$0xff] %vm515_vm2, %v510_v9  ;;  %530 = vst.msk [vmem:[#allocation2 + $0x19] sm:$0xff] %vm515_vm2, %v524_v10 }
 0x12e   : > { %v512_v11 = vpop.permute.xlu0 %511  ;;  %v526_v12 = vpop.permute.xlu1 %525 }
 0x12f   : > { %517 = vst.msk [vmem:[#allocation2 + $0x9] sm:$0xff] %vm515_vm2, %v512_v11  ;;  %531 = vst.msk [vmem:[#allocation2 + $0x21] sm:$0xff] %vm515_vm2, %v526_v12  ;;  %v761_v12 = vstv %s2070_s20  ;;  %s566_s20 = sld [smem:[#allocation14]] }
 0x132   : > { %v2911_v14 = vld [vmem:[#allocation2] sm:$0xff]  ;;  %v538_v15 = vpop.permute.xlu0 %537  ;;  %v540_v16 = vpop.permute.xlu1 %539  ;;  %v2954_v41 = vld [vmem:[#allocation2 + $0x18] sm:$0xff] }
 0x133   : > { %v580_v17 = vmul.f32 %v579_v13, %v2911_v14  ;;  %544 = vst.msk [vmem:[#allocation2 + $0x31] sm:$0xff] %vm515_vm2, %v538_v15  ;;  %545 = vst.msk [vmem:[#allocation2 + $0x39] sm:$0xff] %vm515_vm2, %v540_v16  ;;  %v608_v23 = vmul.f32 %v607_v18, %v2911_v14  ;;  %v2926_v24 = vld [vmem:[#allocation2 + $0x1] sm:$0xff]  ;;  %v594_v44 = vmul.f32 %v593_v40, %v2911_v14  ;;  %v2976_v57 = vld [vmem:[#allocation2 + $0x19] sm:$0xff]  ;;  %v957_v16 = vstv %s2087_s27  ;;  %s3058_s27 = sld [smem:[#allocation14 + $0x1a]] }
 0x134   : > { %v650_v27 = vmul.f32 %v649_v25, %v2926_v24  ;;  %v678_v31 = vmul.f32 %v677_v29, %v2926_v24  ;;  %v790_v45 = vmul.f32 %v789_v42, %v2954_v41  ;;  %v622_v50 = vmul.f32 %v621_v48, %v2911_v14 }
 0x135   : > { %584 = vrot.lane.b32.xlu0 %v580_v17, %s2529_s28  ;;  %v818_v53 = vmul.f32 %v817_v51, %v2954_v41  ;;  %v664_v56 = vmul.f32 %v663_v54, %v2926_v24  ;;  %v860_v60 = vmul.f32 %v859_v58, %v2976_v57  ;;  %v692_v0 = vmul.f32 %v691_v62, %v2926_v24 }
 0x136   : > { %v2920_v19 = vld [vmem:[#allocation2 + $0x8] sm:$0xff]  ;;  %v552_v20 = vpop.permute.xlu0 %551  ;;  %v554_v21 = vpop.permute.xlu1 %553  ;;  %v2962_v47 = vld [vmem:[#allocation2 + $0x20] sm:$0xff]  ;;  %v888_v3 = vmul.f32 %v887_v1, %v2976_v57 }
 0x137   : > { %v581_v22 = vmul.f32 %v579_v13, %v2920_v19  ;;  %558 = vst.msk [vmem:[#allocation2 + $0x49] sm:$0xff] %vm515_vm2, %v552_v20  ;;  %559 = vst.msk [vmem:[#allocation2 + $0x51] sm:$0xff] %vm515_vm2, %v554_v21  ;;  %v609_v26 = vmul.f32 %v607_v18, %v2920_v19  ;;  %v2933_v28 = vld [vmem:[#allocation2 + $0x9] sm:$0xff]  ;;  %v595_v46 = vmul.f32 %v593_v40, %v2920_v19  ;;  %v2982_v61 = vld [vmem:[#allocation2 + $0x21] sm:$0xff]  ;;  %v803_v20 = vstv %s2074_s12  ;;  %s3062_s12 = sld [smem:[#allocation15]] }
 0x138   : > { %v651_v30 = vmul.f32 %v649_v25, %v2933_v28  ;;  %v2940_v32 = vld [vmem:[#allocation2 + $0x2] sm:$0xff]  ;;  %v679_v34 = vmul.f32 %v677_v29, %v2933_v28  ;;  %v2946_v36 = vld [vmem:[#allocation2 + $0xa] sm:$0xff]  ;;  %v791_v49 = vmul.f32 %v789_v42, %v2962_v47  ;;  %v623_v52 = vmul.f32 %v621_v48, %v2920_v19  ;;  %v2996_v7 = vld [vmem:[#allocation2 + $0x1a] sm:$0xff] }
 0x139   : > { %586 = vrot.lane.b32.xlu1 %v581_v22, %s2529_s28  ;;  %612 = vrot.lane.b32.xlu0 %v608_v23, %s2530_s4  ;;  %v720_v35 = vmul.f32 %v719_v33, %v2940_v32  ;;  %v721_v38 = vmul.f32 %v719_v33, %v2946_v36  ;;  %v748_v39 = vmul.f32 %v747_v37, %v2940_v32  ;;  %v3002_v11 = vld [vmem:[#allocation2 + $0x22] sm:$0xff]  ;;  %v999_v22 = vstv %s2091_s16  ;;  %s3068_s16 = sld [smem:[#allocation14 + $0x37]] }
 0x13a   : > { %v749_v43 = vmul.f32 %v747_v37, %v2946_v36  ;;  %v819_v55 = vmul.f32 %v817_v51, %v2962_v47  ;;  %v665_v59 = vmul.f32 %v663_v54, %v2933_v28  ;;  %v861_v63 = vmul.f32 %v859_v58, %v2982_v61  ;;  %v3014_v21 = vld [vmem:[#allocation2 + $0x30] sm:$0xff] }
 0x13b   : > { %v693_v2 = vmul.f32 %v691_v62, %v2933_v28  ;;  %v889_v5 = vmul.f32 %v887_v1, %v2982_v61  ;;  %v734_v6 = vmul.f32 %v733_v4, %v2940_v32  ;;  %v735_v9 = vmul.f32 %v733_v4, %v2946_v36  ;;  %v3036_v42 = vld [vmem:[#allocation2 + $0x31] sm:$0xff] }
 0x13c   : > { %v930_v10 = vmul.f32 %v929_v8, %v2996_v7  ;;  %v931_v13 = vmul.f32 %v929_v8, %v3002_v11  ;;  %v762_v15 = vmul.f32 %v761_v12, %v2940_v32  ;;  %v763_v17 = vmul.f32 %v761_v12, %v2946_v36  ;;  %v3056_v58 = vld [vmem:[#allocation2 + $0x32] sm:$0xff] }
 0x13d   : > { %614 = vrot.lane.b32.xlu1 %v609_v26, %s2530_s4  ;;  %654 = vrot.lane.b32.xlu0 %v650_v27, %s2529_s28  ;;  %v958_v18 = vmul.f32 %v957_v16, %v2996_v7  ;;  %v959_v23 = vmul.f32 %v957_v16, %v3002_v11  ;;  %v804_v25 = vmul.f32 %v803_v20, %v2954_v41  ;;  %v3021_v27 = vld [vmem:[#allocation2 + $0x38] sm:$0xff]  ;;  %v901_v48 = vstv %s2082_s22  ;;  %s3100_s22 = sld [smem:[#allocation14 + $0x1d]] }
 0x13e   : > { %v1000_v26 = vmul.f32 %v999_v22, %v3014_v21  ;;  %v805_v29 = vmul.f32 %v803_v20, %v2962_v47  ;;  %v1097_v51 = vstv %s2099_s30  ;;  %v943_v54 = vstv %s2086_s26  ;;  %s3110_s30 = sld [smem:[#allocation14 + $0x3a]] }
 0x13f   : > { %v567_v1 = vstv %s566_s20  ;;  %s3115_s26 = sld [smem:[#allocation14 + $0x9]] }
 0x140   : > { %v568_v4 = vmul.f32 %v567_v1, %v2911_v14  ;;  %s3131_s20 = sld [smem:[#allocation14 + $0x3b]] }
 0x141   : > { %656 = vrot.lane.b32.xlu1 %v651_v30, %s2529_s28  ;;  %682 = vrot.lane.b32.xlu0 %v678_v31, %s2530_s4  ;;  %v831_v30 = vstv %s2076_s6  ;;  %v1001_v31 = vmul.f32 %v999_v22, %v3021_v27  ;;  %s3072_s6 = sld [smem:[#allocation14 + $0x3]] }
 0x142   : > { %v832_v33 = vmul.f32 %v831_v30, %v2954_v41 }
 0x145   : > { %684 = vrot.lane.b32.xlu1 %v679_v34, %s2530_s4  ;;  %724 = vrot.lane.b32.xlu0 %v720_v35, %s2529_s28  ;;  %v1027_v34 = vstv %s2093_s29  ;;  %v833_v35 = vmul.f32 %v831_v30, %v2962_v47  ;;  %s3074_s29 = sld [smem:[#allocation14 + $0x1c]] }
 0x146   : > { %v1028_v37 = vmul.f32 %v1027_v34, %v3014_v21 }
 0x147   : > { %v637_v16 = vstv %s3072_s6  ;;  %s3158_s6 = sld [smem:[#allocation14 + $0x3d]] }
 0x149   : > { %726 = vrot.lane.b32.xlu1 %v721_v38, %s2529_s28  ;;  %752 = vrot.lane.b32.xlu0 %v748_v39, %s2530_s4  ;;  %v873_v38 = vstv %s2080_s25  ;;  %v1029_v39 = vmul.f32 %v1027_v34, %v3021_v27  ;;  %s3087_s25 = sld [smem:[#allocation14 + $0x38]] }
 0x14a   : > { %v874_v40 = vmul.f32 %v873_v38, %v2976_v57 }
 0x14b   : > { %v1209_v20 = vstv %s3074_s29  ;;  %s3163_s29 = sld [smem:[#allocation14 + $0xc]] }
 0x14d   : > { %754 = vrot.lane.b32.xlu1 %v749_v43, %s2530_s4  ;;  %598 = vrot.lane.b32.xlu0 %v594_v44, %s2529_s28  ;;  %v1069_v43 = vstv %s2097_s19  ;;  %v875_v44 = vmul.f32 %v873_v38, %v2982_v61  ;;  %s3092_s19 = sld [smem:[#allocation14 + $0x6]] }
 0x151   : > { %600 = vrot.lane.b32.xlu1 %v595_v46, %s2529_s28  ;;  %794 = vrot.lane.b32.xlu0 %v790_v45, %s2529_s28  ;;  %v1070_v45 = vmul.f32 %v1069_v43, %v3036_v42  ;;  %v3042_v46 = vld [vmem:[#allocation2 + $0x39] sm:$0xff] }
 0x155   : > { %796 = vrot.lane.b32.xlu1 %v791_v49, %s2529_s28  ;;  %626 = vrot.lane.b32.xlu0 %v622_v50, %s2530_s4  ;;  %v1071_v49 = vmul.f32 %v1069_v43, %v3042_v46  ;;  %v902_v50 = vmul.f32 %v901_v48, %v2976_v57  ;;  %v639_v43 = vmul.f32 %v637_v16, %v2933_v28 }
 0x159   : > { %628 = vrot.lane.b32.xlu1 %v623_v52, %s2530_s4  ;;  %822 = vrot.lane.b32.xlu0 %v818_v53, %s2530_s4  ;;  %v903_v52 = vmul.f32 %v901_v48, %v2982_v61  ;;  %v1098_v53 = vmul.f32 %v1097_v51, %v3036_v42  ;;  %v707_v48 = vstv %s3092_s19  ;;  %s3178_s19 = sld [smem:[#allocation14 + $0x3e]] }
 0x15d   : > { %824 = vrot.lane.b32.xlu1 %v819_v55, %s2530_s4  ;;  %668 = vrot.lane.b32.xlu0 %v664_v56, %s2529_s28  ;;  %v1099_v55 = vmul.f32 %v1097_v51, %v3042_v46  ;;  %v944_v56 = vmul.f32 %v943_v54, %v2996_v7 }
 0x161   : > { %670 = vrot.lane.b32.xlu1 %v665_v59, %s2529_s28  ;;  %864 = vrot.lane.b32.xlu0 %v860_v60, %s2529_s28  ;;  %v1139_v59 = vstv %s2103_s23  ;;  %v945_v60 = vmul.f32 %v943_v54, %v3002_v11  ;;  %s3121_s23 = sld [smem:[#allocation14 + $0x1f]] }
 0x162   : > { %v1140_v62 = vmul.f32 %v1139_v59, %v3056_v58 }
 0x165   : > { %866 = vrot.lane.b32.xlu1 %v861_v63, %s2529_s28  ;;  %696 = vrot.lane.b32.xlu0 %v692_v0, %s2530_s4  ;;  %v3066_v63 = vld [vmem:[#allocation2 + $0x3a] sm:$0xff]  ;;  %v971_v0 = vstv %s2088_s11  ;;  %s3125_s11 = sld [smem:[#allocation14 + $0x24]] }
 0x169   : > { %698 = vrot.lane.b32.xlu1 %v693_v2, %s2530_s4  ;;  %892 = vrot.lane.b32.xlu0 %v888_v3, %s2530_s4  ;;  %v1141_v2 = vmul.f32 %v1139_v59, %v3066_v63  ;;  %v972_v3 = vmul.f32 %v971_v0, %v2996_v7  ;;  %v1237_v59 = vstv %s3100_s22  ;;  %s3190_s22 = sld [smem:[#allocation14 + $0x23]] }
 0x16d   : > { %894 = vrot.lane.b32.xlu1 %v889_v5, %s2530_s4  ;;  %738 = vrot.lane.b32.xlu0 %v734_v6, %s2529_s28  ;;  %v1167_v5 = vstv %s3058_s27  ;;  %v561_v6 = vstv %s3062_s12  ;;  %s3135_s27 = sld [smem:[#allocation15 + $0x1]] }
 0x16e   : > { %v570_v12 = vadd.f32 %v568_v4, %v561_v6  ;;  %s3144_s12 = sld [smem:[#allocation14 + $0x20]] }
 0x171   : > { %740 = vrot.lane.b32.xlu1 %v735_v9, %s2529_s28  ;;  %934 = vrot.lane.b32.xlu0 %v930_v10, %s2529_s28  ;;  %v973_v9 = vmul.f32 %v971_v0, %v3002_v11  ;;  %v1168_v10 = vmul.f32 %v1167_v5, %v3056_v58 }
 0x175   : > { %936 = vrot.lane.b32.xlu1 %v931_v13, %s2529_s28  ;;  %766 = vrot.lane.b32.xlu0 %v762_v15, %s2530_s4  ;;  %v569_v13 = vmul.f32 %v567_v1, %v2920_v19  ;;  %v1013_v15 = vstv %s3068_s16  ;;  %s3149_s16 = sld [smem:[#allocation14 + $0x27]] }
 0x179   : > { %768 = vrot.lane.b32.xlu1 %v763_v17, %s2530_s4  ;;  %962 = vrot.lane.b32.xlu0 %v958_v18, %s2530_s4  ;;  %v3094_v18 = vld [vmem:[#allocation2 + $0x48] sm:$0xff] }
 0x17d   : > { %964 = vrot.lane.b32.xlu1 %v959_v23, %s2530_s4  ;;  %808 = vrot.lane.b32.xlu0 %v804_v25, %s2529_s28  ;;  %v1169_v25 = vmul.f32 %v1167_v5, %v3066_v63  ;;  %v709_v5 = vmul.f32 %v707_v48, %v2946_v36 }
 0x181   : > { %810 = vrot.lane.b32.xlu1 %v805_v29, %s2529_s28  ;;  %1004 = vrot.lane.b32.xlu0 %v1000_v26, %s2529_s28  ;;  %v1014_v26 = vmul.f32 %v1013_v15, %v3014_v21  ;;  %v571_v29 = vadd.f32 %v569_v13, %v561_v6  ;;  %v1083_v6 = vstv %s3110_s30  ;;  %s3194_s30 = sld [smem:[#allocation14 + $0x2a]] }
 0x185   : > { %1006 = vrot.lane.b32.xlu1 %v1001_v31, %s2529_s28  ;;  %836 = vrot.lane.b32.xlu0 %v832_v33, %s2530_s4  ;;  %v638_v31 = vmul.f32 %v637_v16, %v2926_v24  ;;  %v1210_v33 = vmul.f32 %v1209_v20, %v3094_v18  ;;  %v1084_v16 = vmul.f32 %v1083_v6, %v3036_v42 }
 0x189   : > { %838 = vrot.lane.b32.xlu1 %v833_v35, %s2530_s4  ;;  %1032 = vrot.lane.b32.xlu0 %v1028_v37, %s2530_s4 }
 0x18d   : > { %1034 = vrot.lane.b32.xlu1 %v1029_v39, %s2530_s4  ;;  %878 = vrot.lane.b32.xlu0 %v874_v40, %s2529_s28  ;;  %v1015_v39 = vmul.f32 %v1013_v15, %v3021_v27 }
 0x191   : > { %880 = vrot.lane.b32.xlu1 %v875_v44, %s2529_s28  ;;  %1074 = vrot.lane.b32.xlu0 %v1070_v45, %s2529_s28  ;;  %v3107_v44 = vld [vmem:[#allocation2 + $0x50] sm:$0xff]  ;;  %v1041_v45 = vstv %s3087_s25  ;;  %s3167_s25 = sld [smem:[#allocation14 + $0x22]] }
 0x192   : > { %v1042_v54 = vmul.f32 %v1041_v45, %v3014_v21  ;;  %v1239_v15 = vmul.f32 %v1237_v59, %v3107_v44 }
 0x195   : > { %1076 = vrot.lane.b32.xlu1 %v1071_v49, %s2529_s28  ;;  %906 = vrot.lane.b32.xlu0 %v902_v50, %s2530_s4 }
 0x199   : > { %908 = vrot.lane.b32.xlu1 %v903_v52, %s2530_s4  ;;  %1102 = vrot.lane.b32.xlu0 %v1098_v53, %s2530_s4  ;;  %v1211_v53 = vmul.f32 %v1209_v20, %v3107_v44  ;;  %v3140_v20 = vld [vmem:[#allocation2 + $0x49] sm:$0xff] }
 0x19d   : > { %1104 = vrot.lane.b32.xlu1 %v1099_v55, %s2530_s4  ;;  %948 = vrot.lane.b32.xlu0 %v944_v56, %s2529_s28  ;;  %v708_v56 = vmul.f32 %v707_v48, %v2940_v32 }
 0x1a1   : > { %950 = vrot.lane.b32.xlu1 %v945_v60, %s2529_s28  ;;  %1144 = vrot.lane.b32.xlu0 %v1140_v62, %s2529_s28 }
 0x1a5   : > { %1146 = vrot.lane.b32.xlu1 %v1141_v2, %s2529_s28  ;;  %976 = vrot.lane.b32.xlu0 %v972_v3, %s2530_s4  ;;  %v1043_v2 = vmul.f32 %v1041_v45, %v3021_v27  ;;  %v1238_v3 = vmul.f32 %v1237_v59, %v3094_v18 }
 0x1a7   : > { %v585_v8 = vpop.permute.xlu0 %584 }
 0x1a8   : > { %v590_v17 = vadd.f32 %v585_v8, %v570_v12  ;;  %v777_v8 = vstv %s3115_s26  ;;  %s3202_s26 = sld [smem:[#allocation14 + $0x40]] }
 0x1a9   : > { %978 = vrot.lane.b32.xlu1 %v973_v9, %s2530_s4  ;;  %1172 = vrot.lane.b32.xlu0 %v1168_v10, %s2530_s4 }
 0x1ab   : > { %v587_v22 = vpop.permute.xlu1 %586  ;;  %v613_v23 = vpop.permute.xlu0 %612 }
 0x1ac   : > { %v618_v30 = vadd.f32 %v613_v23, %v590_v17  ;;  %v591_v34 = vadd.f32 %v587_v22, %v571_v29  ;;  %v1279_v22 = vstv %s3121_s23  ;;  %v778_v23 = vmul.f32 %v777_v8, %v2954_v41  ;;  %s3206_s23 = sld [smem:[#allocation14 + $0xf]] }
 0x1ad   : > { %1174 = vrot.lane.b32.xlu1 %v1169_v25, %s2530_s4  ;;  %1018 = vrot.lane.b32.xlu0 %v1014_v26, %s2529_s28  ;;  %v573_v25 = vstv %s3125_s11  ;;  %s3210_s11 = sld [smem:[#allocation14 + $0x41]] }
 0x1ae   : > { %v640_v35 = vadd.f32 %v638_v31, %v618_v30 }
 0x1af   : > { %v615_v37 = vpop.permute.xlu1 %614  ;;  %v655_v38 = vpop.permute.xlu0 %654 }
 0x1b0   : > { %v619_v40 = vadd.f32 %v615_v37, %v591_v34  ;;  %v660_v49 = vadd.f32 %v655_v38, %v640_v35  ;;  %v1280_v34 = vmul.f32 %v1279_v22, %v3140_v20  ;;  %v574_v37 = vmul.f32 %v573_v25, %v2911_v14  ;;  %v3154_v38 = vld [vmem:[#allocation2 + $0x51] sm:$0xff] }
 0x1b1   : > { %1020 = vrot.lane.b32.xlu1 %v1015_v39, %s2529_s28  ;;  %1214 = vrot.lane.b32.xlu0 %v1210_v33, %s2529_s28  ;;  %v1085_v33 = vmul.f32 %v1083_v6, %v3042_v46  ;;  %v1111_v39 = vstv %s3131_s20  ;;  %v1281_v14 = vmul.f32 %v1279_v22, %v3154_v38  ;;  %s3220_s20 = sld [smem:[#allocation14 + $0x43]] }
 0x1b2   : > { %v641_v50 = vadd.f32 %v639_v43, %v619_v40  ;;  %v779_v40 = vmul.f32 %v777_v8, %v2962_v47  ;;  %v563_v43 = vstv %s3135_s27  ;;  %s3230_s27 = sld [smem:[#allocation14 + $0x44]] }
 0x1b3   : > { %v657_v51 = vpop.permute.xlu1 %656  ;;  %v683_v52 = vpop.permute.xlu0 %682 }
 0x1b4   : > { %v688_v55 = vadd.f32 %v683_v52, %v660_v49  ;;  %v661_v60 = vadd.f32 %v657_v51, %v641_v50  ;;  %v1112_v50 = vmul.f32 %v1111_v39, %v3036_v42  ;;  %v576_v51 = vadd.f32 %v574_v37, %v563_v43 }
 0x1b5   : > { %1216 = vrot.lane.b32.xlu1 %v1211_v53, %s2529_s28  ;;  %1046 = vrot.lane.b32.xlu0 %v1042_v54, %s2530_s4  ;;  %v575_v52 = vmul.f32 %v573_v25, %v2920_v19  ;;  %v1307_v53 = vstv %s3144_s12  ;;  %v643_v54 = vstv %s3149_s16  ;;  %s3234_s12 = sld [smem:[#allocation14 + $0x2d]] }
 0x1b6   : > { %v710_v62 = vadd.f32 %v708_v56, %v688_v55  ;;  %v644_v19 = vmul.f32 %v643_v54, %v2926_v24  ;;  %v3186_v24 = vld [vmem:[#allocation2 + $0x4a] sm:$0xff]  ;;  %s3240_s16 = sld [smem:[#allocation14 + $0x46]] }
 0x1b7   : > { %v685_v0 = vpop.permute.xlu1 %684  ;;  %v725_v1 = vpop.permute.xlu0 %724 }
 0x1b8   : > { %v689_v4 = vadd.f32 %v685_v0, %v661_v60  ;;  %v730_v9 = vadd.f32 %v725_v1, %v710_v62  ;;  %v1113_v60 = vmul.f32 %v1111_v39, %v3042_v46  ;;  %v1308_v62 = vmul.f32 %v1307_v53, %v3140_v20 }
 0x1b9   : > { %1048 = vrot.lane.b32.xlu1 %v1043_v2, %s2530_s4  ;;  %1242 = vrot.lane.b32.xlu0 %v1238_v3, %s2530_s4  ;;  %v577_v0 = vadd.f32 %v575_v52, %v563_v43  ;;  %v1153_v2 = vstv %s3158_s6  ;;  %v847_v3 = vstv %s3163_s29  ;;  %s3244_s6 = sld [smem:[#allocation14 + $0x12]] }
 0x1ba   : > { %v711_v10 = vadd.f32 %v709_v5, %v689_v4  ;;  %v848_v22 = vmul.f32 %v847_v3, %v2976_v57  ;;  %v849_v37 = vmul.f32 %v847_v3, %v2982_v61  ;;  %s3248_s29 = sld [smem:[#allocation14 + $0x47]] }
 0x1bb   : > { %v727_v12 = vpop.permute.xlu1 %726  ;;  %v753_v13 = vpop.permute.xlu0 %752 }
 0x1bc   : > { %v758_v17 = vadd.f32 %v753_v13, %v730_v9  ;;  %v731_v26 = vadd.f32 %v727_v12, %v711_v10  ;;  %v1309_v10 = vmul.f32 %v1307_v53, %v3154_v38  ;;  %v1154_v12 = vmul.f32 %v1153_v2, %v3056_v58 }
 0x1bd   : > { %1244 = vrot.lane.b32.xlu1 %v1239_v15, %s2530_s4  ;;  %1088 = vrot.lane.b32.xlu0 %v1084_v16, %s2529_s28  ;;  %v1349_v13 = vstv %s3167_s25  ;;  %s3268_s25 = sld [smem:[#allocation14 + $0x30]] }
 0x1be   : > { %v780_v29 = vadd.f32 %v778_v23, %v758_v17  ;;  %v645_v17 = vmul.f32 %v643_v54, %v2933_v28  ;;  %v1350_v28 = vmul.f32 %v1349_v13, %v3186_v24 }
 0x1bf   : > { %v755_v30 = vpop.permute.xlu1 %754  ;;  %v599_v31 = vpop.permute.xlu0 %598 }
 0x1c0   : > { %v759_v35 = vadd.f32 %v755_v30, %v731_v26  ;;  %v604_v55 = vadd.f32 %v599_v31, %v576_v51  ;;  %v1155_v31 = vmul.f32 %v1153_v2, %v3066_v63 }
 0x1c1   : > { %1090 = vrot.lane.b32.xlu1 %v1085_v33, %s2529_s28  ;;  %1284 = vrot.lane.b32.xlu0 %v1280_v34, %s2529_s28  ;;  %v3198_v34 = vld [vmem:[#allocation2 + $0x52] sm:$0xff] }
 0x1c2   : > { %v781_v45 = vadd.f32 %v779_v40, %v759_v35  ;;  %v1181_v35 = vstv %s3178_s19  ;;  %s2095_s19 = sld [smem:[#allocation14 + $0x15]] }
 0x1c3   : > { %v601_v48 = vpop.permute.xlu1 %600  ;;  %v795_v49 = vpop.permute.xlu0 %794  ;;  %v1183_v53 = vmul.f32 %v1181_v35, %v3066_v63 }
 0x1c4   : > { %v605_v4 = vadd.f32 %v601_v48, %v577_v0  ;;  %v800_v5 = vadd.f32 %v795_v49, %v780_v29  ;;  %v1182_v48 = vmul.f32 %v1181_v35, %v3056_v58  ;;  %v1377_v49 = vstv %s3190_s22  ;;  %s2084_s22 = sld [smem:[#allocation14 + $0x33]] }
 0x1c5   : > { %1286 = vrot.lane.b32.xlu1 %v1281_v14, %s2529_s28  ;;  %1116 = vrot.lane.b32.xlu0 %v1112_v50, %s2530_s4  ;;  %v713_v14 = vstv %s3194_s30  ;;  %v1378_v54 = vmul.f32 %v1377_v49, %v3186_v24  ;;  %v1379_v3 = vmul.f32 %v1377_v49, %v3198_v34  ;;  %v783_v35 = vstv %s3234_s12  ;;  %s2101_s30 = sld [smem:[#allocation14 + $0x18]] }
 0x1c6   : > { %v1363_v49 = vstv %s3240_s16  ;;  %s2119_s12 = sld [smem:[#allocation14 + $0x21]] }
 0x1c7   : > { %v797_v56 = vpop.permute.xlu1 %796  ;;  %v627_v59 = vpop.permute.xlu0 %626  ;;  %s2108_s16 = sld [smem:[#allocation14 + $0x3f]] }
 0x1c8   : > { %v632_v1 = vadd.f32 %v627_v59, %v604_v55  ;;  %v801_v23 = vadd.f32 %v797_v56, %v781_v45  ;;  %v1351_v45 = vmul.f32 %v1349_v13, %v3198_v34  ;;  %v1223_v56 = vstv %s3202_s26  ;;  %s2090_s26 = sld [smem:[#allocation14 + $0x36]] }
 0x1c9   : > { %1118 = vrot.lane.b32.xlu1 %v1113_v60, %s2530_s4  ;;  %1312 = vrot.lane.b32.xlu0 %v1308_v62, %s2530_s4  ;;  %v714_v59 = vmul.f32 %v713_v14, %v2940_v32  ;;  %v917_v60 = vstv %s3206_s23  ;;  %s2107_s23 = sld [smem:[#allocation14 + $0x1b]] }
 0x1ca   : > { %v646_v6 = vadd.f32 %v644_v19, %v632_v1 }
 0x1cb   : > { %v629_v8 = vpop.permute.xlu1 %628  ;;  %v823_v9 = vpop.permute.xlu0 %822 }
 0x1cc   : > { %v633_v15 = vadd.f32 %v629_v8, %v605_v4  ;;  %v828_v16 = vadd.f32 %v823_v9, %v800_v5  ;;  %v1224_v4 = vmul.f32 %v1223_v56, %v3094_v18  ;;  %v1251_v5 = vstv %s3210_s11  ;;  %s2096_s11 = sld [smem:[#allocation14 + $0x39]] }
 0x1cd   : > { %1314 = vrot.lane.b32.xlu1 %v1309_v10, %s2530_s4  ;;  %1158 = vrot.lane.b32.xlu0 %v1154_v12, %s2529_s28  ;;  %v715_v8 = vmul.f32 %v713_v14, %v2946_v36  ;;  %v918_v9 = vmul.f32 %v917_v60, %v2996_v7  ;;  %v1252_v36 = vmul.f32 %v1251_v5, %v3094_v18 }
 0x1ce   : > { %v647_v25 = vadd.f32 %v645_v17, %v633_v15  ;;  %v850_v26 = vadd.f32 %v848_v22, %v828_v16  ;;  %v1225_v17 = vmul.f32 %v1223_v56, %v3107_v44  ;;  %v784_v14 = vmul.f32 %v783_v35, %v2954_v41 }
 0x1cf   : > { %v825_v29 = vpop.permute.xlu1 %824  ;;  %v669_v30 = vpop.permute.xlu0 %668 }
 0x1d0   : > { %v829_v33 = vadd.f32 %v825_v29, %v801_v23  ;;  %v674_v50 = vadd.f32 %v669_v30, %v646_v6  ;;  %v1293_v23 = vstv %s3220_s20  ;;  %s2113_s20 = sld [smem:[#allocation14 + $0x1e]] }
 0x1d1   : > { %1160 = vrot.lane.b32.xlu1 %v1155_v31, %s2529_s28  ;;  %1354 = vrot.lane.b32.xlu0 %v1350_v28, %s2529_s28  ;;  %v1253_v31 = vmul.f32 %v1251_v5, %v3107_v44  ;;  %v1294_v28 = vmul.f32 %v1293_v23, %v3140_v20 }
 0x1d2   : > { %v851_v39 = vadd.f32 %v849_v37, %v829_v33  ;;  %v1321_v33 = vstv %s3230_s27  ;;  %s2102_s27 = sld [smem:[#allocation14 + $0x3c]] }
 0x1d3   : > { %v671_v40 = vpop.permute.xlu1 %670  ;;  %v865_v43 = vpop.permute.xlu0 %864  ;;  %v1323_v56 = vmul.f32 %v1321_v33, %v3154_v38 }
 0x1d4   : > { %v675_v62 = vadd.f32 %v671_v40, %v647_v25  ;;  %v870_v0 = vadd.f32 %v865_v43, %v850_v26  ;;  %v919_v25 = vmul.f32 %v917_v60, %v3002_v11  ;;  %v1295_v43 = vmul.f32 %v1293_v23, %v3154_v38 }
 0x1d5   : > { %1356 = vrot.lane.b32.xlu1 %v1351_v45, %s2529_s28  ;;  %1186 = vrot.lane.b32.xlu0 %v1182_v48, %s2530_s4  ;;  %v1322_v45 = vmul.f32 %v1321_v33, %v3140_v20  ;;  %v1391_v60 = vstv %s3248_s29  ;;  %s2120_s29 = sld [smem:[#allocation14 + $0x45]] }
 0x1d7   : > { %v867_v51 = vpop.permute.xlu1 %866  ;;  %v697_v52 = vpop.permute.xlu0 %696 }
 0x1d8   : > { %v702_v55 = vadd.f32 %v697_v52, %v674_v50  ;;  %v871_v10 = vadd.f32 %v867_v51, %v851_v39  ;;  %v987_v50 = vstv %s3244_s6  ;;  %s3299_s6 = sld [smem:[#allocation14 + $0x42]] }
 0x1d9   : > { %1188 = vrot.lane.b32.xlu1 %v1183_v53, %s2530_s4  ;;  %1382 = vrot.lane.b32.xlu0 %v1378_v54, %s2530_s4  ;;  %v988_v41 = vmul.f32 %v987_v50, %v3014_v21 }
 0x1da   : > { %v716_v1 = vadd.f32 %v714_v59, %v702_v55  ;;  %v1364_v59 = vmul.f32 %v1363_v49, %v3186_v24 }
 0x1db   : > { %v699_v2 = vpop.permute.xlu1 %698  ;;  %v893_v19 = vpop.permute.xlu0 %892 }
 0x1dc   : > { %v703_v6 = vadd.f32 %v699_v2, %v675_v62  ;;  %v898_v32 = vadd.f32 %v893_v19, %v870_v0 }
 0x1dd   : > { %1384 = vrot.lane.b32.xlu1 %v1379_v3, %s2530_s4  ;;  %1228 = vrot.lane.b32.xlu0 %v1224_v4, %s2529_s28 }
 0x1de   : > { %v717_v12 = vadd.f32 %v715_v8, %v703_v6  ;;  %v920_v13 = vadd.f32 %v918_v9, %v898_v32  ;;  %v1365_v6 = vmul.f32 %v1363_v49, %v3198_v34  ;;  %v1392_v32 = vmul.f32 %v1391_v60, %v3186_v24 }
 0x1df   : > { %v895_v15 = vpop.permute.xlu1 %894  ;;  %v739_v16 = vpop.permute.xlu0 %738 }
 0x1e0   : > { %v899_v22 = vadd.f32 %v895_v15, %v871_v10  ;;  %v744_v37 = vadd.f32 %v739_v16, %v716_v1  ;;  %v785_v1 = vmul.f32 %v783_v35, %v2962_v47  ;;  %v989_v47 = vmul.f32 %v987_v50, %v3021_v27 }
 0x1e1   : > { %1230 = vrot.lane.b32.xlu1 %v1225_v17, %s2529_s28  ;;  %1256 = vrot.lane.b32.xlu0 %v1252_v36, %s2530_s4  ;;  %v853_v15 = vstv %s3268_s25  ;;  %s2125_s25 = sld [smem:[#allocation17 + $0x1]] }
 0x1e2   : > { %v921_v26 = vadd.f32 %v919_v25, %v899_v22  ;;  %v854_v23 = vmul.f32 %v853_v15, %v2976_v57  ;;  %v1057_v25 = vstv %s2095_s19  ;;  %s2126_s19 = sld [smem:[#allocation17 + $0x2]] }
 0x1e3   : > { %v741_v29 = vpop.permute.xlu1 %740  ;;  %v935_v30 = vpop.permute.xlu0 %934  ;;  %v1059_v57 = vmul.f32 %v1057_v25, %v3042_v46 }
 0x1e4   : > { %v745_v51 = vadd.f32 %v741_v29, %v717_v12  ;;  %v940_v52 = vadd.f32 %v935_v30, %v920_v13  ;;  %v1393_v13 = vmul.f32 %v1391_v60, %v3198_v34  ;;  %v1127_v60 = vstv %s2101_s30  ;;  %s2129_s30 = sld [smem:[#allocation17 + $0x5]] }
 0x1e5   : > { %1258 = vrot.lane.b32.xlu1 %v1253_v31, %s2530_s4  ;;  %1298 = vrot.lane.b32.xlu0 %v1294_v28, %s2529_s28 }
 0x1e7   : > { %v937_v39 = vpop.permute.xlu1 %936  ;;  %v767_v40 = vpop.permute.xlu0 %766 }
 0x1e8   : > { %v772_v48 = vadd.f32 %v767_v40, %v744_v37  ;;  %v941_v2 = vadd.f32 %v937_v39, %v921_v26  ;;  %v855_v37 = vmul.f32 %v853_v15, %v2982_v61  ;;  %v1058_v39 = vmul.f32 %v1057_v25, %v3036_v42 }
 0x1e9   : > { %1300 = vrot.lane.b32.xlu1 %v1295_v43, %s2529_s28  ;;  %1326 = vrot.lane.b32.xlu0 %v1322_v45, %s2530_s4  ;;  %v1197_v25 = vstv %s2107_s23  ;;  %s2132_s23 = sld [smem:[#allocation17 + $0x8]] }
 0x1ea   : > { %v786_v53 = vadd.f32 %v784_v14, %v772_v48 }
 0x1eb   : > { %v769_v54 = vpop.permute.xlu1 %768  ;;  %v963_v55 = vpop.permute.xlu0 %962 }
 0x1ec   : > { %v773_v62 = vadd.f32 %v769_v54, %v745_v51  ;;  %v968_v0 = vadd.f32 %v963_v55, %v940_v52 }
 0x1ed   : > { %1328 = vrot.lane.b32.xlu1 %v1323_v56, %s2530_s4  ;;  %1368 = vrot.lane.b32.xlu0 %v1364_v59, %s2529_s28 }
 0x1ee   : > { %v787_v19 = vadd.f32 %v785_v1, %v773_v62  ;;  %v990_v3 = vadd.f32 %v988_v41, %v968_v0 }
 0x1ef   : > { %v965_v4 = vpop.permute.xlu1 %964  ;;  %v809_v5 = vpop.permute.xlu0 %808 }
 0x1f0   : > { %v969_v8 = vadd.f32 %v965_v4, %v941_v2  ;;  %v814_v16 = vadd.f32 %v809_v5, %v786_v53  ;;  %v923_v53 = vstv %s2084_s22  ;;  %v1128_v5 = vmul.f32 %v1127_v60, %v3056_v58  ;;  %s2128_s22 = sld [smem:[#allocation17 + $0x4]] }
 0x1f1   : > { %1370 = vrot.lane.b32.xlu1 %v1365_v6, %s2529_s28  ;;  %1396 = vrot.lane.b32.xlu0 %v1392_v32, %s2530_s4  ;;  %v924_v59 = vmul.f32 %v923_v53, %v2996_v7  ;;  %v925_v4 = vmul.f32 %v923_v53, %v3002_v11  ;;  %v1129_v7 = vmul.f32 %v1127_v60, %v3066_v63 }
 0x1f2   : > { %v991_v9 = vadd.f32 %v989_v47, %v969_v8 }
 0x1f3   : > { %v811_v10 = vpop.permute.xlu1 %810  ;;  %v1005_v12 = vpop.permute.xlu0 %1004 }
 0x1f4   : > { %v815_v26 = vadd.f32 %v811_v10, %v787_v19  ;;  %v1010_v29 = vadd.f32 %v1005_v12, %v990_v3 }
 0x1f5   : > { %1398 = vrot.lane.b32.xlu1 %v1393_v13, %s2530_s4 }
 0x1f7   : > { %v1007_v17 = vpop.permute.xlu1 %1006  ;;  %v837_v36 = vpop.permute.xlu0 %836 }
 0x1f8   : > { %v842_v22 = vadd.f32 %v837_v36, %v814_v16  ;;  %v1011_v40 = vadd.f32 %v1007_v17, %v991_v9  ;;  %v993_v16 = vstv %s2090_s26  ;;  %s2131_s26 = sld [smem:[#allocation17 + $0x7]] }
 0x1fa   : > { %v856_v30 = vadd.f32 %v854_v23, %v842_v22  ;;  %v994_v23 = vmul.f32 %v993_v16, %v3014_v21  ;;  %v1199_v21 = vmul.f32 %v1197_v25, %v3107_v44 }
 0x1fb   : > { %v839_v31 = vpop.permute.xlu1 %838  ;;  %v1033_v28 = vpop.permute.xlu0 %1032 }
 0x1fc   : > { %v843_v33 = vadd.f32 %v839_v31, %v815_v26  ;;  %v1038_v35 = vadd.f32 %v1033_v28, %v1010_v29 }
 0x1fe   : > { %v857_v43 = vadd.f32 %v855_v37, %v843_v33  ;;  %v1060_v45 = vadd.f32 %v1058_v39, %v1038_v35  ;;  %v995_v37 = vmul.f32 %v993_v16, %v3021_v27  ;;  %v1198_v39 = vmul.f32 %v1197_v25, %v3094_v18 }
 0x1ff   : > { %v1035_v48 = vpop.permute.xlu1 %1034  ;;  %v879_v49 = vpop.permute.xlu0 %878 }
 0x200   : > { %v1039_v14 = vadd.f32 %v1035_v48, %v1011_v40  ;;  %v884_v54 = vadd.f32 %v879_v49, %v856_v30 }
 0x202   : > { %v1061_v50 = vadd.f32 %v1059_v57, %v1039_v14 }
 0x203   : > { %v881_v51 = vpop.permute.xlu1 %880  ;;  %v1075_v52 = vpop.permute.xlu0 %1074 }
 0x204   : > { %v885_v62 = vadd.f32 %v881_v51, %v857_v43  ;;  %v1080_v0 = vadd.f32 %v1075_v52, %v1060_v45  ;;  %v1063_v52 = vstv %s2096_s11  ;;  %s2134_s11 = sld [smem:[#allocation17 + $0xa]] }
 0x207   : > { %v1077_v55 = vpop.permute.xlu1 %1076  ;;  %v907_v56 = vpop.permute.xlu0 %906 }
 0x208   : > { %v912_v61 = vadd.f32 %v907_v56, %v884_v54  ;;  %v1081_v6 = vadd.f32 %v1077_v55, %v1061_v50  ;;  %v1064_v56 = vmul.f32 %v1063_v52, %v3036_v42 }
 0x20a   : > { %v926_v1 = vadd.f32 %v924_v59, %v912_v61  ;;  %v1267_v61 = vstv %s2113_s20  ;;  %s2135_s20 = sld [smem:[#allocation17 + $0xb]] }
 0x20b   : > { %v909_v41 = vpop.permute.xlu1 %908  ;;  %v1103_v2 = vpop.permute.xlu0 %1102  ;;  %v1269_v42 = vmul.f32 %v1267_v61, %v3154_v38 }
 0x20c   : > { %v913_v19 = vadd.f32 %v909_v41, %v885_v62  ;;  %v1108_v3 = vadd.f32 %v1103_v2, %v1080_v0 }
 0x20e   : > { %v927_v32 = vadd.f32 %v925_v4, %v913_v19  ;;  %v1130_v8 = vadd.f32 %v1128_v5, %v1108_v3  ;;  %v1065_v19 = vmul.f32 %v1063_v52, %v3042_v46  ;;  %v1268_v3 = vmul.f32 %v1267_v61, %v3140_v20 }
 0x20f   : > { %v1105_v47 = vpop.permute.xlu1 %1104  ;;  %v949_v9 = vpop.permute.xlu0 %948 }
 0x210   : > { %v1109_v10 = vadd.f32 %v1105_v47, %v1081_v6  ;;  %v954_v17 = vadd.f32 %v949_v9, %v926_v1 }
 0x212   : > { %v1131_v12 = vadd.f32 %v1129_v7, %v1109_v10 }
 0x213   : > { %v951_v13 = vpop.permute.xlu1 %950  ;;  %v1145_v15 = vpop.permute.xlu0 %1144 }
 0x214   : > { %v955_v26 = vadd.f32 %v951_v13, %v927_v32  ;;  %v1150_v29 = vadd.f32 %v1145_v15, %v1130_v8 }
 0x217   : > { %v1147_v36 = vpop.permute.xlu1 %1146  ;;  %v977_v22 = vpop.permute.xlu0 %976 }
 0x218   : > { %v982_v11 = vadd.f32 %v977_v22, %v954_v17  ;;  %v1151_v40 = vadd.f32 %v1147_v36, %v1131_v12  ;;  %v1133_v12 = vstv %s2102_s27  ;;  %v1337_v36 = vstv %s2119_s12  ;;  %s2137_s27 = sld [smem:[#allocation17 + $0xd]] }
 0x219   : > { %v1134_v17 = vmul.f32 %v1133_v12, %v3056_v58  ;;  %v1339_v58 = vmul.f32 %v1337_v36, %v3198_v34  ;;  %s2138_s12 = sld [smem:[#allocation17 + $0xe]] }
 0x21a   : > { %v996_v30 = vadd.f32 %v994_v23, %v982_v11 }
 0x21b   : > { %v979_v31 = vpop.permute.xlu1 %978  ;;  %v1173_v28 = vpop.permute.xlu0 %1172 }
 0x21c   : > { %v983_v33 = vadd.f32 %v979_v31, %v955_v26  ;;  %v1178_v35 = vadd.f32 %v1173_v28, %v1150_v29  ;;  %v1135_v31 = vmul.f32 %v1133_v12, %v3066_v63  ;;  %v1338_v28 = vmul.f32 %v1337_v36, %v3186_v24 }
 0x21e   : > { %v997_v43 = vadd.f32 %v995_v37, %v983_v33  ;;  %v1200_v45 = vadd.f32 %v1198_v39, %v1178_v35 }
 0x21f   : > { %v1175_v48 = vpop.permute.xlu1 %1174  ;;  %v1019_v49 = vpop.permute.xlu0 %1018 }
 0x220   : > { %v1179_v14 = vadd.f32 %v1175_v48, %v1151_v40  ;;  %v1024_v53 = vadd.f32 %v1019_v49, %v996_v30 }
 0x222   : > { %v1201_v57 = vadd.f32 %v1199_v21, %v1179_v14  ;;  %v1203_v14 = vstv %s2108_s16  ;;  %s2140_s16 = sld [smem:[#allocation17 + $0x10]] }
 0x223   : > { %v1021_v50 = vpop.permute.xlu1 %1020  ;;  %v1215_v51 = vpop.permute.xlu0 %1214  ;;  %v1204_v63 = vmul.f32 %v1203_v14, %v3094_v18 }
 0x224   : > { %v1025_v59 = vadd.f32 %v1021_v50, %v997_v43  ;;  %v1220_v60 = vadd.f32 %v1215_v51, %v1200_v45 }
 0x227   : > { %v1217_v54 = vpop.permute.xlu1 %1216  ;;  %v1047_v55 = vpop.permute.xlu0 %1046 }
 0x228   : > { %v1052_v27 = vadd.f32 %v1047_v55, %v1024_v53  ;;  %v1221_v4 = vadd.f32 %v1217_v54, %v1201_v57 }
 0x22a   : > { %v1066_v62 = vadd.f32 %v1064_v56, %v1052_v27 }
 0x22b   : > { %v1049_v0 = vpop.permute.xlu1 %1048  ;;  %v1243_v1 = vpop.permute.xlu0 %1242 }
 0x22c   : > { %v1053_v41 = vadd.f32 %v1049_v0, %v1025_v59  ;;  %v1248_v2 = vadd.f32 %v1243_v1, %v1220_v60  ;;  %v1205_v59 = vmul.f32 %v1203_v14, %v3107_v44 }
 0x22e   : > { %v1067_v5 = vadd.f32 %v1065_v19, %v1053_v41  ;;  %v1270_v6 = vadd.f32 %v1268_v3, %v1248_v2  ;;  %v1273_v19 = vstv %s3299_s6  ;;  %s2141_s6 = sld [smem:[#allocation17 + $0x11]] }
 0x22f   : > { %v1245_v32 = vpop.permute.xlu1 %1244  ;;  %v1089_v8 = vpop.permute.xlu0 %1088  ;;  %v1274_v44 = vmul.f32 %v1273_v19, %v3140_v20  ;;  %v1275_v12 = vmul.f32 %v1273_v19, %v3154_v38 }
 0x230   : > { %v1249_v47 = vadd.f32 %v1245_v32, %v1221_v4  ;;  %v1094_v13 = vadd.f32 %v1089_v8, %v1066_v62 }
 0x232   : > { %v1271_v9 = vadd.f32 %v1269_v42, %v1249_v47 }
 0x233   : > { %v1091_v10 = vpop.permute.xlu1 %1090  ;;  %v1285_v7 = vpop.permute.xlu0 %1284 }
 0x234   : > { %v1095_v22 = vadd.f32 %v1091_v10, %v1067_v5  ;;  %v1290_v11 = vadd.f32 %v1285_v7, %v1270_v6 }
 0x237   : > { %v1287_v15 = vpop.permute.xlu1 %1286  ;;  %v1117_v16 = vpop.permute.xlu0 %1116 }
 0x238   : > { %v1122_v46 = vadd.f32 %v1117_v16, %v1094_v13  ;;  %v1291_v33 = vadd.f32 %v1287_v15, %v1271_v9  ;;  %v1343_v13 = vstv %s2120_s29  ;;  %s1441_s29 = sld [smem:[#allocation17]] }
 0x23a   : > { %v1136_v23 = vadd.f32 %v1134_v17, %v1122_v46 }
 0x23b   : > { %v1119_v25 = vpop.permute.xlu1 %1118  ;;  %v1313_v26 = vpop.permute.xlu0 %1312 }
 0x23c   : > { %v1123_v29 = vadd.f32 %v1119_v25, %v1095_v22  ;;  %v1318_v30 = vadd.f32 %v1313_v26, %v1290_v11  ;;  %v1344_v22 = vmul.f32 %v1343_v13, %v3186_v24 }
 0x23e   : > { %v1137_v35 = vadd.f32 %v1135_v31, %v1123_v29  ;;  %v1340_v37 = vadd.f32 %v1338_v28, %v1318_v30  ;;  %v1345_v29 = vmul.f32 %v1343_v13, %v3198_v34 }
 0x23f   : > { %v1315_v39 = vpop.permute.xlu1 %1314  ;;  %v1159_v40 = vpop.permute.xlu0 %1158 }
 0x240   : > { %v1319_v43 = vadd.f32 %v1315_v39, %v1291_v33  ;;  %v1164_v21 = vadd.f32 %v1159_v40, %v1136_v23 }
 0x242   : > { %v1341_v45 = vadd.f32 %v1339_v58, %v1319_v43 }
 0x243   : > { %v1161_v48 = vpop.permute.xlu1 %1160  ;;  %v1355_v49 = vpop.permute.xlu0 %1354 }
 0x244   : > { %v1165_v52 = vadd.f32 %v1161_v48, %v1137_v35  ;;  %v1360_v53 = vadd.f32 %v1355_v49, %v1340_v37  ;;  %v1448_v48 = vstv %s2125_s25  ;;  %s1437_s25 = sld [smem:[#allocation5]] }
 0x247   : > { %v1357_v57 = vpop.permute.xlu1 %1356  ;;  %v1187_v50 = vpop.permute.xlu0 %1186 }
 0x248   : > { %v1192_v51 = vadd.f32 %v1187_v50, %v1164_v21  ;;  %v1361_v60 = vadd.f32 %v1357_v57, %v1341_v45  ;;  %v1462_v21 = vstv %s2126_s19  ;;  %s2127_s19 = sld [smem:[#allocation17 + $0x3]] }
 0x24a   : > { %v1206_v54 = vadd.f32 %v1204_v63, %v1192_v51 }
 0x24b   : > { %v1189_v55 = vpop.permute.xlu1 %1188  ;;  %v1383_v27 = vpop.permute.xlu0 %1382 }
 0x24c   : > { %v1193_v56 = vadd.f32 %v1189_v55, %v1165_v52  ;;  %v1388_v61 = vadd.f32 %v1383_v27, %v1360_v53  ;;  %v1484_v52 = vstv %s2128_s22  ;;  %v1498_v27 = vstv %s2129_s30  ;;  %s2130_s22 = sld [smem:[#allocation17 + $0x6]] }
 0x24d   : > { %s2133_s30 = sld [smem:[#allocation17 + $0x9]] }
 0x24e   : > { %vm1404_vm3 = vcmp.gt.f32.partialorder %v1388_v61, 0.0  ;;  %v1406_v62 = vmul.f32 0.2, %v1388_v61  ;;  %v1207_v0 = vadd.f32 %v1205_v59, %v1193_v56 }
 0x24f   : > { %v1385_v1 = vpop.permute.xlu1 %1384  ;;  %v1229_v41 = vpop.permute.xlu0 %1228 }
 0x250   : > { %v1389_v2 = vadd.f32 %v1385_v1, %v1361_v60  ;;  %v1408_v18 = vsel %vm1404_vm3, %v1388_v61, %v1406_v62  ;;  %v1234_v4 = vadd.f32 %v1229_v41, %v1206_v54  ;;  %v1520_v60 = vstv %s2131_s26  ;;  %s2136_s26 = sld [smem:[#allocation17 + $0xc]] }
 0x251   : > { %1412 = vrot.lane.b32.xlu0 %v1408_v18, %s2527_s17 }
 0x252   : > { %vm1405_vm4 = vcmp.gt.f32.partialorder %v1389_v2, 0.0  ;;  %v1407_v3 = vmul.f32 0.2, %v1389_v2 }
 0x253   : > { %v1231_v5 = vpop.permute.xlu1 %1230  ;;  %v1257_v6 = vpop.permute.xlu0 %1256 }
 0x254   : > { %v1262_v32 = vadd.f32 %v1257_v6, %v1234_v4  ;;  %v1409_v8 = vsel %vm1405_vm4, %v1389_v2, %v1407_v3  ;;  %v1235_v47 = vadd.f32 %v1231_v5, %v1207_v0  ;;  %v1534_v2 = vstv %s2132_s23  ;;  %s2139_s23 = sld [smem:[#allocation17 + $0xf]] }
 0x255   : > { %1414 = vrot.lane.b32.xlu1 %v1409_v8, %s2527_s17  ;;  %v1556_v4 = vstv %s2134_s11  ;;  %v1570_v8 = vstv %s2135_s20  ;;  %s2142_s11 = sld [smem:[#allocation18 + $0x1]] }
 0x256   : > { %v1276_v42 = vadd.f32 %v1274_v44, %v1262_v32  ;;  %s2143_s20 = sld [smem:[#allocation18 + $0x2]] }
 0x257   : > { %v1259_v9 = vpop.permute.xlu1 %1258  ;;  %v1299_v10 = vpop.permute.xlu0 %1298 }
 0x258   : > { %v1263_v7 = vadd.f32 %v1259_v9, %v1235_v47  ;;  %v1304_v15 = vadd.f32 %v1299_v10, %v1276_v42  ;;  %v1592_v10 = vstv %s2137_s27  ;;  %s2145_s27 = sld [smem:[#allocation18 + $0x4]] }
 0x25a   : > { %v1277_v16 = vadd.f32 %v1275_v12, %v1263_v7 }
 0x25b   : > { %v1301_v46 = vpop.permute.xlu1 %1300  ;;  %v1327_v17 = vpop.permute.xlu0 %1326 }
 0x25c   : > { %v1332_v36 = vadd.f32 %v1327_v17, %v1304_v15  ;;  %v1305_v11 = vadd.f32 %v1301_v46, %v1277_v16  ;;  %v1606_v15 = vstv %s2138_s12  ;;  %s2146_s12 = sld [smem:[#allocation18 + $0x5]] }
 0x25e   : > { %v1346_v23 = vadd.f32 %v1344_v22, %v1332_v36  ;;  %v1628_v36 = vstv %s2140_s16  ;;  %s2149_s16 = sld [smem:[#allocation18 + $0x8]] }
 0x25f   : > { %v1329_v20 = vpop.permute.xlu1 %1328  ;;  %v1369_v25 = vpop.permute.xlu0 %1368 }
 0x260   : > { %v1333_v26 = vadd.f32 %v1329_v20, %v1305_v11  ;;  %v1374_v30 = vadd.f32 %v1369_v25, %v1346_v23  ;;  %v1642_v20 = vstv %s2141_s6  ;;  %s1673_s6 = sld [smem:[#allocation18]] }
 0x262   : > { %v1347_v31 = vadd.f32 %v1345_v29, %v1333_v26 }
 0x263   : > { %v1371_v28 = vpop.permute.xlu1 %1370  ;;  %v1397_v33 = vpop.permute.xlu0 %1396 }
 0x264   : > { %v1402_v38 = vadd.f32 %v1397_v33, %v1374_v30  ;;  %v1375_v35 = vadd.f32 %v1371_v28, %v1347_v31  ;;  %v1442_v30 = vstv %s1441_s29  ;;  %v1438_v28 = vstv %s1437_s25  ;;  %s1671_s29 = sld [smem:[#allocation6]] }
 0x265   : > { %s2144_s25 = sld [smem:[#allocation18 + $0x3]] }
 0x266   : > { %vm1420_vm5 = vcmp.gt.f32.partialorder %v1402_v38, 0.0  ;;  %v1422_v37 = vmul.f32 0.2, %v1402_v38 }
 0x267   : > { %v1399_v39 = vpop.permute.xlu1 %1398 }
 0x268   : > { %v1403_v40 = vadd.f32 %v1399_v39, %v1375_v35  ;;  %v1424_v43 = vsel %vm1420_vm5, %v1402_v38, %v1422_v37  ;;  %v1478_v37 = vstv %s2127_s19  ;;  %s2147_s19 = sld [smem:[#allocation18 + $0x6]] }
 0x269   : > { %1428 = vrot.lane.b32.xlu0 %v1424_v43, %s2527_s17 }
 0x26a   : > { %vm1421_vm6 = vcmp.gt.f32.partialorder %v1403_v40, 0.0  ;;  %v1423_v24 = vmul.f32 0.2, %v1403_v40 }
 0x26c   : > { %v1425_v58 = vsel %vm1421_vm6, %v1403_v40, %v1423_v24 }
 0x26d   : > { %1430 = vrot.lane.b32.xlu1 %v1425_v58, %s2527_s17 }
 0x2c3   : > { %v1413_v34 = vpop.permute.xlu0 %1412 }
 0x2c4   : > { %1418 = vst.msk [vmem:[#allocation3 + $0x1] sm:$0xff] %vm515_vm2, %v1413_v34 }
 0x2c7   : > { %v1415_v45 = vpop.permute.xlu1 %1414 }
 0x2c8   : > { %1419 = vst.msk [vmem:[#allocation3 + $0x9] sm:$0xff] %vm515_vm2, %v1415_v45 }
 0x2cb   : > { %v3313_v49 = vld [vmem:[#allocation3] sm:$0xff] }
 0x2cc   : > { %v1449_v14 = vmul.f32 %v1448_v48, %v3313_v49  ;;  %v1463_v51 = vmul.f32 %v1462_v21, %v3313_v49  ;;  %v3321_v63 = vld [vmem:[#allocation3 + $0x1] sm:$0xff]  ;;  %v1443_v31 = vmul.f32 %v1442_v30, %v3313_v49 }
 0x2cd   : > { %v1485_v54 = vmul.f32 %v1484_v52, %v3321_v63  ;;  %v1499_v61 = vmul.f32 %v1498_v27, %v3321_v63  ;;  %v1479_v34 = vmul.f32 %v1478_v37, %v3321_v63 }
 0x2ce   : > { %1453 = vrot.lane.b32.xlu0 %v1449_v14, %s2529_s28  ;;  %v1445_v38 = vadd.f32 %v1443_v31, %v1438_v28 }
 0x2cf   : > { %v3317_v57 = vld [vmem:[#allocation3 + $0x8] sm:$0xff] }
 0x2d0   : > { %v1450_v50 = vmul.f32 %v1448_v48, %v3317_v57  ;;  %v1464_v53 = vmul.f32 %v1462_v21, %v3317_v57  ;;  %v3327_v55 = vld [vmem:[#allocation3 + $0x9] sm:$0xff]  ;;  %v1444_v35 = vmul.f32 %v1442_v30, %v3317_v57 }
 0x2d1   : > { %v1486_v56 = vmul.f32 %v1484_v52, %v3327_v55  ;;  %v3333_v59 = vld [vmem:[#allocation3 + $0x2] sm:$0xff]  ;;  %v1500_v0 = vmul.f32 %v1498_v27, %v3327_v55  ;;  %v3340_v41 = vld [vmem:[#allocation3 + $0xa] sm:$0xff]  ;;  %v1480_v49 = vmul.f32 %v1478_v37, %v3327_v55 }
 0x2d2   : > { %1455 = vrot.lane.b32.xlu1 %v1450_v50, %s2529_s28  ;;  %1467 = vrot.lane.b32.xlu0 %v1463_v51, %s2530_s4  ;;  %v1521_v1 = vmul.f32 %v1520_v60, %v3333_v59  ;;  %v1522_v19 = vmul.f32 %v1520_v60, %v3340_v41  ;;  %v1535_v3 = vmul.f32 %v1534_v2, %v3333_v59  ;;  %v1514_v51 = vstv %s2130_s22 }
 0x2d3   : > { %v1536_v6 = vmul.f32 %v1534_v2, %v3340_v41  ;;  %v1446_v24 = vadd.f32 %v1444_v35, %v1438_v28  ;;  %v1550_v2 = vstv %s2133_s30 }
 0x2d6   : > { %1469 = vrot.lane.b32.xlu1 %v1464_v53, %s2530_s4  ;;  %1489 = vrot.lane.b32.xlu0 %v1485_v54, %s2529_s28 }
 0x2da   : > { %1491 = vrot.lane.b32.xlu1 %v1486_v56, %s2529_s28  ;;  %1503 = vrot.lane.b32.xlu0 %v1499_v61, %s2530_s4  ;;  %v1515_v56 = vmul.f32 %v1514_v51, %v3333_v59 }
 0x2db   : > { %v1429_v62 = vpop.permute.xlu0 %1428 }
 0x2dc   : > { %1435 = vst.msk [vmem:[#allocation3 + $0x19] sm:$0xff] %vm515_vm2, %v1429_v62 }
 0x2de   : > { %1505 = vrot.lane.b32.xlu1 %v1500_v0, %s2530_s4  ;;  %1525 = vrot.lane.b32.xlu0 %v1521_v1, %s2529_s28  ;;  %v1516_v1 = vmul.f32 %v1514_v51, %v3340_v41 }
 0x2df   : > { %v1431_v18 = vpop.permute.xlu1 %1430 }
 0x2e0   : > { %1436 = vst.msk [vmem:[#allocation3 + $0x21] sm:$0xff] %vm515_vm2, %v1431_v18 }
 0x2e2   : > { %1527 = vrot.lane.b32.xlu1 %v1522_v19, %s2529_s28  ;;  %1539 = vrot.lane.b32.xlu0 %v1535_v3, %s2530_s4 }
 0x2e3   : > { %v3349_v5 = vld [vmem:[#allocation3 + $0x18] sm:$0xff] }
 0x2e4   : > { %v1557_v32 = vmul.f32 %v1556_v4, %v3349_v5  ;;  %v1571_v42 = vmul.f32 %v1570_v8, %v3349_v5  ;;  %v3359_v9 = vld [vmem:[#allocation3 + $0x19] sm:$0xff] }
 0x2e5   : > { %v1593_v12 = vmul.f32 %v1592_v10, %v3359_v9  ;;  %v1607_v46 = vmul.f32 %v1606_v15, %v3359_v9 }
 0x2e6   : > { %1541 = vrot.lane.b32.xlu1 %v1536_v6, %s2530_s4  ;;  %1561 = vrot.lane.b32.xlu0 %v1557_v32, %s2529_s28  ;;  %v1551_v6 = vmul.f32 %v1550_v2, %v3349_v5 }
 0x2e7   : > { %v3355_v44 = vld [vmem:[#allocation3 + $0x20] sm:$0xff] }
 0x2e8   : > { %v1558_v47 = vmul.f32 %v1556_v4, %v3355_v44  ;;  %v1572_v7 = vmul.f32 %v1570_v8, %v3355_v44  ;;  %v3365_v13 = vld [vmem:[#allocation3 + $0x21] sm:$0xff] }
 0x2e9   : > { %v1594_v16 = vmul.f32 %v1592_v10, %v3365_v13  ;;  %v3371_v17 = vld [vmem:[#allocation3 + $0x1a] sm:$0xff]  ;;  %v1608_v22 = vmul.f32 %v1606_v15, %v3365_v13  ;;  %v3377_v23 = vld [vmem:[#allocation3 + $0x22] sm:$0xff]  ;;  %v1552_v10 = vmul.f32 %v1550_v2, %v3355_v44 }
 0x2ea   : > { %1563 = vrot.lane.b32.xlu1 %v1558_v47, %s2529_s28  ;;  %1575 = vrot.lane.b32.xlu0 %v1571_v42, %s2530_s4  ;;  %v1629_v11 = vmul.f32 %v1628_v36, %v3371_v17  ;;  %v1630_v25 = vmul.f32 %v1628_v36, %v3377_v23  ;;  %v1643_v26 = vmul.f32 %v1642_v20, %v3371_v17 }
 0x2eb   : > { %v1644_v29 = vmul.f32 %v1642_v20, %v3377_v23 }
 0x2ee   : > { %1577 = vrot.lane.b32.xlu1 %v1572_v7, %s2530_s4  ;;  %1597 = vrot.lane.b32.xlu0 %v1593_v12, %s2529_s28  ;;  %v1586_v7 = vstv %s2136_s26  ;;  %s2531_s26 = smov [#allocation20]  }
 0x2ef   : > { %v1587_v36 = vmul.f32 %v1586_v7, %v3359_v9 }
 0x2f2   : > { %1599 = vrot.lane.b32.xlu1 %v1594_v16, %s2529_s28  ;;  %1611 = vrot.lane.b32.xlu0 %v1607_v46, %s2530_s4 }
 0x2f6   : > { %1613 = vrot.lane.b32.xlu1 %v1608_v22, %s2530_s4  ;;  %1633 = vrot.lane.b32.xlu0 %v1629_v11, %s2529_s28 }
 0x2fa   : > { %1635 = vrot.lane.b32.xlu1 %v1630_v25, %s2529_s28  ;;  %1647 = vrot.lane.b32.xlu0 %v1643_v26, %s2530_s4  ;;  %v1588_v26 = vmul.f32 %v1586_v7, %v3365_v13  ;;  %v1676_v7 = vstv %s1673_s6 }
 0x2fe   : > { %1649 = vrot.lane.b32.xlu1 %v1644_v29, %s2530_s4  ;;  %v1622_v29 = vstv %s2139_s23  ;;  %s2440_s23 = sshll.u32 %s2531_s26, 4  ;;  %s2441_s23 = int_to_ptr.vmem [resolvable:$false] %s2440_s23 }
 0x340   : > { %v1454_v33 = vpop.permute.xlu0 %1453 }
 0x341   : > { %v1459_v39 = vadd.f32 %v1454_v33, %v1445_v38  ;;  %v1623_v38 = vmul.f32 %v1622_v29, %v3371_v17 }
 0x344   : > { %v1456_v40 = vpop.permute.xlu1 %1455  ;;  %v1468_v43 = vpop.permute.xlu0 %1467 }
 0x345   : > { %v1473_v58 = vadd.f32 %v1468_v43, %v1459_v39  ;;  %v1460_v45 = vadd.f32 %v1456_v40, %v1446_v24  ;;  %v1624_v43 = vmul.f32 %v1622_v29, %v3377_v23 }
 0x347   : > { %v1481_v48 = vadd.f32 %v1479_v34, %v1473_v58 }
 0x348   : > { %v1470_v14 = vpop.permute.xlu1 %1469  ;;  %v1490_v21 = vpop.permute.xlu0 %1489 }
 0x349   : > { %v1474_v50 = vadd.f32 %v1470_v14, %v1460_v45  ;;  %v1495_v52 = vadd.f32 %v1490_v21, %v1481_v48 }
 0x34b   : > { %v1482_v57 = vadd.f32 %v1480_v49, %v1474_v50 }
 0x34c   : > { %v1492_v53 = vpop.permute.xlu1 %1491  ;;  %v1504_v54 = vpop.permute.xlu0 %1503 }
 0x34d   : > { %v1509_v27 = vadd.f32 %v1504_v54, %v1495_v52  ;;  %v1496_v61 = vadd.f32 %v1492_v53, %v1482_v57  ;;  %v1682_v57 = vstv %s2142_s11  ;;  %s2442_s11 = scalar_lea.vmem %s2441_s23, 2048 }
 0x34f   : > { %v1517_v60 = vadd.f32 %v1515_v56, %v1509_v27  ;;  %v1696_v27 = vstv %s2143_s20 }
 0x350   : > { %v1506_v62 = vpop.permute.xlu1 %1505  ;;  %v1526_v63 = vpop.permute.xlu0 %1525 }
 0x351   : > { %v1510_v0 = vadd.f32 %v1506_v62, %v1496_v61  ;;  %v1531_v18 = vadd.f32 %v1526_v63, %v1517_v60  ;;  %v1718_v63 = vstv %s2145_s27 }
 0x353   : > { %v1518_v55 = vadd.f32 %v1516_v1, %v1510_v0 }
 0x354   : > { %v1528_v19 = vpop.permute.xlu1 %1527  ;;  %v1540_v3 = vpop.permute.xlu0 %1539 }
 0x355   : > { %v1545_v4 = vadd.f32 %v1540_v3, %v1531_v18  ;;  %v1532_v32 = vadd.f32 %v1528_v19, %v1518_v55  ;;  %v1732_v18 = vstv %s2146_s12 }
 0x357   : > { %v1553_v8 = vadd.f32 %v1551_v6, %v1545_v4 }
 0x358   : > { %v1542_v47 = vpop.permute.xlu1 %1541  ;;  %v1562_v59 = vpop.permute.xlu0 %1561 }
 0x359   : > { %v1546_v42 = vadd.f32 %v1542_v47, %v1532_v32  ;;  %v1567_v12 = vadd.f32 %v1562_v59, %v1553_v8  ;;  %v1768_v47 = vstv %s2149_s16 }
 0x35b   : > { %v1554_v41 = vadd.f32 %v1552_v10, %v1546_v42 }
 0x35c   : > { %v1564_v15 = vpop.permute.xlu1 %1563  ;;  %v1576_v16 = vpop.permute.xlu0 %1575 }
 0x35d   : > { %v1581_v46 = vadd.f32 %v1576_v16, %v1567_v12  ;;  %v1568_v22 = vadd.f32 %v1564_v15, %v1554_v41  ;;  %v1672_v41 = vstv %s1671_s29 }
 0x35f   : > { %v1589_v11 = vadd.f32 %v1587_v36, %v1581_v46  ;;  %v1712_v36 = vstv %s2144_s25 }
 0x360   : > { %v1578_v20 = vpop.permute.xlu1 %1577  ;;  %v1598_v5 = vpop.permute.xlu0 %1597 }
 0x361   : > { %v1582_v25 = vadd.f32 %v1578_v20, %v1568_v22  ;;  %v1603_v30 = vadd.f32 %v1598_v5, %v1589_v11 }
 0x363   : > { %v1590_v31 = vadd.f32 %v1588_v26, %v1582_v25 }
 0x364   : > { %v1600_v44 = vpop.permute.xlu1 %1599  ;;  %v1612_v28 = vpop.permute.xlu0 %1611 }
 0x365   : > { %v1617_v33 = vadd.f32 %v1612_v28, %v1603_v30  ;;  %v1604_v35 = vadd.f32 %v1600_v44, %v1590_v31 }
 0x367   : > { %v1625_v37 = vadd.f32 %v1623_v38, %v1617_v33  ;;  %v1748_v38 = vstv %s2147_s19 }
 0x368   : > { %v1614_v39 = vpop.permute.xlu1 %1613  ;;  %v1634_v40 = vpop.permute.xlu0 %1633 }
 0x369   : > { %v1618_v9 = vadd.f32 %v1614_v39, %v1604_v35  ;;  %v1639_v24 = vadd.f32 %v1634_v40, %v1625_v37 }
 0x36b   : > { %v1626_v58 = vadd.f32 %v1624_v43, %v1618_v9 }
 0x36c   : > { %v1636_v34 = vpop.permute.xlu1 %1635  ;;  %v1648_v45 = vpop.permute.xlu0 %1647 }
 0x36d   : > { %v1653_v13 = vadd.f32 %v1648_v45, %v1639_v24  ;;  %v1640_v48 = vadd.f32 %v1636_v34, %v1626_v58 }
 0x36f   : > { %vm1655_vm7 = vcmp.gt.f32.partialorder %v1653_v13, 0.0  ;;  %v1657_v14 = vmul.f32 0.2, %v1653_v13 }
 0x370   : > { %v1650_v21 = vpop.permute.xlu1 %1649 }
 0x371   : > { %v1654_v50 = vadd.f32 %v1650_v21, %v1640_v48  ;;  %v1659_v49 = vsel %vm1655_vm7, %v1653_v13, %v1657_v14 }
 0x372   : > { %1663 = vrot.lane.b32.xlu0 %v1659_v49, %s2527_s17 }
 0x373   : > { %vm1656_vm8 = vcmp.gt.f32.partialorder %v1654_v50, 0.0  ;;  %v1658_v17 = vmul.f32 0.2, %v1654_v50 }
 0x375   : > { %v1660_v51 = vsel %vm1656_vm8, %v1654_v50, %v1658_v17 }
 0x376   : > { %1665 = vrot.lane.b32.xlu1 %v1660_v51, %s2527_s17  ;;  %s2148_s17 = sld [smem:[#allocation18 + $0x7]] }
 0x37c   : > { %v1754_v4 = vstv %s2148_s17 }
 0x3e4   : > { %v1664_v23 = vpop.permute.xlu0 %1663 }
 0x3e5   : > { %1669 = vst.msk [vmem:[#allocation4 + $0x1] sm:$0xff] %vm515_vm2, %v1664_v23 }
 0x3e8   : > { %v1666_v52 = vpop.permute.xlu1 %1665 }
 0x3e9   : > { %1670 = vst.msk [vmem:[#allocation4 + $0x9] sm:$0xff] %vm515_vm2, %v1666_v52 }
 0x3ec   : > { %v1674_v53 = vld [vmem:[#allocation4] sm:$0xff] }
 0x3ed   : > { %v1683_v54 = vmul.f32 %v1682_v57, %v1674_v53  ;;  %v1697_v60 = vmul.f32 %v1696_v27, %v1674_v53  ;;  %v1710_v62 = vld [vmem:[#allocation4 + $0x1] sm:$0xff]  ;;  %v1677_v12 = vmul.f32 %v1676_v7, %v1674_v53 }
 0x3ee   : > { %v1719_v1 = vmul.f32 %v1718_v63, %v1710_v62  ;;  %v1733_v19 = vmul.f32 %v1732_v18, %v1710_v62  ;;  %v1713_v26 = vmul.f32 %v1712_v36, %v1710_v62  ;;  %v1795_v62 = vld [vmem:[%s2845_s18] sm:$0xff] }
 0x3ef   : > { %1687 = vrot.lane.b32.xlu0 %v1683_v54, %s2529_s28  ;;  %v1679_v16 = vadd.f32 %v1677_v12, %v1672_v41 }
 0x3f0   : > { %v1675_v56 = vld [vmem:[#allocation4 + $0x8] sm:$0xff] }
 0x3f1   : > { %v1684_v61 = vmul.f32 %v1682_v57, %v1675_v56  ;;  %v1698_v0 = vmul.f32 %v1696_v27, %v1675_v56  ;;  %v1711_v2 = vld [vmem:[#allocation4 + $0x9] sm:$0xff]  ;;  %v1678_v46 = vmul.f32 %v1676_v7, %v1675_v56 }
 0x3f2   : > { %v1720_v55 = vmul.f32 %v1718_v63, %v1711_v2  ;;  %v1746_v3 = vld [vmem:[#allocation4 + $0x2] sm:$0xff]  ;;  %v1734_v6 = vmul.f32 %v1732_v18, %v1711_v2  ;;  %v1747_v8 = vld [vmem:[#allocation4 + $0xa] sm:$0xff]  ;;  %v1714_v33 = vmul.f32 %v1712_v36, %v1711_v2  ;;  %v2160_v2 = vld [vmem:[%s2845_s18 + $0x20] sm:$0xff] }
 0x3f3   : > { %1689 = vrot.lane.b32.xlu1 %v1684_v61, %s2529_s28  ;;  %1701 = vrot.lane.b32.xlu0 %v1697_v60, %s2530_s4  ;;  %v1755_v32 = vmul.f32 %v1754_v4, %v1746_v3  ;;  %v1756_v59 = vmul.f32 %v1754_v4, %v1747_v8  ;;  %v1769_v42 = vmul.f32 %v1768_v47, %v1746_v3  ;;  %v1793_v60 = vld [vmem:[%s2852_s24] sm:$0xff]  ;;  %v2152_v63 = vld [vmem:[%s2852_s24 + $0x10] sm:$0xff] }
 0x3f4   : > { %v1770_v10 = vmul.f32 %v1768_v47, %v1747_v8  ;;  %v1680_v5 = vadd.f32 %v1678_v46, %v1672_v41  ;;  %v1749_v43 = vmul.f32 %v1748_v38, %v1746_v3  ;;  %v1750_v48 = vmul.f32 %v1748_v38, %v1747_v8  ;;  %v2164_v18 = vld [vmem:[%s2852_s24 + $0x30] sm:$0xff]  ;;  %v1796_v3 = vld [vmem:[%s2845_s18 + $0x8] sm:$0xff]  ;;  %v2153_v4 = vld [vmem:[%s2852_s24 + $0x18] sm:$0xff] }
 0x3f5   : > { %v1797_v8 = vsub.f32 %v1795_v62, %v1793_v60  ;;  %v2167_v7 = vld [vmem:[%s2845_s18 + $0x38] sm:$0xff] }
 0x3f7   : > { %1703 = vrot.lane.b32.xlu1 %v1698_v0, %s2530_s4  ;;  %1723 = vrot.lane.b32.xlu0 %v1719_v1, %s2529_s28  ;;  %v2154_v0 = vld [vmem:[%s2845_s18 + $0x10] sm:$0xff]  ;;  %v2158_v1 = vld [vmem:[%s2852_s24 + $0x20] sm:$0xff] }
 0x3f8   : > { %v1812_v47 = vsub.f32 %v2154_v0, %v2152_v63 }
 0x3fb   : > { %1725 = vrot.lane.b32.xlu1 %v1720_v55, %s2529_s28  ;;  %1737 = vrot.lane.b32.xlu0 %v1733_v19, %s2530_s4  ;;  %v2166_v55 = vld [vmem:[%s2845_s18 + $0x30] sm:$0xff]  ;;  %v1794_v19 = vld [vmem:[%s2852_s24 + $0x8] sm:$0xff] }
 0x3fc   : > { %v1842_v12 = vsub.f32 %v2166_v55, %v2164_v18 }
 0x3ff   : > { %1739 = vrot.lane.b32.xlu1 %v1734_v6, %s2530_s4  ;;  %1759 = vrot.lane.b32.xlu0 %v1755_v32, %s2529_s28  ;;  %v2155_v6 = vld [vmem:[%s2845_s18 + $0x18] sm:$0xff]  ;;  %v2159_v32 = vld [vmem:[%s2852_s24 + $0x28] sm:$0xff] }
 0x403   : > { %1761 = vrot.lane.b32.xlu1 %v1756_v59, %s2529_s28  ;;  %1773 = vrot.lane.b32.xlu0 %v1769_v42, %s2530_s4  ;;  %v2161_v59 = vld [vmem:[%s2845_s18 + $0x28] sm:$0xff]  ;;  %v1827_v42 = vsub.f32 %v2160_v2, %v2158_v1  ;;  %s2178_s28 = sshll.u32 %s2611_s8, 10 }
 0x404   : > { %v1828_v46 = vsub.f32 %v2161_v59, %v2159_v32  ;;  %s3440_s8 = scalar_lea.hbm %s3498_s9, %s2178_s28 }
 0x407   : > { %1775 = vrot.lane.b32.xlu1 %v1770_v10, %s2530_s4  ;;  %v2165_v10 = vld [vmem:[%s2852_s24 + $0x38] sm:$0xff]  ;;  %s481_s24 = scalar_lea.vmem [#allocation20], %s2833_s21  ;;  %s1852_s21 = scalar_lea.sflag [#allocation9], %s2830_s0 }
 0x408   : > { %v1843_v36 = vsub.f32 %v2167_v7, %v2165_v10  ;;  %s1865_s18 = sshll.u32 %s481_s24, 4  ;;  %s3442_s18 = int_to_ptr.vmem [resolvable:$true] %s1865_s18 }
 0x409   : > { %s2436_s30 = scalar_lea.vmem %s3442_s18, 1024  ;;  %p2443_p8 = scmp.lt.s32.totalorder %s3442_s18, %s2441_s23 }
 0x40a   : > { %p2437_p5 = scmp.ne.s32.totalorder %s3442_s18, %s2436_s30  ;;  %p2444_p6 = scmp.lt.s32.totalorder %s2442_s11, %s2436_s30 }
 0x40c   : > { %p2438_p10 = pnand %p2437_p5, %p3550_p13  ;;  %p2445_p7 = por %p2444_p6, %p2443_p8 }
 0x40e   : > { %p2439_p12 = pneg %p2438_p10 }
 0x410   : > { %p2446_p11 = pnand %p2445_p7, %p2439_p12 }
 0x461   : > { %v1688_v15 = vpop.permute.xlu0 %1687 }
 0x462   : > { %v1693_v22 = vadd.f32 %v1688_v15, %v1679_v16  ;;  %v1798_v15 = vsub.f32 %v1796_v3, %v1794_v19  ;;  %v1813_v16 = vsub.f32 %v2155_v6, %v2153_v4 }
 0x465   : > { %v1690_v11 = vpop.permute.xlu1 %1689  ;;  %v1702_v20 = vpop.permute.xlu0 %1701 }
 0x466   : > { %v1707_v25 = vadd.f32 %v1702_v20, %v1693_v22  ;;  %v1694_v29 = vadd.f32 %v1690_v11, %v1680_v5 }
 0x468   : > { %v1715_v30 = vadd.f32 %v1713_v26, %v1707_v25 }
 0x469   : > { %v1704_v31 = vpop.permute.xlu1 %1703  ;;  %v1724_v44 = vpop.permute.xlu0 %1723 }
 0x46a   : > { %v1708_v28 = vadd.f32 %v1704_v31, %v1694_v29  ;;  %v1729_v35 = vadd.f32 %v1724_v44, %v1715_v30 }
 0x46c   : > { %v1716_v37 = vadd.f32 %v1714_v33, %v1708_v28 }
 0x46d   : > { %v1726_v39 = vpop.permute.xlu1 %1725  ;;  %v1738_v40 = vpop.permute.xlu0 %1737 }
 0x46e   : > { %v1743_v9 = vadd.f32 %v1738_v40, %v1729_v35  ;;  %v1730_v24 = vadd.f32 %v1726_v39, %v1716_v37 }
 0x470   : > { %v1751_v58 = vadd.f32 %v1749_v43, %v1743_v9 }
 0x471   : > { %v1740_v34 = vpop.permute.xlu1 %1739  ;;  %v1760_v45 = vpop.permute.xlu0 %1759 }
 0x472   : > { %v1744_v13 = vadd.f32 %v1740_v34, %v1730_v24  ;;  %v1765_v14 = vadd.f32 %v1760_v45, %v1751_v58 }
 0x474   : > { %v1752_v21 = vadd.f32 %v1750_v48, %v1744_v13 }
 0x475   : > { %v1762_v50 = vpop.permute.xlu1 %1761  ;;  %v1774_v49 = vpop.permute.xlu0 %1773 }
 0x476   : > { %v1779_v17 = vadd.f32 %v1774_v49, %v1765_v14  ;;  %v1766_v51 = vadd.f32 %v1762_v50, %v1752_v21 }
 0x478   : > { %v2150_v23 = vmul.f32 -1.442695, %v1779_v17 }
 0x479   : > { %v1776_v52 = vpop.permute.xlu1 %1775 }
 0x47a   : > { %2284 = vpow2.f32 %v2150_v23  ;;  %v1780_v57 = vadd.f32 %v1776_v52, %v1766_v51 }
 0x47c   : > { %v2151_v53 = vmul.f32 -1.442695, %v1780_v57 }
 0x47e   : > { %2286 = vpow2.f32 %v2151_v53 }
 0x487   : > { %v2285_v54 = vpop.eup %2284 }
 0x488   : > { %v1787_v27 = vadd.f32 1.0, %v2285_v54 }
 0x48a   : > { %2288 = vrcp.f32 %v1787_v27 }
 0x48b   : > { %v2287_v56 = vpop.eup %2286 }
 0x48c   : > { %v1788_v61 = vadd.f32 1.0, %v2287_v56 }
 0x48e   : > { %2290 = vrcp.f32 %v1788_v61 }
 0x497   : > { %v2289_v41 = vpop.eup %2288 }
 0x498   : > { %v1799_v22 = vmul.f32 %v2289_v41, %v1797_v8  ;;  %v1814_v11 = vmul.f32 %v2289_v41, %v1812_v47  ;;  %v1829_v20 = vmul.f32 %v2289_v41, %v1827_v42  ;;  %v1844_v5 = vmul.f32 %v2289_v41, %v1842_v12 }
 0x49a   : > { %v1801_v25 = vadd.f32 %v1799_v22, %v1793_v60  ;;  %v1816_v26 = vadd.f32 %v2152_v63, %v1814_v11  ;;  %v1831_v29 = vadd.f32 %v2158_v1, %v1829_v20  ;;  %v1846_v30 = vadd.f32 %v2164_v18, %v1844_v5 }
 0x49b   : > { %v2291_v31 = vpop.eup %2290 }
 0x49c   : > { %v1800_v44 = vmul.f32 %v2291_v31, %v1798_v15  ;;  %1804 = vst.msk [vmem:[%s481_s24] sm:$0xff] %vm1803_vm9, %v1801_v25  ;;  %v1815_v28 = vmul.f32 %v2291_v31, %v1813_v16  ;;  %2156 = vst.msk [vmem:[%s481_s24 + $0x10] sm:$0xff] %vm1803_vm9, %v1816_v26  ;;  %v1830_v33 = vmul.f32 %v2291_v31, %v1828_v46 }
 0x49d   : > { %2162 = vst.msk [vmem:[%s481_s24 + $0x20] sm:$0xff] %vm1803_vm9, %v1831_v29  ;;  %v1845_v38 = vmul.f32 %v2291_v31, %v1843_v36  ;;  %2168 = vst.msk [vmem:[%s481_s24 + $0x30] sm:$0xff] %vm1803_vm9, %v1846_v30 }
 0x49e   : > { %v1802_v35 = vadd.f32 %v1800_v44, %v1794_v19  ;;  %v1817_v37 = vadd.f32 %v2153_v4, %v1815_v28  ;;  %v1832_v39 = vadd.f32 %v2159_v32, %v1830_v33 }
 0x49f   : > { %v1847_v40 = vadd.f32 %v2165_v10, %v1845_v38 }
 0x4a0   : > { %1805 = vst.msk [vmem:[%s481_s24 + $0x8] sm:$0xff] %vm1803_vm9, %v1802_v35  ;;  %2157 = vst.msk [vmem:[%s481_s24 + $0x18] sm:$0xff] %vm1803_vm9, %v1817_v37 }
 0x4a1   : > { %2163 = vst.msk [vmem:[%s481_s24 + $0x28] sm:$0xff] %vm1803_vm9, %v1832_v39  ;;  %2169 = vst.msk [vmem:[%s481_s24 + $0x38] sm:$0xff] %vm1803_vm9, %v1847_v40 }
 0x4a2   : > { %2449 = shalt.err (!%p2446_p11)
}
 0x4a3   : > { %s2450_s20 = scalar_lea.hbm %s3440_s8, 1024  ;;  %s2454_s17 = scalar_lea.hbm %s3498_s9, 2048 }
 0x4a4   : > { %p2451_p4 = scmp.ne.s32.totalorder %s3440_s8, %s2450_s20  ;;  %p2455_p1 = scmp.lt.s32.totalorder %s3440_s8, %s3498_s9 }
 0x4a5   : > { %p2456_p2 = scmp.lt.s32.totalorder %s2454_s17, %s2450_s20 }
 0x4a6   : > { %p2452_p3 = pnand %p2451_p4, %p3550_p13 }
 0x4a7   : > { %p2457_p0 = por %p2456_p2, %p2455_p1 }
 0x4a8   : > { %p2453_p9 = pneg %p2452_p3 }
 0x4aa   : > { %p2458_p5 = pnand %p2457_p0, %p2453_p9 }
 0x4ac   : > { %2461 = shalt.err (!%p2458_p5)
}
 0x4ad   : > { %s2532_s29 = smov 128   ;;  %s2533_s25 = smov 8  }
 0x4ae   : > { %2201 = dma.vmem_to_hbm [thread:$0]  (%p3550_p13), %s3442_s18, 1024, %s3440_s8, %s1852_s21, %s2532_s29, %s2532_s29, %s2533_s25  }
 0x4af PF: > { %s3551_s19 = sld [smem:[#allocation28_spill]]  ;;  %s1880_s24 = sand.u32 1, %s2504_s13  }
 0x4b0   : > { %s3552_s28 = sld [smem:[#allocation27_spill]]  ;;  %s1881_s4 = scalar_lea.sflag [#allocation9], %s1880_s24 }
 0x4b5   : > { %p3553_p10 = scmp.ne.s32.totalorder %s3551_s19, 0 }
 0x4b6   : > { %p3554_p12 = scmp.ge.s32.totalorder %s3552_s28, 2 }
 0x4b8   : > { %p2227_p8 = pnand %p3554_p12, %p3553_p10 }
 0x4ba   : > { %p2228_p6 = pneg %p2227_p8 }
 0x4bc   : > { %2499 = dma.done.wait (%p2228_p6), %s1881_s4, 1024  }
 0x4bd   : > { %2501 = vsyncadd (%p2228_p6), %s1881_s4, 4294966272  ;;  %s3555_s6 = sld [smem:[#allocation29_spill]]  ;;  %s3557_s13 = smov %s2508_s14 }
 0x4be   : > { %s3556_s22 = sld [smem:[#allocation30_spill]]  ;;  %s3558_s14 = smov %s2512_s15 }
 0x4c3   : > { %p30_p7 = scmp.ge.s32.totalorder %s3555_s6, 4  }
 0x4c4   : > { %s3559_s15 = smov %s3556_s22 }
 0x4c5   :  { %32 = sbr.rel (!%p30_p7) target bundleno = 15 (0xf), region = 158 }
 0x4ca   :  { %1886 = vsyncpa [#allocation8], 1 }
 0x4cb   :  { %1888 = vsyncpa [#allocation8 + $0x1], 1 }
 0x4cc   :  { %1889 = vsyncpa [#allocation12], 1 }
 0x4cd   :  { %1891 = vsyncpa [#allocation12 + $0x1], 1 }
 0x4ce   :  { %1892 = vsyncpa [#allocation9], 1 }
 0x4cf   :  { %1894 = vsyncpa [#allocation9 + $0x1], 1 }
 0x4d0   :  { %1895 = vsyncpa [#allocation10], 1 }
 0x4d1   :  { %1897 = vsyncpa [#allocation10 + $0x1], 1 }
 0x4d2   :  { %1898 = vsyncpa [#allocation16], 1 }
 0x4d3   :  { %1899 = vsyncpa [#allocation19], 1 }

</bundles_post_ra>
